<compile_context>
chip_gen: v6e
topology: v6e:2x2x1
jax: 0.10.0
libtpu: 0.0.40
codegen_flags: <defaults>
</compile_context>

<pallas_src>
import math
import functools

import jax
import jax.numpy as jnp
from jax.experimental import pallas as pl
from jax.experimental.pallas import tpu as pltpu


# ----------------------------------------------------------------------------
# Fused decoder kernel
# ----------------------------------------------------------------------------

def _decoder_kernel(x_ref, pe_ref, cls_ref,
                    sa_wqkv_ref, sa_bqkv_ref, sa_wo_ref, sa_bo_ref,
                    ca_wq_ref, ca_bq_ref, ca_wkv_ref, ca_bkv_ref,
                    ca_wo_ref, ca_bo_ref,
                    ff_w1_ref, ff_b1_ref, ff_w2_ref, ff_b2_ref,
                    ln1_g_ref, ln1_b_ref, ln2_g_ref, ln2_b_ref,
                    ln3_g_ref, ln3_b_ref,
                    fin_w_ref, fin_b_ref,
                    out_ref, *, num_blocks, num_heads, dk, eps):
    B, S, D = x_ref.shape
    BS = B * S
    HD = num_heads * dk
    scale = 1.0 / math.sqrt(dk)

    def layernorm(z, g, b):
        mu = jnp.mean(z, axis=-1, keepdims=True)
        var = jnp.mean((z - mu) * (z - mu), axis=-1, keepdims=True)
        return (z - mu) * jax.lax.rsqrt(var + eps) * g + b

    def softmax_attn(s):
        s = s - jnp.max(s, axis=-1, keepdims=True)
        e = jnp.exp(s)
        return e * pl.reciprocal(jnp.sum(e, axis=-1, keepdims=True), approx=True)

    # positional-encoding add fused into the kernel
    x = x_ref[...] + pe_ref[...][None, :, :]            # (B, S, D)
    x2 = x.reshape(BS, D)                               # (B*S, D)
    mem = cls_ref[...]                                  # (Mkv, D), shared across batch

    for i in range(num_blocks):
        # ---- multi-head self attention (dense stand-in for rand-global) ----
        qkv = jnp.dot(x2, sa_wqkv_ref[i],
                      preferred_element_type=jnp.float32) + sa_bqkv_ref[i]
        wo = sa_wo_ref[i]                               # (HD, D)
        sa_out = jnp.zeros((BS, D), jnp.float32)
        for h in range(num_heads):
            q_h = qkv[:, h * dk:(h + 1) * dk].reshape(B, S, dk)
            k_h = qkv[:, HD + h * dk:HD + (h + 1) * dk].reshape(B, S, dk)
            v_h = qkv[:, 2 * HD + h * dk:2 * HD + (h + 1) * dk].reshape(B, S, dk)
            s = jnp.einsum('bqd,bkd->bqk', q_h, k_h,
                           preferred_element_type=jnp.float32) * scale
            p = softmax_attn(s)
            o_h = jnp.einsum('bqk,bkd->bqd', p, v_h,
                             preferred_element_type=jnp.float32).reshape(BS, dk)
            # accumulate the output projection per head (no in-kernel concat)
            sa_out = sa_out + jnp.dot(o_h, wo[h * dk:(h + 1) * dk, :],
                                      preferred_element_type=jnp.float32)
        sa_out = sa_out + sa_bo_ref[i]
        x2 = layernorm(x2 + sa_out, ln1_g_ref[i], ln1_b_ref[i])

        # ---- cross attention over the class-vector memory ----
        q = jnp.dot(x2, ca_wq_ref[i],
                    preferred_element_type=jnp.float32) + ca_bq_ref[i]       # (BS, HD)
        kv = jnp.dot(mem, ca_wkv_ref[i],
                     preferred_element_type=jnp.float32) + ca_bkv_ref[i]     # (Mkv, 2HD)
        wo = ca_wo_ref[i]
        ca_out = jnp.zeros((BS, D), jnp.float32)
        for h in range(num_heads):
            q_h = q[:, h * dk:(h + 1) * dk]                                  # (BS, dk)
            k_h = kv[:, h * dk:(h + 1) * dk]                                 # (Mkv, dk)
            v_h = kv[:, HD + h * dk:HD + (h + 1) * dk]                       # (Mkv, dk)
            s = jax.lax.dot_general(q_h, k_h, (((1,), (1,)), ((), ())),
                                    preferred_element_type=jnp.float32) * scale
            p = softmax_attn(s)                                              # (BS, Mkv)
            o_h = jnp.dot(p, v_h, preferred_element_type=jnp.float32)        # (BS, dk)
            ca_out = ca_out + jnp.dot(o_h, wo[h * dk:(h + 1) * dk, :],
                                      preferred_element_type=jnp.float32)
        ca_out = ca_out + ca_bo_ref[i]
        x2 = layernorm(x2 + ca_out, ln2_g_ref[i], ln2_b_ref[i])

        # ---- feed forward ----
        h1 = jnp.dot(x2, ff_w1_ref[i],
                     preferred_element_type=jnp.float32) + ff_b1_ref[i]
        h1 = jnp.maximum(h1, 0.0)
        ff_out = jnp.dot(h1, ff_w2_ref[i],
                         preferred_element_type=jnp.float32) + ff_b2_ref[i]
        x2 = layernorm(x2 + ff_out, ln3_g_ref[i], ln3_b_ref[i])

    # ---- final linear + softmax (exact f32 normalization) ----
    logits = jnp.dot(x2, fin_w_ref[...],
                     preferred_element_type=jnp.float32) + fin_b_ref[...]
    logits = logits - jnp.max(logits, axis=-1, keepdims=True)
    e = jnp.exp(logits)
    probs = e / jnp.sum(e, axis=-1, keepdims=True)
    out_ref[...] = probs.reshape(B, S, D).astype(out_ref.dtype)


# ----------------------------------------------------------------------------
# Wrapper / parameters / positional encoding
# ----------------------------------------------------------------------------

def positional_encoding(sequence_len, layer_count):
    # Vectorized; matches the PyTorch loop exactly (same 2*i/d exponent for
    # both sin-on-even-i and cos-on-odd-i).
    pos = jnp.arange(sequence_len, dtype=jnp.float32)[:, None]
    i = jnp.arange(layer_count, dtype=jnp.float32)[None, :]
    denom = jnp.power(10000.0, 2.0 * i / float(layer_count))
    ang = pos / denom
    even = (jnp.arange(layer_count)[None, :] % 2) == 0
    return jnp.where(even, jnp.sin(ang), jnp.cos(ang)).astype(jnp.float32)


def init_params(key, d_model, d_ff, num_heads, num_blocks, scale=0.05):
    dk = max(d_model // num_heads, 1)
    hdk = num_heads * dk
    keys = jax.random.split(key, 8)
    p = {}
    p["sa_wqkv"] = scale * jax.random.normal(keys[0], (num_blocks, d_model, 3 * hdk), jnp.float32)
    p["sa_bqkv"] = jnp.zeros((num_blocks, 1, 3 * hdk), jnp.float32)
    p["sa_wo"] = scale * jax.random.normal(keys[1], (num_blocks, hdk, d_model), jnp.float32)
    p["sa_bo"] = jnp.zeros((num_blocks, 1, d_model), jnp.float32)
    p["ca_wq"] = scale * jax.random.normal(keys[2], (num_blocks, d_model, hdk), jnp.float32)
    p["ca_bq"] = jnp.zeros((num_blocks, 1, hdk), jnp.float32)
    p["ca_wkv"] = scale * jax.random.normal(keys[3], (num_blocks, d_model, 2 * hdk), jnp.float32)
    p["ca_bkv"] = jnp.zeros((num_blocks, 1, 2 * hdk), jnp.float32)
    p["ca_wo"] = scale * jax.random.normal(keys[4], (num_blocks, hdk, d_model), jnp.float32)
    p["ca_bo"] = jnp.zeros((num_blocks, 1, d_model), jnp.float32)
    p["ff_w1"] = scale * jax.random.normal(keys[5], (num_blocks, d_model, d_ff), jnp.float32)
    p["ff_b1"] = jnp.zeros((num_blocks, 1, d_ff), jnp.float32)
    p["ff_w2"] = scale * jax.random.normal(keys[6], (num_blocks, d_ff, d_model), jnp.float32)
    p["ff_b2"] = jnp.zeros((num_blocks, 1, d_model), jnp.float32)
    for name in ("ln1", "ln2", "ln3"):
        p[name + "_g"] = jnp.ones((num_blocks, 1, d_model), jnp.float32)
        p[name + "_b"] = jnp.zeros((num_blocks, 1, d_model), jnp.float32)
    p["final_w"] = scale * jax.random.normal(keys[7], (d_model, d_model), jnp.float32)
    p["final_b"] = jnp.zeros((1, d_model), jnp.float32)
    return p


def decoder_forward(inp, layer_output, class_vector, params, num_heads, num_blocks):
    # layer_output accepted (PyTorch signature) but unused by Block.forward.
    del layer_output
    B, S, D = inp.shape
    dk = max(D // num_heads, 1)

    pe = positional_encoding(S, D)                                 # (S, D)
    # shaped_classVector = classVector.T.expand(kv_len, d_model)
    kv_len = class_vector.shape[1]
    class_mat = jnp.broadcast_to(class_vector.T, (kv_len, D)).astype(jnp.float32)

    args = (inp.astype(jnp.float32), pe, class_mat,
            params["sa_wqkv"], params["sa_bqkv"], params["sa_wo"], params["sa_bo"],
            params["ca_wq"], params["ca_bq"], params["ca_wkv"], params["ca_bkv"],
            params["ca_wo"], params["ca_bo"],
            params["ff_w1"], params["ff_b1"], params["ff_w2"], params["ff_b2"],
            params["ln1_g"], params["ln1_b"], params["ln2_g"], params["ln2_b"],
            params["ln3_g"], params["ln3_b"],
            params["final_w"], params["final_b"])

    kernel = functools.partial(_decoder_kernel, num_blocks=num_blocks,
                               num_heads=num_heads, dk=dk, eps=1e-5)
    vmem_spec = pl.BlockSpec(memory_space=pltpu.MemorySpace.VMEM)

    return pl.pallas_call(
        kernel,
        out_shape=jax.ShapeDtypeStruct((B, S, D), jnp.float32),
        in_specs=[vmem_spec] * len(args),
        out_specs=vmem_spec,
    )(*args)


# ----------------------------------------------------------------------------
# Main
# ----------------------------------------------------------------------------

if __name__ == "__main__":
    # Small, module-consistent shapes.
    batch, seq, d_model = 2, 8, 32
    d_ff, num_heads, num_blocks = 64, 4, 2
    kv_len = 10  # classVector = rand(1, 10)

    key = jax.random.PRNGKey(0)
    k_in, k_cls, k_par, k_prev = jax.random.split(key, 4)

    x = jax.random.normal(k_in, (batch, seq, d_model), dtype=jnp.float32)
    layer_output = jax.random.normal(k_prev, (batch, seq, d_model), dtype=jnp.float32)
    class_vector = jax.random.uniform(k_cls, (1, kv_len), dtype=jnp.float32)

    params = init_params(k_par, d_model, d_ff, num_heads, num_blocks)

    out = decoder_forward(x, layer_output, class_vector, params, num_heads, num_blocks)
    out = jax.block_until_ready(out)

    assert out.shape == (batch, seq, d_model)
    # softmax rows must sum to ~1
    assert bool(jnp.allclose(jnp.sum(out, axis=-1), 1.0, atol=1e-4))
    print("KERNEL_OK")
</pallas_src>

<mosaic_0001>
module attributes {stable_mosaic.version = 11 : i64} {
  func.func @_decoder_kernel(%arg0: memref<2x8x32xf32, #tpu.memory_space<vmem>>, %arg1: memref<8x32xf32, #tpu.memory_space<vmem>>, %arg2: memref<10x32xf32, #tpu.memory_space<vmem>>, %arg3: memref<2x32x96xf32, #tpu.memory_space<vmem>>, %arg4: memref<2x1x96xf32, #tpu.memory_space<vmem>>, %arg5: memref<2x32x32xf32, #tpu.memory_space<vmem>>, %arg6: memref<2x1x32xf32, #tpu.memory_space<vmem>>, %arg7: memref<2x32x32xf32, #tpu.memory_space<vmem>>, %arg8: memref<2x1x32xf32, #tpu.memory_space<vmem>>, %arg9: memref<2x32x64xf32, #tpu.memory_space<vmem>>, %arg10: memref<2x1x64xf32, #tpu.memory_space<vmem>>, %arg11: memref<2x32x32xf32, #tpu.memory_space<vmem>>, %arg12: memref<2x1x32xf32, #tpu.memory_space<vmem>>, %arg13: memref<2x32x64xf32, #tpu.memory_space<vmem>>, %arg14: memref<2x1x64xf32, #tpu.memory_space<vmem>>, %arg15: memref<2x64x32xf32, #tpu.memory_space<vmem>>, %arg16: memref<2x1x32xf32, #tpu.memory_space<vmem>>, %arg17: memref<2x1x32xf32, #tpu.memory_space<vmem>>, %arg18: memref<2x1x32xf32, #tpu.memory_space<vmem>>, %arg19: memref<2x1x32xf32, #tpu.memory_space<vmem>>, %arg20: memref<2x1x32xf32, #tpu.memory_space<vmem>>, %arg21: memref<2x1x32xf32, #tpu.memory_space<vmem>>, %arg22: memref<2x1x32xf32, #tpu.memory_space<vmem>>, %arg23: memref<32x32xf32, #tpu.memory_space<vmem>>, %arg24: memref<1x32xf32, #tpu.memory_space<vmem>>, %arg25: memref<2x8x32xf32, #tpu.memory_space<vmem>>) attributes {dimension_semantics = [], scalar_prefetch = 0 : i64, scratch_operands = 0 : i64, tpu.core_type = #tpu.core_type<tc>} {
    %c0 = arith.constant 0 : index
    %c0_0 = arith.constant 0 : index
    %c0_1 = arith.constant 0 : index
    %0 = vector.load %arg0[%c0, %c0_0, %c0_1] : memref<2x8x32xf32, #tpu.memory_space<vmem>>, vector<2x8x32xf32>
    %c0_2 = arith.constant 0 : index
    %c0_3 = arith.constant 0 : index
    %1 = vector.load %arg1[%c0_2, %c0_3] : memref<8x32xf32, #tpu.memory_space<vmem>>, vector<8x32xf32>
    %2 = vector.shape_cast %1 : vector<8x32xf32> to vector<1x8x32xf32>
    %3 = vector.broadcast %2 : vector<1x8x32xf32> to vector<2x8x32xf32>
    %4 = arith.addf %0, %3 : vector<2x8x32xf32>
    %5 = vector.shape_cast %4 : vector<2x8x32xf32> to vector<16x32xf32>
    %c0_4 = arith.constant 0 : index
    %c0_5 = arith.constant 0 : index
    %6 = vector.load %arg2[%c0_4, %c0_5] : memref<10x32xf32, #tpu.memory_space<vmem>>, vector<10x32xf32>
    %c0_6 = arith.constant 0 : index
    %c0_7 = arith.constant 0 : index
    %c0_8 = arith.constant 0 : index
    %7 = vector.load %arg3[%c0_6, %c0_7, %c0_8] : memref<2x32x96xf32, #tpu.memory_space<vmem>>, vector<1x32x96xf32>
    %8 = vector.shape_cast %7 : vector<1x32x96xf32> to vector<32x96xf32>
    %cst = arith.constant dense<0.000000e+00> : vector<16x96xf32>
    %9 = tpu.matmul %5, %8, %cst {dimension_numbers = #tpu.dot_dimension_numbers<[1], [0], [0], [1], [0, 0, 1, 1], [], []>} : vector<16x32xf32>, vector<32x96xf32>, vector<16x96xf32> -> vector<16x96xf32>
    %c0_9 = arith.constant 0 : index
    %c0_10 = arith.constant 0 : index
    %c0_11 = arith.constant 0 : index
    %10 = vector.load %arg4[%c0_9, %c0_10, %c0_11] : memref<2x1x96xf32, #tpu.memory_space<vmem>>, vector<1x1x96xf32>
    %11 = vector.shape_cast %10 : vector<1x1x96xf32> to vector<1x96xf32>
    %12 = vector.broadcast %11 : vector<1x96xf32> to vector<16x96xf32>
    %13 = arith.addf %9, %12 : vector<16x96xf32>
    %c0_12 = arith.constant 0 : index
    %c0_13 = arith.constant 0 : index
    %c0_14 = arith.constant 0 : index
    %14 = vector.load %arg5[%c0_12, %c0_13, %c0_14] : memref<2x32x32xf32, #tpu.memory_space<vmem>>, vector<1x32x32xf32>
    %15 = vector.shape_cast %14 : vector<1x32x32xf32> to vector<32x32xf32>
    %cst_15 = arith.constant 0.000000e+00 : f32
    %16 = vector.broadcast %cst_15 : f32 to vector<16x32xf32>
    %17 = vector.extract_strided_slice %13 {offsets = [0, 0], sizes = [16, 8], strides = [1, 1]} : vector<16x96xf32> to vector<16x8xf32>
    %18 = vector.shape_cast %17 : vector<16x8xf32> to vector<2x8x8xf32>
    %19 = vector.extract_strided_slice %13 {offsets = [0, 32], sizes = [16, 8], strides = [1, 1]} : vector<16x96xf32> to vector<16x8xf32>
    %20 = vector.shape_cast %19 : vector<16x8xf32> to vector<2x8x8xf32>
    %21 = vector.extract_strided_slice %13 {offsets = [0, 64], sizes = [16, 8], strides = [1, 1]} : vector<16x96xf32> to vector<16x8xf32>
    %22 = vector.shape_cast %21 : vector<16x8xf32> to vector<2x8x8xf32>
    "tpu.trace_start"() <{level = 10 : i32, message = "bqd,bkd->bqk"}> : () -> ()
    %cst_16 = arith.constant dense<0.000000e+00> : vector<2x8x8xf32>
    %23 = tpu.matmul %18, %20, %cst_16 {dimension_numbers = #tpu.dot_dimension_numbers<[2], [2], [1], [1], [0, 0, 0, 1, 1, 1], [0], [0]>} : vector<2x8x8xf32>, vector<2x8x8xf32>, vector<2x8x8xf32> -> vector<2x8x8xf32>
    "tpu.trace_stop"() : () -> ()
    %cst_17 = arith.constant 0.353553385 : f32
    %24 = vector.broadcast %cst_17 : f32 to vector<2x8x8xf32>
    %25 = arith.mulf %23, %24 : vector<2x8x8xf32>
    %cst_18 = arith.constant dense<0xFF800000> : vector<2x8xf32>
    %26 = vector.multi_reduction <maximumf>, %25, %cst_18 [2] : vector<2x8x8xf32> to vector<2x8xf32>
    %27 = vector.shape_cast %26 : vector<2x8xf32> to vector<2x8x1xf32>
    %28 = vector.broadcast %27 : vector<2x8x1xf32> to vector<2x8x8xf32>
    %29 = arith.subf %25, %28 : vector<2x8x8xf32>
    %30 = math.exp %29 : vector<2x8x8xf32>
    %cst_19 = arith.constant dense<0.000000e+00> : vector<2x8xf32>
    %31 = vector.multi_reduction <add>, %30, %cst_19 [2] : vector<2x8x8xf32> to vector<2x8xf32>
    %32 = vector.shape_cast %31 : vector<2x8xf32> to vector<2x8x1xf32>
    %33 = tpu.reciprocal %32 {approx = true} : vector<2x8x1xf32> -> vector<2x8x1xf32>
    %34 = vector.broadcast %33 : vector<2x8x1xf32> to vector<2x8x8xf32>
    %35 = arith.mulf %30, %34 : vector<2x8x8xf32>
    "tpu.trace_start"() <{level = 10 : i32, message = "bqk,bkd->bqd"}> : () -> ()
    %cst_20 = arith.constant dense<0.000000e+00> : vector<2x8x8xf32>
    %36 = tpu.matmul %35, %22, %cst_20 {dimension_numbers = #tpu.dot_dimension_numbers<[2], [1], [1], [2], [0, 0, 0, 1, 1, 2], [0], [0]>} : vector<2x8x8xf32>, vector<2x8x8xf32>, vector<2x8x8xf32> -> vector<2x8x8xf32>
    "tpu.trace_stop"() : () -> ()
    %37 = vector.shape_cast %36 : vector<2x8x8xf32> to vector<16x8xf32>
    %38 = vector.extract_strided_slice %15 {offsets = [0, 0], sizes = [8, 32], strides = [1, 1]} : vector<32x32xf32> to vector<8x32xf32>
    %cst_21 = arith.constant dense<0.000000e+00> : vector<16x32xf32>
    %39 = tpu.matmul %37, %38, %cst_21 {dimension_numbers = #tpu.dot_dimension_numbers<[1], [0], [0], [1], [0, 0, 1, 1], [], []>} : vector<16x8xf32>, vector<8x32xf32>, vector<16x32xf32> -> vector<16x32xf32>
    %40 = arith.addf %16, %39 : vector<16x32xf32>
    %41 = vector.extract_strided_slice %13 {offsets = [0, 8], sizes = [16, 8], strides = [1, 1]} : vector<16x96xf32> to vector<16x8xf32>
    %42 = vector.shape_cast %41 : vector<16x8xf32> to vector<2x8x8xf32>
    %43 = vector.extract_strided_slice %13 {offsets = [0, 40], sizes = [16, 8], strides = [1, 1]} : vector<16x96xf32> to vector<16x8xf32>
    %44 = vector.shape_cast %43 : vector<16x8xf32> to vector<2x8x8xf32>
    %45 = vector.extract_strided_slice %13 {offsets = [0, 72], sizes = [16, 8], strides = [1, 1]} : vector<16x96xf32> to vector<16x8xf32>
    %46 = vector.shape_cast %45 : vector<16x8xf32> to vector<2x8x8xf32>
    "tpu.trace_start"() <{level = 10 : i32, message = "bqd,bkd->bqk"}> : () -> ()
    %cst_22 = arith.constant dense<0.000000e+00> : vector<2x8x8xf32>
    %47 = tpu.matmul %42, %44, %cst_22 {dimension_numbers = #tpu.dot_dimension_numbers<[2], [2], [1], [1], [0, 0, 0, 1, 1, 1], [0], [0]>} : vector<2x8x8xf32>, vector<2x8x8xf32>, vector<2x8x8xf32> -> vector<2x8x8xf32>
    "tpu.trace_stop"() : () -> ()
    %cst_23 = arith.constant 0.353553385 : f32
    %48 = vector.broadcast %cst_23 : f32 to vector<2x8x8xf32>
    %49 = arith.mulf %47, %48 : vector<2x8x8xf32>
    %cst_24 = arith.constant dense<0xFF800000> : vector<2x8xf32>
    %50 = vector.multi_reduction <maximumf>, %49, %cst_24 [2] : vector<2x8x8xf32> to vector<2x8xf32>
    %51 = vector.shape_cast %50 : vector<2x8xf32> to vector<2x8x1xf32>
    %52 = vector.broadcast %51 : vector<2x8x1xf32> to vector<2x8x8xf32>
    %53 = arith.subf %49, %52 : vector<2x8x8xf32>
    %54 = math.exp %53 : vector<2x8x8xf32>
    %cst_25 = arith.constant dense<0.000000e+00> : vector<2x8xf32>
    %55 = vector.multi_reduction <add>, %54, %cst_25 [2] : vector<2x8x8xf32> to vector<2x8xf32>
    %56 = vector.shape_cast %55 : vector<2x8xf32> to vector<2x8x1xf32>
    %57 = tpu.reciprocal %56 {approx = true} : vector<2x8x1xf32> -> vector<2x8x1xf32>
    %58 = vector.broadcast %57 : vector<2x8x1xf32> to vector<2x8x8xf32>
    %59 = arith.mulf %54, %58 : vector<2x8x8xf32>
    "tpu.trace_start"() <{level = 10 : i32, message = "bqk,bkd->bqd"}> : () -> ()
    %cst_26 = arith.constant dense<0.000000e+00> : vector<2x8x8xf32>
    %60 = tpu.matmul %59, %46, %cst_26 {dimension_numbers = #tpu.dot_dimension_numbers<[2], [1], [1], [2], [0, 0, 0, 1, 1, 2], [0], [0]>} : vector<2x8x8xf32>, vector<2x8x8xf32>, vector<2x8x8xf32> -> vector<2x8x8xf32>
    "tpu.trace_stop"() : () -> ()
    %61 = vector.shape_cast %60 : vector<2x8x8xf32> to vector<16x8xf32>
    %62 = vector.extract_strided_slice %15 {offsets = [8, 0], sizes = [8, 32], strides = [1, 1]} : vector<32x32xf32> to vector<8x32xf32>
    %cst_27 = arith.constant dense<0.000000e+00> : vector<16x32xf32>
    %63 = tpu.matmul %61, %62, %cst_27 {dimension_numbers = #tpu.dot_dimension_numbers<[1], [0], [0], [1], [0, 0, 1, 1], [], []>} : vector<16x8xf32>, vector<8x32xf32>, vector<16x32xf32> -> vector<16x32xf32>
    %64 = arith.addf %40, %63 : vector<16x32xf32>
    %65 = vector.extract_strided_slice %13 {offsets = [0, 16], sizes = [16, 8], strides = [1, 1]} : vector<16x96xf32> to vector<16x8xf32>
    %66 = vector.shape_cast %65 : vector<16x8xf32> to vector<2x8x8xf32>
    %67 = vector.extract_strided_slice %13 {offsets = [0, 48], sizes = [16, 8], strides = [1, 1]} : vector<16x96xf32> to vector<16x8xf32>
    %68 = vector.shape_cast %67 : vector<16x8xf32> to vector<2x8x8xf32>
    %69 = vector.extract_strided_slice %13 {offsets = [0, 80], sizes = [16, 8], strides = [1, 1]} : vector<16x96xf32> to vector<16x8xf32>
    %70 = vector.shape_cast %69 : vector<16x8xf32> to vector<2x8x8xf32>
    "tpu.trace_start"() <{level = 10 : i32, message = "bqd,bkd->bqk"}> : () -> ()
    %cst_28 = arith.constant dense<0.000000e+00> : vector<2x8x8xf32>
    %71 = tpu.matmul %66, %68, %cst_28 {dimension_numbers = #tpu.dot_dimension_numbers<[2], [2], [1], [1], [0, 0, 0, 1, 1, 1], [0], [0]>} : vector<2x8x8xf32>, vector<2x8x8xf32>, vector<2x8x8xf32> -> vector<2x8x8xf32>
    "tpu.trace_stop"() : () -> ()
    %cst_29 = arith.constant 0.353553385 : f32
    %72 = vector.broadcast %cst_29 : f32 to vector<2x8x8xf32>
    %73 = arith.mulf %71, %72 : vector<2x8x8xf32>
    %cst_30 = arith.constant dense<0xFF800000> : vector<2x8xf32>
    %74 = vector.multi_reduction <maximumf>, %73, %cst_30 [2] : vector<2x8x8xf32> to vector<2x8xf32>
    %75 = vector.shape_cast %74 : vector<2x8xf32> to vector<2x8x1xf32>
    %76 = vector.broadcast %75 : vector<2x8x1xf32> to vector<2x8x8xf32>
    %77 = arith.subf %73, %76 : vector<2x8x8xf32>
    %78 = math.exp %77 : vector<2x8x8xf32>
    %cst_31 = arith.constant dense<0.000000e+00> : vector<2x8xf32>
    %79 = vector.multi_reduction <add>, %78, %cst_31 [2] : vector<2x8x8xf32> to vector<2x8xf32>
    %80 = vector.shape_cast %79 : vector<2x8xf32> to vector<2x8x1xf32>
    %81 = tpu.reciprocal %80 {approx = true} : vector<2x8x1xf32> -> vector<2x8x1xf32>
    %82 = vector.broadcast %81 : vector<2x8x1xf32> to vector<2x8x8xf32>
    %83 = arith.mulf %78, %82 : vector<2x8x8xf32>
    "tpu.trace_start"() <{level = 10 : i32, message = "bqk,bkd->bqd"}> : () -> ()
    %cst_32 = arith.constant dense<0.000000e+00> : vector<2x8x8xf32>
    %84 = tpu.matmul %83, %70, %cst_32 {dimension_numbers = #tpu.dot_dimension_numbers<[2], [1], [1], [2], [0, 0, 0, 1, 1, 2], [0], [0]>} : vector<2x8x8xf32>, vector<2x8x8xf32>, vector<2x8x8xf32> -> vector<2x8x8xf32>
    "tpu.trace_stop"() : () -> ()
    %85 = vector.shape_cast %84 : vector<2x8x8xf32> to vector<16x8xf32>
    %86 = vector.extract_strided_slice %15 {offsets = [16, 0], sizes = [8, 32], strides = [1, 1]} : vector<32x32xf32> to vector<8x32xf32>
    %cst_33 = arith.constant dense<0.000000e+00> : vector<16x32xf32>
    %87 = tpu.matmul %85, %86, %cst_33 {dimension_numbers = #tpu.dot_dimension_numbers<[1], [0], [0], [1], [0, 0, 1, 1], [], []>} : vector<16x8xf32>, vector<8x32xf32>, vector<16x32xf32> -> vector<16x32xf32>
    %88 = arith.addf %64, %87 : vector<16x32xf32>
    %89 = vector.extract_strided_slice %13 {offsets = [0, 24], sizes = [16, 8], strides = [1, 1]} : vector<16x96xf32> to vector<16x8xf32>
    %90 = vector.shape_cast %89 : vector<16x8xf32> to vector<2x8x8xf32>
    %91 = vector.extract_strided_slice %13 {offsets = [0, 56], sizes = [16, 8], strides = [1, 1]} : vector<16x96xf32> to vector<16x8xf32>
    %92 = vector.shape_cast %91 : vector<16x8xf32> to vector<2x8x8xf32>
    %93 = vector.extract_strided_slice %13 {offsets = [0, 88], sizes = [16, 8], strides = [1, 1]} : vector<16x96xf32> to vector<16x8xf32>
    %94 = vector.shape_cast %93 : vector<16x8xf32> to vector<2x8x8xf32>
    "tpu.trace_start"() <{level = 10 : i32, message = "bqd,bkd->bqk"}> : () -> ()
    %cst_34 = arith.constant dense<0.000000e+00> : vector<2x8x8xf32>
    %95 = tpu.matmul %90, %92, %cst_34 {dimension_numbers = #tpu.dot_dimension_numbers<[2], [2], [1], [1], [0, 0, 0, 1, 1, 1], [0], [0]>} : vector<2x8x8xf32>, vector<2x8x8xf32>, vector<2x8x8xf32> -> vector<2x8x8xf32>
    "tpu.trace_stop"() : () -> ()
    %cst_35 = arith.constant 0.353553385 : f32
    %96 = vector.broadcast %cst_35 : f32 to vector<2x8x8xf32>
    %97 = arith.mulf %95, %96 : vector<2x8x8xf32>
    %cst_36 = arith.constant dense<0xFF800000> : vector<2x8xf32>
    %98 = vector.multi_reduction <maximumf>, %97, %cst_36 [2] : vector<2x8x8xf32> to vector<2x8xf32>
    %99 = vector.shape_cast %98 : vector<2x8xf32> to vector<2x8x1xf32>
    %100 = vector.broadcast %99 : vector<2x8x1xf32> to vector<2x8x8xf32>
    %101 = arith.subf %97, %100 : vector<2x8x8xf32>
    %102 = math.exp %101 : vector<2x8x8xf32>
    %cst_37 = arith.constant dense<0.000000e+00> : vector<2x8xf32>
    %103 = vector.multi_reduction <add>, %102, %cst_37 [2] : vector<2x8x8xf32> to vector<2x8xf32>
    %104 = vector.shape_cast %103 : vector<2x8xf32> to vector<2x8x1xf32>
    %105 = tpu.reciprocal %104 {approx = true} : vector<2x8x1xf32> -> vector<2x8x1xf32>
    %106 = vector.broadcast %105 : vector<2x8x1xf32> to vector<2x8x8xf32>
    %107 = arith.mulf %102, %106 : vector<2x8x8xf32>
    "tpu.trace_start"() <{level = 10 : i32, message = "bqk,bkd->bqd"}> : () -> ()
    %cst_38 = arith.constant dense<0.000000e+00> : vector<2x8x8xf32>
    %108 = tpu.matmul %107, %94, %cst_38 {dimension_numbers = #tpu.dot_dimension_numbers<[2], [1], [1], [2], [0, 0, 0, 1, 1, 2], [0], [0]>} : vector<2x8x8xf32>, vector<2x8x8xf32>, vector<2x8x8xf32> -> vector<2x8x8xf32>
    "tpu.trace_stop"() : () -> ()
    %109 = vector.shape_cast %108 : vector<2x8x8xf32> to vector<16x8xf32>
    %110 = vector.extract_strided_slice %15 {offsets = [24, 0], sizes = [8, 32], strides = [1, 1]} : vector<32x32xf32> to vector<8x32xf32>
    %cst_39 = arith.constant dense<0.000000e+00> : vector<16x32xf32>
    %111 = tpu.matmul %109, %110, %cst_39 {dimension_numbers = #tpu.dot_dimension_numbers<[1], [0], [0], [1], [0, 0, 1, 1], [], []>} : vector<16x8xf32>, vector<8x32xf32>, vector<16x32xf32> -> vector<16x32xf32>
    %112 = arith.addf %88, %111 : vector<16x32xf32>
    %c0_40 = arith.constant 0 : index
    %c0_41 = arith.constant 0 : index
    %c0_42 = arith.constant 0 : index
    %113 = vector.load %arg6[%c0_40, %c0_41, %c0_42] : memref<2x1x32xf32, #tpu.memory_space<vmem>>, vector<1x1x32xf32>
    %114 = vector.shape_cast %113 : vector<1x1x32xf32> to vector<1x32xf32>
    %115 = vector.broadcast %114 : vector<1x32xf32> to vector<16x32xf32>
    %116 = arith.addf %112, %115 : vector<16x32xf32>
    %117 = arith.addf %5, %116 : vector<16x32xf32>
    %c0_43 = arith.constant 0 : index
    %c0_44 = arith.constant 0 : index
    %c0_45 = arith.constant 0 : index
    %118 = vector.load %arg17[%c0_43, %c0_44, %c0_45] : memref<2x1x32xf32, #tpu.memory_space<vmem>>, vector<1x1x32xf32>
    %119 = vector.shape_cast %118 : vector<1x1x32xf32> to vector<1x32xf32>
    %c0_46 = arith.constant 0 : index
    %c0_47 = arith.constant 0 : index
    %c0_48 = arith.constant 0 : index
    %120 = vector.load %arg18[%c0_46, %c0_47, %c0_48] : memref<2x1x32xf32, #tpu.memory_space<vmem>>, vector<1x1x32xf32>
    %121 = vector.shape_cast %120 : vector<1x1x32xf32> to vector<1x32xf32>
    %cst_49 = arith.constant dense<0.000000e+00> : vector<16xf32>
    %122 = vector.multi_reduction <add>, %117, %cst_49 [1] : vector<16x32xf32> to vector<16xf32>
    %123 = vector.shape_cast %122 : vector<16xf32> to vector<16x1xf32>
    %cst_50 = arith.constant 3.200000e+01 : f32
    %124 = vector.broadcast %cst_50 : f32 to vector<16x1xf32>
    %125 = arith.divf %123, %124 : vector<16x1xf32>
    %126 = vector.broadcast %125 : vector<16x1xf32> to vector<16x32xf32>
    %127 = arith.subf %117, %126 : vector<16x32xf32>
    %128 = vector.broadcast %125 : vector<16x1xf32> to vector<16x32xf32>
    %129 = arith.subf %117, %128 : vector<16x32xf32>
    %130 = arith.mulf %127, %129 : vector<16x32xf32>
    %cst_51 = arith.constant dense<0.000000e+00> : vector<16xf32>
    %131 = vector.multi_reduction <add>, %130, %cst_51 [1] : vector<16x32xf32> to vector<16xf32>
    %132 = vector.shape_cast %131 : vector<16xf32> to vector<16x1xf32>
    %cst_52 = arith.constant 3.200000e+01 : f32
    %133 = vector.broadcast %cst_52 : f32 to vector<16x1xf32>
    %134 = arith.divf %132, %133 : vector<16x1xf32>
    %135 = vector.broadcast %125 : vector<16x1xf32> to vector<16x32xf32>
    %136 = arith.subf %117, %135 : vector<16x32xf32>
    %cst_53 = arith.constant 9.99999974E-6 : f32
    %137 = vector.broadcast %cst_53 : f32 to vector<16x1xf32>
    %138 = arith.addf %134, %137 : vector<16x1xf32>
    %139 = math.rsqrt %138 : vector<16x1xf32>
    %140 = vector.broadcast %139 : vector<16x1xf32> to vector<16x32xf32>
    %141 = arith.mulf %136, %140 : vector<16x32xf32>
    %142 = vector.broadcast %119 : vector<1x32xf32> to vector<16x32xf32>
    %143 = arith.mulf %141, %142 : vector<16x32xf32>
    %144 = vector.broadcast %121 : vector<1x32xf32> to vector<16x32xf32>
    %145 = arith.addf %143, %144 : vector<16x32xf32>
    %c0_54 = arith.constant 0 : index
    %c0_55 = arith.constant 0 : index
    %c0_56 = arith.constant 0 : index
    %146 = vector.load %arg7[%c0_54, %c0_55, %c0_56] : memref<2x32x32xf32, #tpu.memory_space<vmem>>, vector<1x32x32xf32>
    %147 = vector.shape_cast %146 : vector<1x32x32xf32> to vector<32x32xf32>
    %cst_57 = arith.constant dense<0.000000e+00> : vector<16x32xf32>
    %148 = tpu.matmul %145, %147, %cst_57 {dimension_numbers = #tpu.dot_dimension_numbers<[1], [0], [0], [1], [0, 0, 1, 1], [], []>} : vector<16x32xf32>, vector<32x32xf32>, vector<16x32xf32> -> vector<16x32xf32>
    %c0_58 = arith.constant 0 : index
    %c0_59 = arith.constant 0 : index
    %c0_60 = arith.constant 0 : index
    %149 = vector.load %arg8[%c0_58, %c0_59, %c0_60] : memref<2x1x32xf32, #tpu.memory_space<vmem>>, vector<1x1x32xf32>
    %150 = vector.shape_cast %149 : vector<1x1x32xf32> to vector<1x32xf32>
    %151 = vector.broadcast %150 : vector<1x32xf32> to vector<16x32xf32>
    %152 = arith.addf %148, %151 : vector<16x32xf32>
    %c0_61 = arith.constant 0 : index
    %c0_62 = arith.constant 0 : index
    %c0_63 = arith.constant 0 : index
    %153 = vector.load %arg9[%c0_61, %c0_62, %c0_63] : memref<2x32x64xf32, #tpu.memory_space<vmem>>, vector<1x32x64xf32>
    %154 = vector.shape_cast %153 : vector<1x32x64xf32> to vector<32x64xf32>
    %cst_64 = arith.constant dense<0.000000e+00> : vector<10x64xf32>
    %155 = tpu.matmul %6, %154, %cst_64 {dimension_numbers = #tpu.dot_dimension_numbers<[1], [0], [0], [1], [0, 0, 1, 1], [], []>} : vector<10x32xf32>, vector<32x64xf32>, vector<10x64xf32> -> vector<10x64xf32>
    %c0_65 = arith.constant 0 : index
    %c0_66 = arith.constant 0 : index
    %c0_67 = arith.constant 0 : index
    %156 = vector.load %arg10[%c0_65, %c0_66, %c0_67] : memref<2x1x64xf32, #tpu.memory_space<vmem>>, vector<1x1x64xf32>
    %157 = vector.shape_cast %156 : vector<1x1x64xf32> to vector<1x64xf32>
    %158 = vector.broadcast %157 : vector<1x64xf32> to vector<10x64xf32>
    %159 = arith.addf %155, %158 : vector<10x64xf32>
    %c0_68 = arith.constant 0 : index
    %c0_69 = arith.constant 0 : index
    %c0_70 = arith.constant 0 : index
    %160 = vector.load %arg11[%c0_68, %c0_69, %c0_70] : memref<2x32x32xf32, #tpu.memory_space<vmem>>, vector<1x32x32xf32>
    %161 = vector.shape_cast %160 : vector<1x32x32xf32> to vector<32x32xf32>
    %cst_71 = arith.constant 0.000000e+00 : f32
    %162 = vector.broadcast %cst_71 : f32 to vector<16x32xf32>
    %163 = vector.extract_strided_slice %152 {offsets = [0, 0], sizes = [16, 8], strides = [1, 1]} : vector<16x32xf32> to vector<16x8xf32>
    %164 = vector.extract_strided_slice %159 {offsets = [0, 0], sizes = [10, 8], strides = [1, 1]} : vector<10x64xf32> to vector<10x8xf32>
    %165 = vector.extract_strided_slice %159 {offsets = [0, 32], sizes = [10, 8], strides = [1, 1]} : vector<10x64xf32> to vector<10x8xf32>
    %cst_72 = arith.constant dense<0.000000e+00> : vector<16x10xf32>
    %166 = tpu.matmul %163, %164, %cst_72 {dimension_numbers = #tpu.dot_dimension_numbers<[1], [1], [0], [0], [0, 0, 1, 0], [], []>} : vector<16x8xf32>, vector<10x8xf32>, vector<16x10xf32> -> vector<16x10xf32>
    %cst_73 = arith.constant 0.353553385 : f32
    %167 = vector.broadcast %cst_73 : f32 to vector<16x10xf32>
    %168 = arith.mulf %166, %167 : vector<16x10xf32>
    %cst_74 = arith.constant dense<0xFF800000> : vector<16xf32>
    %169 = vector.multi_reduction <maximumf>, %168, %cst_74 [1] : vector<16x10xf32> to vector<16xf32>
    %170 = vector.shape_cast %169 : vector<16xf32> to vector<16x1xf32>
    %171 = vector.broadcast %170 : vector<16x1xf32> to vector<16x10xf32>
    %172 = arith.subf %168, %171 : vector<16x10xf32>
    %173 = math.exp %172 : vector<16x10xf32>
    %cst_75 = arith.constant dense<0.000000e+00> : vector<16xf32>
    %174 = vector.multi_reduction <add>, %173, %cst_75 [1] : vector<16x10xf32> to vector<16xf32>
    %175 = vector.shape_cast %174 : vector<16xf32> to vector<16x1xf32>
    %176 = tpu.reciprocal %175 {approx = true} : vector<16x1xf32> -> vector<16x1xf32>
    %177 = vector.broadcast %176 : vector<16x1xf32> to vector<16x10xf32>
    %178 = arith.mulf %173, %177 : vector<16x10xf32>
    %cst_76 = arith.constant dense<0.000000e+00> : vector<16x8xf32>
    %179 = tpu.matmul %178, %165, %cst_76 {dimension_numbers = #tpu.dot_dimension_numbers<[1], [0], [0], [1], [0, 0, 1, 1], [], []>} : vector<16x10xf32>, vector<10x8xf32>, vector<16x8xf32> -> vector<16x8xf32>
    %180 = vector.extract_strided_slice %161 {offsets = [0, 0], sizes = [8, 32], strides = [1, 1]} : vector<32x32xf32> to vector<8x32xf32>
    %cst_77 = arith.constant dense<0.000000e+00> : vector<16x32xf32>
    %181 = tpu.matmul %179, %180, %cst_77 {dimension_numbers = #tpu.dot_dimension_numbers<[1], [0], [0], [1], [0, 0, 1, 1], [], []>} : vector<16x8xf32>, vector<8x32xf32>, vector<16x32xf32> -> vector<16x32xf32>
    %182 = arith.addf %162, %181 : vector<16x32xf32>
    %183 = vector.extract_strided_slice %152 {offsets = [0, 8], sizes = [16, 8], strides = [1, 1]} : vector<16x32xf32> to vector<16x8xf32>
    %184 = vector.extract_strided_slice %159 {offsets = [0, 8], sizes = [10, 8], strides = [1, 1]} : vector<10x64xf32> to vector<10x8xf32>
    %185 = vector.extract_strided_slice %159 {offsets = [0, 40], sizes = [10, 8], strides = [1, 1]} : vector<10x64xf32> to vector<10x8xf32>
    %cst_78 = arith.constant dense<0.000000e+00> : vector<16x10xf32>
    %186 = tpu.matmul %183, %184, %cst_78 {dimension_numbers = #tpu.dot_dimension_numbers<[1], [1], [0], [0], [0, 0, 1, 0], [], []>} : vector<16x8xf32>, vector<10x8xf32>, vector<16x10xf32> -> vector<16x10xf32>
    %cst_79 = arith.constant 0.353553385 : f32
    %187 = vector.broadcast %cst_79 : f32 to vector<16x10xf32>
    %188 = arith.mulf %186, %187 : vector<16x10xf32>
    %cst_80 = arith.constant dense<0xFF800000> : vector<16xf32>
    %189 = vector.multi_reduction <maximumf>, %188, %cst_80 [1] : vector<16x10xf32> to vector<16xf32>
    %190 = vector.shape_cast %189 : vector<16xf32> to vector<16x1xf32>
    %191 = vector.broadcast %190 : vector<16x1xf32> to vector<16x10xf32>
    %192 = arith.subf %188, %191 : vector<16x10xf32>
    %193 = math.exp %192 : vector<16x10xf32>
    %cst_81 = arith.constant dense<0.000000e+00> : vector<16xf32>
    %194 = vector.multi_reduction <add>, %193, %cst_81 [1] : vector<16x10xf32> to vector<16xf32>
    %195 = vector.shape_cast %194 : vector<16xf32> to vector<16x1xf32>
    %196 = tpu.reciprocal %195 {approx = true} : vector<16x1xf32> -> vector<16x1xf32>
    %197 = vector.broadcast %196 : vector<16x1xf32> to vector<16x10xf32>
    %198 = arith.mulf %193, %197 : vector<16x10xf32>
    %cst_82 = arith.constant dense<0.000000e+00> : vector<16x8xf32>
    %199 = tpu.matmul %198, %185, %cst_82 {dimension_numbers = #tpu.dot_dimension_numbers<[1], [0], [0], [1], [0, 0, 1, 1], [], []>} : vector<16x10xf32>, vector<10x8xf32>, vector<16x8xf32> -> vector<16x8xf32>
    %200 = vector.extract_strided_slice %161 {offsets = [8, 0], sizes = [8, 32], strides = [1, 1]} : vector<32x32xf32> to vector<8x32xf32>
    %cst_83 = arith.constant dense<0.000000e+00> : vector<16x32xf32>
    %201 = tpu.matmul %199, %200, %cst_83 {dimension_numbers = #tpu.dot_dimension_numbers<[1], [0], [0], [1], [0, 0, 1, 1], [], []>} : vector<16x8xf32>, vector<8x32xf32>, vector<16x32xf32> -> vector<16x32xf32>
    %202 = arith.addf %182, %201 : vector<16x32xf32>
    %203 = vector.extract_strided_slice %152 {offsets = [0, 16], sizes = [16, 8], strides = [1, 1]} : vector<16x32xf32> to vector<16x8xf32>
    %204 = vector.extract_strided_slice %159 {offsets = [0, 16], sizes = [10, 8], strides = [1, 1]} : vector<10x64xf32> to vector<10x8xf32>
    %205 = vector.extract_strided_slice %159 {offsets = [0, 48], sizes = [10, 8], strides = [1, 1]} : vector<10x64xf32> to vector<10x8xf32>
    %cst_84 = arith.constant dense<0.000000e+00> : vector<16x10xf32>
    %206 = tpu.matmul %203, %204, %cst_84 {dimension_numbers = #tpu.dot_dimension_numbers<[1], [1], [0], [0], [0, 0, 1, 0], [], []>} : vector<16x8xf32>, vector<10x8xf32>, vector<16x10xf32> -> vector<16x10xf32>
    %cst_85 = arith.constant 0.353553385 : f32
    %207 = vector.broadcast %cst_85 : f32 to vector<16x10xf32>
    %208 = arith.mulf %206, %207 : vector<16x10xf32>
    %cst_86 = arith.constant dense<0xFF800000> : vector<16xf32>
    %209 = vector.multi_reduction <maximumf>, %208, %cst_86 [1] : vector<16x10xf32> to vector<16xf32>
    %210 = vector.shape_cast %209 : vector<16xf32> to vector<16x1xf32>
    %211 = vector.broadcast %210 : vector<16x1xf32> to vector<16x10xf32>
    %212 = arith.subf %208, %211 : vector<16x10xf32>
    %213 = math.exp %212 : vector<16x10xf32>
    %cst_87 = arith.constant dense<0.000000e+00> : vector<16xf32>
    %214 = vector.multi_reduction <add>, %213, %cst_87 [1] : vector<16x10xf32> to vector<16xf32>
    %215 = vector.shape_cast %214 : vector<16xf32> to vector<16x1xf32>
    %216 = tpu.reciprocal %215 {approx = true} : vector<16x1xf32> -> vector<16x1xf32>
    %217 = vector.broadcast %216 : vector<16x1xf32> to vector<16x10xf32>
    %218 = arith.mulf %213, %217 : vector<16x10xf32>
    %cst_88 = arith.constant dense<0.000000e+00> : vector<16x8xf32>
    %219 = tpu.matmul %218, %205, %cst_88 {dimension_numbers = #tpu.dot_dimension_numbers<[1], [0], [0], [1], [0, 0, 1, 1], [], []>} : vector<16x10xf32>, vector<10x8xf32>, vector<16x8xf32> -> vector<16x8xf32>
    %220 = vector.extract_strided_slice %161 {offsets = [16, 0], sizes = [8, 32], strides = [1, 1]} : vector<32x32xf32> to vector<8x32xf32>
    %cst_89 = arith.constant dense<0.000000e+00> : vector<16x32xf32>
    %221 = tpu.matmul %219, %220, %cst_89 {dimension_numbers = #tpu.dot_dimension_numbers<[1], [0], [0], [1], [0, 0, 1, 1], [], []>} : vector<16x8xf32>, vector<8x32xf32>, vector<16x32xf32> -> vector<16x32xf32>
    %222 = arith.addf %202, %221 : vector<16x32xf32>
    %223 = vector.extract_strided_slice %152 {offsets = [0, 24], sizes = [16, 8], strides = [1, 1]} : vector<16x32xf32> to vector<16x8xf32>
    %224 = vector.extract_strided_slice %159 {offsets = [0, 24], sizes = [10, 8], strides = [1, 1]} : vector<10x64xf32> to vector<10x8xf32>
    %225 = vector.extract_strided_slice %159 {offsets = [0, 56], sizes = [10, 8], strides = [1, 1]} : vector<10x64xf32> to vector<10x8xf32>
    %cst_90 = arith.constant dense<0.000000e+00> : vector<16x10xf32>
    %226 = tpu.matmul %223, %224, %cst_90 {dimension_numbers = #tpu.dot_dimension_numbers<[1], [1], [0], [0], [0, 0, 1, 0], [], []>} : vector<16x8xf32>, vector<10x8xf32>, vector<16x10xf32> -> vector<16x10xf32>
    %cst_91 = arith.constant 0.353553385 : f32
    %227 = vector.broadcast %cst_91 : f32 to vector<16x10xf32>
    %228 = arith.mulf %226, %227 : vector<16x10xf32>
    %cst_92 = arith.constant dense<0xFF800000> : vector<16xf32>
    %229 = vector.multi_reduction <maximumf>, %228, %cst_92 [1] : vector<16x10xf32> to vector<16xf32>
    %230 = vector.shape_cast %229 : vector<16xf32> to vector<16x1xf32>
    %231 = vector.broadcast %230 : vector<16x1xf32> to vector<16x10xf32>
    %232 = arith.subf %228, %231 : vector<16x10xf32>
    %233 = math.exp %232 : vector<16x10xf32>
    %cst_93 = arith.constant dense<0.000000e+00> : vector<16xf32>
    %234 = vector.multi_reduction <add>, %233, %cst_93 [1] : vector<16x10xf32> to vector<16xf32>
    %235 = vector.shape_cast %234 : vector<16xf32> to vector<16x1xf32>
    %236 = tpu.reciprocal %235 {approx = true} : vector<16x1xf32> -> vector<16x1xf32>
    %237 = vector.broadcast %236 : vector<16x1xf32> to vector<16x10xf32>
    %238 = arith.mulf %233, %237 : vector<16x10xf32>
    %cst_94 = arith.constant dense<0.000000e+00> : vector<16x8xf32>
    %239 = tpu.matmul %238, %225, %cst_94 {dimension_numbers = #tpu.dot_dimension_numbers<[1], [0], [0], [1], [0, 0, 1, 1], [], []>} : vector<16x10xf32>, vector<10x8xf32>, vector<16x8xf32> -> vector<16x8xf32>
    %240 = vector.extract_strided_slice %161 {offsets = [24, 0], sizes = [8, 32], strides = [1, 1]} : vector<32x32xf32> to vector<8x32xf32>
    %cst_95 = arith.constant dense<0.000000e+00> : vector<16x32xf32>
    %241 = tpu.matmul %239, %240, %cst_95 {dimension_numbers = #tpu.dot_dimension_numbers<[1], [0], [0], [1], [0, 0, 1, 1], [], []>} : vector<16x8xf32>, vector<8x32xf32>, vector<16x32xf32> -> vector<16x32xf32>
    %242 = arith.addf %222, %241 : vector<16x32xf32>
    %c0_96 = arith.constant 0 : index
    %c0_97 = arith.constant 0 : index
    %c0_98 = arith.constant 0 : index
    %243 = vector.load %arg12[%c0_96, %c0_97, %c0_98] : memref<2x1x32xf32, #tpu.memory_space<vmem>>, vector<1x1x32xf32>
    %244 = vector.shape_cast %243 : vector<1x1x32xf32> to vector<1x32xf32>
    %245 = vector.broadcast %244 : vector<1x32xf32> to vector<16x32xf32>
    %246 = arith.addf %242, %245 : vector<16x32xf32>
    %247 = arith.addf %145, %246 : vector<16x32xf32>
    %c0_99 = arith.constant 0 : index
    %c0_100 = arith.constant 0 : index
    %c0_101 = arith.constant 0 : index
    %248 = vector.load %arg19[%c0_99, %c0_100, %c0_101] : memref<2x1x32xf32, #tpu.memory_space<vmem>>, vector<1x1x32xf32>
    %249 = vector.shape_cast %248 : vector<1x1x32xf32> to vector<1x32xf32>
    %c0_102 = arith.constant 0 : index
    %c0_103 = arith.constant 0 : index
    %c0_104 = arith.constant 0 : index
    %250 = vector.load %arg20[%c0_102, %c0_103, %c0_104] : memref<2x1x32xf32, #tpu.memory_space<vmem>>, vector<1x1x32xf32>
    %251 = vector.shape_cast %250 : vector<1x1x32xf32> to vector<1x32xf32>
    %cst_105 = arith.constant dense<0.000000e+00> : vector<16xf32>
    %252 = vector.multi_reduction <add>, %247, %cst_105 [1] : vector<16x32xf32> to vector<16xf32>
    %253 = vector.shape_cast %252 : vector<16xf32> to vector<16x1xf32>
    %cst_106 = arith.constant 3.200000e+01 : f32
    %254 = vector.broadcast %cst_106 : f32 to vector<16x1xf32>
    %255 = arith.divf %253, %254 : vector<16x1xf32>
    %256 = vector.broadcast %255 : vector<16x1xf32> to vector<16x32xf32>
    %257 = arith.subf %247, %256 : vector<16x32xf32>
    %258 = vector.broadcast %255 : vector<16x1xf32> to vector<16x32xf32>
    %259 = arith.subf %247, %258 : vector<16x32xf32>
    %260 = arith.mulf %257, %259 : vector<16x32xf32>
    %cst_107 = arith.constant dense<0.000000e+00> : vector<16xf32>
    %261 = vector.multi_reduction <add>, %260, %cst_107 [1] : vector<16x32xf32> to vector<16xf32>
    %262 = vector.shape_cast %261 : vector<16xf32> to vector<16x1xf32>
    %cst_108 = arith.constant 3.200000e+01 : f32
    %263 = vector.broadcast %cst_108 : f32 to vector<16x1xf32>
    %264 = arith.divf %262, %263 : vector<16x1xf32>
    %265 = vector.broadcast %255 : vector<16x1xf32> to vector<16x32xf32>
    %266 = arith.subf %247, %265 : vector<16x32xf32>
    %cst_109 = arith.constant 9.99999974E-6 : f32
    %267 = vector.broadcast %cst_109 : f32 to vector<16x1xf32>
    %268 = arith.addf %264, %267 : vector<16x1xf32>
    %269 = math.rsqrt %268 : vector<16x1xf32>
    %270 = vector.broadcast %269 : vector<16x1xf32> to vector<16x32xf32>
    %271 = arith.mulf %266, %270 : vector<16x32xf32>
    %272 = vector.broadcast %249 : vector<1x32xf32> to vector<16x32xf32>
    %273 = arith.mulf %271, %272 : vector<16x32xf32>
    %274 = vector.broadcast %251 : vector<1x32xf32> to vector<16x32xf32>
    %275 = arith.addf %273, %274 : vector<16x32xf32>
    %c0_110 = arith.constant 0 : index
    %c0_111 = arith.constant 0 : index
    %c0_112 = arith.constant 0 : index
    %276 = vector.load %arg13[%c0_110, %c0_111, %c0_112] : memref<2x32x64xf32, #tpu.memory_space<vmem>>, vector<1x32x64xf32>
    %277 = vector.shape_cast %276 : vector<1x32x64xf32> to vector<32x64xf32>
    %cst_113 = arith.constant dense<0.000000e+00> : vector<16x64xf32>
    %278 = tpu.matmul %275, %277, %cst_113 {dimension_numbers = #tpu.dot_dimension_numbers<[1], [0], [0], [1], [0, 0, 1, 1], [], []>} : vector<16x32xf32>, vector<32x64xf32>, vector<16x64xf32> -> vector<16x64xf32>
    %c0_114 = arith.constant 0 : index
    %c0_115 = arith.constant 0 : index
    %c0_116 = arith.constant 0 : index
    %279 = vector.load %arg14[%c0_114, %c0_115, %c0_116] : memref<2x1x64xf32, #tpu.memory_space<vmem>>, vector<1x1x64xf32>
    %280 = vector.shape_cast %279 : vector<1x1x64xf32> to vector<1x64xf32>
    %281 = vector.broadcast %280 : vector<1x64xf32> to vector<16x64xf32>
    %282 = arith.addf %278, %281 : vector<16x64xf32>
    %cst_117 = arith.constant 0.000000e+00 : f32
    %283 = vector.broadcast %cst_117 : f32 to vector<16x64xf32>
    %284 = arith.maximumf %282, %283 : vector<16x64xf32>
    %c0_118 = arith.constant 0 : index
    %c0_119 = arith.constant 0 : index
    %c0_120 = arith.constant 0 : index
    %285 = vector.load %arg15[%c0_118, %c0_119, %c0_120] : memref<2x64x32xf32, #tpu.memory_space<vmem>>, vector<1x64x32xf32>
    %286 = vector.shape_cast %285 : vector<1x64x32xf32> to vector<64x32xf32>
    %cst_121 = arith.constant dense<0.000000e+00> : vector<16x32xf32>
    %287 = tpu.matmul %284, %286, %cst_121 {dimension_numbers = #tpu.dot_dimension_numbers<[1], [0], [0], [1], [0, 0, 1, 1], [], []>} : vector<16x64xf32>, vector<64x32xf32>, vector<16x32xf32> -> vector<16x32xf32>
    %c0_122 = arith.constant 0 : index
    %c0_123 = arith.constant 0 : index
    %c0_124 = arith.constant 0 : index
    %288 = vector.load %arg16[%c0_122, %c0_123, %c0_124] : memref<2x1x32xf32, #tpu.memory_space<vmem>>, vector<1x1x32xf32>
    %289 = vector.shape_cast %288 : vector<1x1x32xf32> to vector<1x32xf32>
    %290 = vector.broadcast %289 : vector<1x32xf32> to vector<16x32xf32>
    %291 = arith.addf %287, %290 : vector<16x32xf32>
    %292 = arith.addf %275, %291 : vector<16x32xf32>
    %c0_125 = arith.constant 0 : index
    %c0_126 = arith.constant 0 : index
    %c0_127 = arith.constant 0 : index
    %293 = vector.load %arg21[%c0_125, %c0_126, %c0_127] : memref<2x1x32xf32, #tpu.memory_space<vmem>>, vector<1x1x32xf32>
    %294 = vector.shape_cast %293 : vector<1x1x32xf32> to vector<1x32xf32>
    %c0_128 = arith.constant 0 : index
    %c0_129 = arith.constant 0 : index
    %c0_130 = arith.constant 0 : index
    %295 = vector.load %arg22[%c0_128, %c0_129, %c0_130] : memref<2x1x32xf32, #tpu.memory_space<vmem>>, vector<1x1x32xf32>
    %296 = vector.shape_cast %295 : vector<1x1x32xf32> to vector<1x32xf32>
    %cst_131 = arith.constant dense<0.000000e+00> : vector<16xf32>
    %297 = vector.multi_reduction <add>, %292, %cst_131 [1] : vector<16x32xf32> to vector<16xf32>
    %298 = vector.shape_cast %297 : vector<16xf32> to vector<16x1xf32>
    %cst_132 = arith.constant 3.200000e+01 : f32
    %299 = vector.broadcast %cst_132 : f32 to vector<16x1xf32>
    %300 = arith.divf %298, %299 : vector<16x1xf32>
    %301 = vector.broadcast %300 : vector<16x1xf32> to vector<16x32xf32>
    %302 = arith.subf %292, %301 : vector<16x32xf32>
    %303 = vector.broadcast %300 : vector<16x1xf32> to vector<16x32xf32>
    %304 = arith.subf %292, %303 : vector<16x32xf32>
    %305 = arith.mulf %302, %304 : vector<16x32xf32>
    %cst_133 = arith.constant dense<0.000000e+00> : vector<16xf32>
    %306 = vector.multi_reduction <add>, %305, %cst_133 [1] : vector<16x32xf32> to vector<16xf32>
    %307 = vector.shape_cast %306 : vector<16xf32> to vector<16x1xf32>
    %cst_134 = arith.constant 3.200000e+01 : f32
    %308 = vector.broadcast %cst_134 : f32 to vector<16x1xf32>
    %309 = arith.divf %307, %308 : vector<16x1xf32>
    %310 = vector.broadcast %300 : vector<16x1xf32> to vector<16x32xf32>
    %311 = arith.subf %292, %310 : vector<16x32xf32>
    %cst_135 = arith.constant 9.99999974E-6 : f32
    %312 = vector.broadcast %cst_135 : f32 to vector<16x1xf32>
    %313 = arith.addf %309, %312 : vector<16x1xf32>
    %314 = math.rsqrt %313 : vector<16x1xf32>
    %315 = vector.broadcast %314 : vector<16x1xf32> to vector<16x32xf32>
    %316 = arith.mulf %311, %315 : vector<16x32xf32>
    %317 = vector.broadcast %294 : vector<1x32xf32> to vector<16x32xf32>
    %318 = arith.mulf %316, %317 : vector<16x32xf32>
    %319 = vector.broadcast %296 : vector<1x32xf32> to vector<16x32xf32>
    %320 = arith.addf %318, %319 : vector<16x32xf32>
    %c1 = arith.constant 1 : index
    %c0_136 = arith.constant 0 : index
    %c0_137 = arith.constant 0 : index
    %321 = vector.load %arg3[%c1, %c0_136, %c0_137] : memref<2x32x96xf32, #tpu.memory_space<vmem>>, vector<1x32x96xf32>
    %322 = vector.shape_cast %321 : vector<1x32x96xf32> to vector<32x96xf32>
    %cst_138 = arith.constant dense<0.000000e+00> : vector<16x96xf32>
    %323 = tpu.matmul %320, %322, %cst_138 {dimension_numbers = #tpu.dot_dimension_numbers<[1], [0], [0], [1], [0, 0, 1, 1], [], []>} : vector<16x32xf32>, vector<32x96xf32>, vector<16x96xf32> -> vector<16x96xf32>
    %c1_139 = arith.constant 1 : index
    %c0_140 = arith.constant 0 : index
    %c0_141 = arith.constant 0 : index
    %324 = vector.load %arg4[%c1_139, %c0_140, %c0_141] : memref<2x1x96xf32, #tpu.memory_space<vmem>>, vector<1x1x96xf32>
    %325 = vector.shape_cast %324 : vector<1x1x96xf32> to vector<1x96xf32>
    %326 = vector.broadcast %325 : vector<1x96xf32> to vector<16x96xf32>
    %327 = arith.addf %323, %326 : vector<16x96xf32>
    %c1_142 = arith.constant 1 : index
    %c0_143 = arith.constant 0 : index
    %c0_144 = arith.constant 0 : index
    %328 = vector.load %arg5[%c1_142, %c0_143, %c0_144] : memref<2x32x32xf32, #tpu.memory_space<vmem>>, vector<1x32x32xf32>
    %329 = vector.shape_cast %328 : vector<1x32x32xf32> to vector<32x32xf32>
    %cst_145 = arith.constant 0.000000e+00 : f32
    %330 = vector.broadcast %cst_145 : f32 to vector<16x32xf32>
    %331 = vector.extract_strided_slice %327 {offsets = [0, 0], sizes = [16, 8], strides = [1, 1]} : vector<16x96xf32> to vector<16x8xf32>
    %332 = vector.shape_cast %331 : vector<16x8xf32> to vector<2x8x8xf32>
    %333 = vector.extract_strided_slice %327 {offsets = [0, 32], sizes = [16, 8], strides = [1, 1]} : vector<16x96xf32> to vector<16x8xf32>
    %334 = vector.shape_cast %333 : vector<16x8xf32> to vector<2x8x8xf32>
    %335 = vector.extract_strided_slice %327 {offsets = [0, 64], sizes = [16, 8], strides = [1, 1]} : vector<16x96xf32> to vector<16x8xf32>
    %336 = vector.shape_cast %335 : vector<16x8xf32> to vector<2x8x8xf32>
    "tpu.trace_start"() <{level = 10 : i32, message = "bqd,bkd->bqk"}> : () -> ()
    %cst_146 = arith.constant dense<0.000000e+00> : vector<2x8x8xf32>
    %337 = tpu.matmul %332, %334, %cst_146 {dimension_numbers = #tpu.dot_dimension_numbers<[2], [2], [1], [1], [0, 0, 0, 1, 1, 1], [0], [0]>} : vector<2x8x8xf32>, vector<2x8x8xf32>, vector<2x8x8xf32> -> vector<2x8x8xf32>
    "tpu.trace_stop"() : () -> ()
    %cst_147 = arith.constant 0.353553385 : f32
    %338 = vector.broadcast %cst_147 : f32 to vector<2x8x8xf32>
    %339 = arith.mulf %337, %338 : vector<2x8x8xf32>
    %cst_148 = arith.constant dense<0xFF800000> : vector<2x8xf32>
    %340 = vector.multi_reduction <maximumf>, %339, %cst_148 [2] : vector<2x8x8xf32> to vector<2x8xf32>
    %341 = vector.shape_cast %340 : vector<2x8xf32> to vector<2x8x1xf32>
    %342 = vector.broadcast %341 : vector<2x8x1xf32> to vector<2x8x8xf32>
    %343 = arith.subf %339, %342 : vector<2x8x8xf32>
    %344 = math.exp %343 : vector<2x8x8xf32>
    %cst_149 = arith.constant dense<0.000000e+00> : vector<2x8xf32>
    %345 = vector.multi_reduction <add>, %344, %cst_149 [2] : vector<2x8x8xf32> to vector<2x8xf32>
    %346 = vector.shape_cast %345 : vector<2x8xf32> to vector<2x8x1xf32>
    %347 = tpu.reciprocal %346 {approx = true} : vector<2x8x1xf32> -> vector<2x8x1xf32>
    %348 = vector.broadcast %347 : vector<2x8x1xf32> to vector<2x8x8xf32>
    %349 = arith.mulf %344, %348 : vector<2x8x8xf32>
    "tpu.trace_start"() <{level = 10 : i32, message = "bqk,bkd->bqd"}> : () -> ()
    %cst_150 = arith.constant dense<0.000000e+00> : vector<2x8x8xf32>
    %350 = tpu.matmul %349, %336, %cst_150 {dimension_numbers = #tpu.dot_dimension_numbers<[2], [1], [1], [2], [0, 0, 0, 1, 1, 2], [0], [0]>} : vector<2x8x8xf32>, vector<2x8x8xf32>, vector<2x8x8xf32> -> vector<2x8x8xf32>
    "tpu.trace_stop"() : () -> ()
    %351 = vector.shape_cast %350 : vector<2x8x8xf32> to vector<16x8xf32>
    %352 = vector.extract_strided_slice %329 {offsets = [0, 0], sizes = [8, 32], strides = [1, 1]} : vector<32x32xf32> to vector<8x32xf32>
    %cst_151 = arith.constant dense<0.000000e+00> : vector<16x32xf32>
    %353 = tpu.matmul %351, %352, %cst_151 {dimension_numbers = #tpu.dot_dimension_numbers<[1], [0], [0], [1], [0, 0, 1, 1], [], []>} : vector<16x8xf32>, vector<8x32xf32>, vector<16x32xf32> -> vector<16x32xf32>
    %354 = arith.addf %330, %353 : vector<16x32xf32>
    %355 = vector.extract_strided_slice %327 {offsets = [0, 8], sizes = [16, 8], strides = [1, 1]} : vector<16x96xf32> to vector<16x8xf32>
    %356 = vector.shape_cast %355 : vector<16x8xf32> to vector<2x8x8xf32>
    %357 = vector.extract_strided_slice %327 {offsets = [0, 40], sizes = [16, 8], strides = [1, 1]} : vector<16x96xf32> to vector<16x8xf32>
    %358 = vector.shape_cast %357 : vector<16x8xf32> to vector<2x8x8xf32>
    %359 = vector.extract_strided_slice %327 {offsets = [0, 72], sizes = [16, 8], strides = [1, 1]} : vector<16x96xf32> to vector<16x8xf32>
    %360 = vector.shape_cast %359 : vector<16x8xf32> to vector<2x8x8xf32>
    "tpu.trace_start"() <{level = 10 : i32, message = "bqd,bkd->bqk"}> : () -> ()
    %cst_152 = arith.constant dense<0.000000e+00> : vector<2x8x8xf32>
    %361 = tpu.matmul %356, %358, %cst_152 {dimension_numbers = #tpu.dot_dimension_numbers<[2], [2], [1], [1], [0, 0, 0, 1, 1, 1], [0], [0]>} : vector<2x8x8xf32>, vector<2x8x8xf32>, vector<2x8x8xf32> -> vector<2x8x8xf32>
    "tpu.trace_stop"() : () -> ()
    %cst_153 = arith.constant 0.353553385 : f32
    %362 = vector.broadcast %cst_153 : f32 to vector<2x8x8xf32>
    %363 = arith.mulf %361, %362 : vector<2x8x8xf32>
    %cst_154 = arith.constant dense<0xFF800000> : vector<2x8xf32>
    %364 = vector.multi_reduction <maximumf>, %363, %cst_154 [2] : vector<2x8x8xf32> to vector<2x8xf32>
    %365 = vector.shape_cast %364 : vector<2x8xf32> to vector<2x8x1xf32>
    %366 = vector.broadcast %365 : vector<2x8x1xf32> to vector<2x8x8xf32>
    %367 = arith.subf %363, %366 : vector<2x8x8xf32>
    %368 = math.exp %367 : vector<2x8x8xf32>
    %cst_155 = arith.constant dense<0.000000e+00> : vector<2x8xf32>
    %369 = vector.multi_reduction <add>, %368, %cst_155 [2] : vector<2x8x8xf32> to vector<2x8xf32>
    %370 = vector.shape_cast %369 : vector<2x8xf32> to vector<2x8x1xf32>
    %371 = tpu.reciprocal %370 {approx = true} : vector<2x8x1xf32> -> vector<2x8x1xf32>
    %372 = vector.broadcast %371 : vector<2x8x1xf32> to vector<2x8x8xf32>
    %373 = arith.mulf %368, %372 : vector<2x8x8xf32>
    "tpu.trace_start"() <{level = 10 : i32, message = "bqk,bkd->bqd"}> : () -> ()
    %cst_156 = arith.constant dense<0.000000e+00> : vector<2x8x8xf32>
    %374 = tpu.matmul %373, %360, %cst_156 {dimension_numbers = #tpu.dot_dimension_numbers<[2], [1], [1], [2], [0, 0, 0, 1, 1, 2], [0], [0]>} : vector<2x8x8xf32>, vector<2x8x8xf32>, vector<2x8x8xf32> -> vector<2x8x8xf32>
    "tpu.trace_stop"() : () -> ()
    %375 = vector.shape_cast %374 : vector<2x8x8xf32> to vector<16x8xf32>
    %376 = vector.extract_strided_slice %329 {offsets = [8, 0], sizes = [8, 32], strides = [1, 1]} : vector<32x32xf32> to vector<8x32xf32>
    %cst_157 = arith.constant dense<0.000000e+00> : vector<16x32xf32>
    %377 = tpu.matmul %375, %376, %cst_157 {dimension_numbers = #tpu.dot_dimension_numbers<[1], [0], [0], [1], [0, 0, 1, 1], [], []>} : vector<16x8xf32>, vector<8x32xf32>, vector<16x32xf32> -> vector<16x32xf32>
    %378 = arith.addf %354, %377 : vector<16x32xf32>
    %379 = vector.extract_strided_slice %327 {offsets = [0, 16], sizes = [16, 8], strides = [1, 1]} : vector<16x96xf32> to vector<16x8xf32>
    %380 = vector.shape_cast %379 : vector<16x8xf32> to vector<2x8x8xf32>
    %381 = vector.extract_strided_slice %327 {offsets = [0, 48], sizes = [16, 8], strides = [1, 1]} : vector<16x96xf32> to vector<16x8xf32>
    %382 = vector.shape_cast %381 : vector<16x8xf32> to vector<2x8x8xf32>
    %383 = vector.extract_strided_slice %327 {offsets = [0, 80], sizes = [16, 8], strides = [1, 1]} : vector<16x96xf32> to vector<16x8xf32>
    %384 = vector.shape_cast %383 : vector<16x8xf32> to vector<2x8x8xf32>
    "tpu.trace_start"() <{level = 10 : i32, message = "bqd,bkd->bqk"}> : () -> ()
    %cst_158 = arith.constant dense<0.000000e+00> : vector<2x8x8xf32>
    %385 = tpu.matmul %380, %382, %cst_158 {dimension_numbers = #tpu.dot_dimension_numbers<[2], [2], [1], [1], [0, 0, 0, 1, 1, 1], [0], [0]>} : vector<2x8x8xf32>, vector<2x8x8xf32>, vector<2x8x8xf32> -> vector<2x8x8xf32>
    "tpu.trace_stop"() : () -> ()
    %cst_159 = arith.constant 0.353553385 : f32
    %386 = vector.broadcast %cst_159 : f32 to vector<2x8x8xf32>
    %387 = arith.mulf %385, %386 : vector<2x8x8xf32>
    %cst_160 = arith.constant dense<0xFF800000> : vector<2x8xf32>
    %388 = vector.multi_reduction <maximumf>, %387, %cst_160 [2] : vector<2x8x8xf32> to vector<2x8xf32>
    %389 = vector.shape_cast %388 : vector<2x8xf32> to vector<2x8x1xf32>
    %390 = vector.broadcast %389 : vector<2x8x1xf32> to vector<2x8x8xf32>
    %391 = arith.subf %387, %390 : vector<2x8x8xf32>
    %392 = math.exp %391 : vector<2x8x8xf32>
    %cst_161 = arith.constant dense<0.000000e+00> : vector<2x8xf32>
    %393 = vector.multi_reduction <add>, %392, %cst_161 [2] : vector<2x8x8xf32> to vector<2x8xf32>
    %394 = vector.shape_cast %393 : vector<2x8xf32> to vector<2x8x1xf32>
    %395 = tpu.reciprocal %394 {approx = true} : vector<2x8x1xf32> -> vector<2x8x1xf32>
    %396 = vector.broadcast %395 : vector<2x8x1xf32> to vector<2x8x8xf32>
    %397 = arith.mulf %392, %396 : vector<2x8x8xf32>
    "tpu.trace_start"() <{level = 10 : i32, message = "bqk,bkd->bqd"}> : () -> ()
    %cst_162 = arith.constant dense<0.000000e+00> : vector<2x8x8xf32>
    %398 = tpu.matmul %397, %384, %cst_162 {dimension_numbers = #tpu.dot_dimension_numbers<[2], [1], [1], [2], [0, 0, 0, 1, 1, 2], [0], [0]>} : vector<2x8x8xf32>, vector<2x8x8xf32>, vector<2x8x8xf32> -> vector<2x8x8xf32>
    "tpu.trace_stop"() : () -> ()
    %399 = vector.shape_cast %398 : vector<2x8x8xf32> to vector<16x8xf32>
    %400 = vector.extract_strided_slice %329 {offsets = [16, 0], sizes = [8, 32], strides = [1, 1]} : vector<32x32xf32> to vector<8x32xf32>
    %cst_163 = arith.constant dense<0.000000e+00> : vector<16x32xf32>
    %401 = tpu.matmul %399, %400, %cst_163 {dimension_numbers = #tpu.dot_dimension_numbers<[1], [0], [0], [1], [0, 0, 1, 1], [], []>} : vector<16x8xf32>, vector<8x32xf32>, vector<16x32xf32> -> vector<16x32xf32>
    %402 = arith.addf %378, %401 : vector<16x32xf32>
    %403 = vector.extract_strided_slice %327 {offsets = [0, 24], sizes = [16, 8], strides = [1, 1]} : vector<16x96xf32> to vector<16x8xf32>
    %404 = vector.shape_cast %403 : vector<16x8xf32> to vector<2x8x8xf32>
    %405 = vector.extract_strided_slice %327 {offsets = [0, 56], sizes = [16, 8], strides = [1, 1]} : vector<16x96xf32> to vector<16x8xf32>
    %406 = vector.shape_cast %405 : vector<16x8xf32> to vector<2x8x8xf32>
    %407 = vector.extract_strided_slice %327 {offsets = [0, 88], sizes = [16, 8], strides = [1, 1]} : vector<16x96xf32> to vector<16x8xf32>
    %408 = vector.shape_cast %407 : vector<16x8xf32> to vector<2x8x8xf32>
    "tpu.trace_start"() <{level = 10 : i32, message = "bqd,bkd->bqk"}> : () -> ()
    %cst_164 = arith.constant dense<0.000000e+00> : vector<2x8x8xf32>
    %409 = tpu.matmul %404, %406, %cst_164 {dimension_numbers = #tpu.dot_dimension_numbers<[2], [2], [1], [1], [0, 0, 0, 1, 1, 1], [0], [0]>} : vector<2x8x8xf32>, vector<2x8x8xf32>, vector<2x8x8xf32> -> vector<2x8x8xf32>
    "tpu.trace_stop"() : () -> ()
    %cst_165 = arith.constant 0.353553385 : f32
    %410 = vector.broadcast %cst_165 : f32 to vector<2x8x8xf32>
    %411 = arith.mulf %409, %410 : vector<2x8x8xf32>
    %cst_166 = arith.constant dense<0xFF800000> : vector<2x8xf32>
    %412 = vector.multi_reduction <maximumf>, %411, %cst_166 [2] : vector<2x8x8xf32> to vector<2x8xf32>
    %413 = vector.shape_cast %412 : vector<2x8xf32> to vector<2x8x1xf32>
    %414 = vector.broadcast %413 : vector<2x8x1xf32> to vector<2x8x8xf32>
    %415 = arith.subf %411, %414 : vector<2x8x8xf32>
    %416 = math.exp %415 : vector<2x8x8xf32>
    %cst_167 = arith.constant dense<0.000000e+00> : vector<2x8xf32>
    %417 = vector.multi_reduction <add>, %416, %cst_167 [2] : vector<2x8x8xf32> to vector<2x8xf32>
    %418 = vector.shape_cast %417 : vector<2x8xf32> to vector<2x8x1xf32>
    %419 = tpu.reciprocal %418 {approx = true} : vector<2x8x1xf32> -> vector<2x8x1xf32>
    %420 = vector.broadcast %419 : vector<2x8x1xf32> to vector<2x8x8xf32>
    %421 = arith.mulf %416, %420 : vector<2x8x8xf32>
    "tpu.trace_start"() <{level = 10 : i32, message = "bqk,bkd->bqd"}> : () -> ()
    %cst_168 = arith.constant dense<0.000000e+00> : vector<2x8x8xf32>
    %422 = tpu.matmul %421, %408, %cst_168 {dimension_numbers = #tpu.dot_dimension_numbers<[2], [1], [1], [2], [0, 0, 0, 1, 1, 2], [0], [0]>} : vector<2x8x8xf32>, vector<2x8x8xf32>, vector<2x8x8xf32> -> vector<2x8x8xf32>
    "tpu.trace_stop"() : () -> ()
    %423 = vector.shape_cast %422 : vector<2x8x8xf32> to vector<16x8xf32>
    %424 = vector.extract_strided_slice %329 {offsets = [24, 0], sizes = [8, 32], strides = [1, 1]} : vector<32x32xf32> to vector<8x32xf32>
    %cst_169 = arith.constant dense<0.000000e+00> : vector<16x32xf32>
    %425 = tpu.matmul %423, %424, %cst_169 {dimension_numbers = #tpu.dot_dimension_numbers<[1], [0], [0], [1], [0, 0, 1, 1], [], []>} : vector<16x8xf32>, vector<8x32xf32>, vector<16x32xf32> -> vector<16x32xf32>
    %426 = arith.addf %402, %425 : vector<16x32xf32>
    %c1_170 = arith.constant 1 : index
    %c0_171 = arith.constant 0 : index
    %c0_172 = arith.constant 0 : index
    %427 = vector.load %arg6[%c1_170, %c0_171, %c0_172] : memref<2x1x32xf32, #tpu.memory_space<vmem>>, vector<1x1x32xf32>
    %428 = vector.shape_cast %427 : vector<1x1x32xf32> to vector<1x32xf32>
    %429 = vector.broadcast %428 : vector<1x32xf32> to vector<16x32xf32>
    %430 = arith.addf %426, %429 : vector<16x32xf32>
    %431 = arith.addf %320, %430 : vector<16x32xf32>
    %c1_173 = arith.constant 1 : index
    %c0_174 = arith.constant 0 : index
    %c0_175 = arith.constant 0 : index
    %432 = vector.load %arg17[%c1_173, %c0_174, %c0_175] : memref<2x1x32xf32, #tpu.memory_space<vmem>>, vector<1x1x32xf32>
    %433 = vector.shape_cast %432 : vector<1x1x32xf32> to vector<1x32xf32>
    %c1_176 = arith.constant 1 : index
    %c0_177 = arith.constant 0 : index
    %c0_178 = arith.constant 0 : index
    %434 = vector.load %arg18[%c1_176, %c0_177, %c0_178] : memref<2x1x32xf32, #tpu.memory_space<vmem>>, vector<1x1x32xf32>
    %435 = vector.shape_cast %434 : vector<1x1x32xf32> to vector<1x32xf32>
    %cst_179 = arith.constant dense<0.000000e+00> : vector<16xf32>
    %436 = vector.multi_reduction <add>, %431, %cst_179 [1] : vector<16x32xf32> to vector<16xf32>
    %437 = vector.shape_cast %436 : vector<16xf32> to vector<16x1xf32>
    %cst_180 = arith.constant 3.200000e+01 : f32
    %438 = vector.broadcast %cst_180 : f32 to vector<16x1xf32>
    %439 = arith.divf %437, %438 : vector<16x1xf32>
    %440 = vector.broadcast %439 : vector<16x1xf32> to vector<16x32xf32>
    %441 = arith.subf %431, %440 : vector<16x32xf32>
    %442 = vector.broadcast %439 : vector<16x1xf32> to vector<16x32xf32>
    %443 = arith.subf %431, %442 : vector<16x32xf32>
    %444 = arith.mulf %441, %443 : vector<16x32xf32>
    %cst_181 = arith.constant dense<0.000000e+00> : vector<16xf32>
    %445 = vector.multi_reduction <add>, %444, %cst_181 [1] : vector<16x32xf32> to vector<16xf32>
    %446 = vector.shape_cast %445 : vector<16xf32> to vector<16x1xf32>
    %cst_182 = arith.constant 3.200000e+01 : f32
    %447 = vector.broadcast %cst_182 : f32 to vector<16x1xf32>
    %448 = arith.divf %446, %447 : vector<16x1xf32>
    %449 = vector.broadcast %439 : vector<16x1xf32> to vector<16x32xf32>
    %450 = arith.subf %431, %449 : vector<16x32xf32>
    %cst_183 = arith.constant 9.99999974E-6 : f32
    %451 = vector.broadcast %cst_183 : f32 to vector<16x1xf32>
    %452 = arith.addf %448, %451 : vector<16x1xf32>
    %453 = math.rsqrt %452 : vector<16x1xf32>
    %454 = vector.broadcast %453 : vector<16x1xf32> to vector<16x32xf32>
    %455 = arith.mulf %450, %454 : vector<16x32xf32>
    %456 = vector.broadcast %433 : vector<1x32xf32> to vector<16x32xf32>
    %457 = arith.mulf %455, %456 : vector<16x32xf32>
    %458 = vector.broadcast %435 : vector<1x32xf32> to vector<16x32xf32>
    %459 = arith.addf %457, %458 : vector<16x32xf32>
    %c1_184 = arith.constant 1 : index
    %c0_185 = arith.constant 0 : index
    %c0_186 = arith.constant 0 : index
    %460 = vector.load %arg7[%c1_184, %c0_185, %c0_186] : memref<2x32x32xf32, #tpu.memory_space<vmem>>, vector<1x32x32xf32>
    %461 = vector.shape_cast %460 : vector<1x32x32xf32> to vector<32x32xf32>
    %cst_187 = arith.constant dense<0.000000e+00> : vector<16x32xf32>
    %462 = tpu.matmul %459, %461, %cst_187 {dimension_numbers = #tpu.dot_dimension_numbers<[1], [0], [0], [1], [0, 0, 1, 1], [], []>} : vector<16x32xf32>, vector<32x32xf32>, vector<16x32xf32> -> vector<16x32xf32>
    %c1_188 = arith.constant 1 : index
    %c0_189 = arith.constant 0 : index
    %c0_190 = arith.constant 0 : index
    %463 = vector.load %arg8[%c1_188, %c0_189, %c0_190] : memref<2x1x32xf32, #tpu.memory_space<vmem>>, vector<1x1x32xf32>
    %464 = vector.shape_cast %463 : vector<1x1x32xf32> to vector<1x32xf32>
    %465 = vector.broadcast %464 : vector<1x32xf32> to vector<16x32xf32>
    %466 = arith.addf %462, %465 : vector<16x32xf32>
    %c1_191 = arith.constant 1 : index
    %c0_192 = arith.constant 0 : index
    %c0_193 = arith.constant 0 : index
    %467 = vector.load %arg9[%c1_191, %c0_192, %c0_193] : memref<2x32x64xf32, #tpu.memory_space<vmem>>, vector<1x32x64xf32>
    %468 = vector.shape_cast %467 : vector<1x32x64xf32> to vector<32x64xf32>
    %cst_194 = arith.constant dense<0.000000e+00> : vector<10x64xf32>
    %469 = tpu.matmul %6, %468, %cst_194 {dimension_numbers = #tpu.dot_dimension_numbers<[1], [0], [0], [1], [0, 0, 1, 1], [], []>} : vector<10x32xf32>, vector<32x64xf32>, vector<10x64xf32> -> vector<10x64xf32>
    %c1_195 = arith.constant 1 : index
    %c0_196 = arith.constant 0 : index
    %c0_197 = arith.constant 0 : index
    %470 = vector.load %arg10[%c1_195, %c0_196, %c0_197] : memref<2x1x64xf32, #tpu.memory_space<vmem>>, vector<1x1x64xf32>
    %471 = vector.shape_cast %470 : vector<1x1x64xf32> to vector<1x64xf32>
    %472 = vector.broadcast %471 : vector<1x64xf32> to vector<10x64xf32>
    %473 = arith.addf %469, %472 : vector<10x64xf32>
    %c1_198 = arith.constant 1 : index
    %c0_199 = arith.constant 0 : index
    %c0_200 = arith.constant 0 : index
    %474 = vector.load %arg11[%c1_198, %c0_199, %c0_200] : memref<2x32x32xf32, #tpu.memory_space<vmem>>, vector<1x32x32xf32>
    %475 = vector.shape_cast %474 : vector<1x32x32xf32> to vector<32x32xf32>
    %cst_201 = arith.constant 0.000000e+00 : f32
    %476 = vector.broadcast %cst_201 : f32 to vector<16x32xf32>
    %477 = vector.extract_strided_slice %466 {offsets = [0, 0], sizes = [16, 8], strides = [1, 1]} : vector<16x32xf32> to vector<16x8xf32>
    %478 = vector.extract_strided_slice %473 {offsets = [0, 0], sizes = [10, 8], strides = [1, 1]} : vector<10x64xf32> to vector<10x8xf32>
    %479 = vector.extract_strided_slice %473 {offsets = [0, 32], sizes = [10, 8], strides = [1, 1]} : vector<10x64xf32> to vector<10x8xf32>
    %cst_202 = arith.constant dense<0.000000e+00> : vector<16x10xf32>
    %480 = tpu.matmul %477, %478, %cst_202 {dimension_numbers = #tpu.dot_dimension_numbers<[1], [1], [0], [0], [0, 0, 1, 0], [], []>} : vector<16x8xf32>, vector<10x8xf32>, vector<16x10xf32> -> vector<16x10xf32>
    %cst_203 = arith.constant 0.353553385 : f32
    %481 = vector.broadcast %cst_203 : f32 to vector<16x10xf32>
    %482 = arith.mulf %480, %481 : vector<16x10xf32>
    %cst_204 = arith.constant dense<0xFF800000> : vector<16xf32>
    %483 = vector.multi_reduction <maximumf>, %482, %cst_204 [1] : vector<16x10xf32> to vector<16xf32>
    %484 = vector.shape_cast %483 : vector<16xf32> to vector<16x1xf32>
    %485 = vector.broadcast %484 : vector<16x1xf32> to vector<16x10xf32>
    %486 = arith.subf %482, %485 : vector<16x10xf32>
    %487 = math.exp %486 : vector<16x10xf32>
    %cst_205 = arith.constant dense<0.000000e+00> : vector<16xf32>
    %488 = vector.multi_reduction <add>, %487, %cst_205 [1] : vector<16x10xf32> to vector<16xf32>
    %489 = vector.shape_cast %488 : vector<16xf32> to vector<16x1xf32>
    %490 = tpu.reciprocal %489 {approx = true} : vector<16x1xf32> -> vector<16x1xf32>
    %491 = vector.broadcast %490 : vector<16x1xf32> to vector<16x10xf32>
    %492 = arith.mulf %487, %491 : vector<16x10xf32>
    %cst_206 = arith.constant dense<0.000000e+00> : vector<16x8xf32>
    %493 = tpu.matmul %492, %479, %cst_206 {dimension_numbers = #tpu.dot_dimension_numbers<[1], [0], [0], [1], [0, 0, 1, 1], [], []>} : vector<16x10xf32>, vector<10x8xf32>, vector<16x8xf32> -> vector<16x8xf32>
    %494 = vector.extract_strided_slice %475 {offsets = [0, 0], sizes = [8, 32], strides = [1, 1]} : vector<32x32xf32> to vector<8x32xf32>
    %cst_207 = arith.constant dense<0.000000e+00> : vector<16x32xf32>
    %495 = tpu.matmul %493, %494, %cst_207 {dimension_numbers = #tpu.dot_dimension_numbers<[1], [0], [0], [1], [0, 0, 1, 1], [], []>} : vector<16x8xf32>, vector<8x32xf32>, vector<16x32xf32> -> vector<16x32xf32>
    %496 = arith.addf %476, %495 : vector<16x32xf32>
    %497 = vector.extract_strided_slice %466 {offsets = [0, 8], sizes = [16, 8], strides = [1, 1]} : vector<16x32xf32> to vector<16x8xf32>
    %498 = vector.extract_strided_slice %473 {offsets = [0, 8], sizes = [10, 8], strides = [1, 1]} : vector<10x64xf32> to vector<10x8xf32>
    %499 = vector.extract_strided_slice %473 {offsets = [0, 40], sizes = [10, 8], strides = [1, 1]} : vector<10x64xf32> to vector<10x8xf32>
    %cst_208 = arith.constant dense<0.000000e+00> : vector<16x10xf32>
    %500 = tpu.matmul %497, %498, %cst_208 {dimension_numbers = #tpu.dot_dimension_numbers<[1], [1], [0], [0], [0, 0, 1, 0], [], []>} : vector<16x8xf32>, vector<10x8xf32>, vector<16x10xf32> -> vector<16x10xf32>
    %cst_209 = arith.constant 0.353553385 : f32
    %501 = vector.broadcast %cst_209 : f32 to vector<16x10xf32>
    %502 = arith.mulf %500, %501 : vector<16x10xf32>
    %cst_210 = arith.constant dense<0xFF800000> : vector<16xf32>
    %503 = vector.multi_reduction <maximumf>, %502, %cst_210 [1] : vector<16x10xf32> to vector<16xf32>
    %504 = vector.shape_cast %503 : vector<16xf32> to vector<16x1xf32>
    %505 = vector.broadcast %504 : vector<16x1xf32> to vector<16x10xf32>
    %506 = arith.subf %502, %505 : vector<16x10xf32>
    %507 = math.exp %506 : vector<16x10xf32>
    %cst_211 = arith.constant dense<0.000000e+00> : vector<16xf32>
    %508 = vector.multi_reduction <add>, %507, %cst_211 [1] : vector<16x10xf32> to vector<16xf32>
    %509 = vector.shape_cast %508 : vector<16xf32> to vector<16x1xf32>
    %510 = tpu.reciprocal %509 {approx = true} : vector<16x1xf32> -> vector<16x1xf32>
    %511 = vector.broadcast %510 : vector<16x1xf32> to vector<16x10xf32>
    %512 = arith.mulf %507, %511 : vector<16x10xf32>
    %cst_212 = arith.constant dense<0.000000e+00> : vector<16x8xf32>
    %513 = tpu.matmul %512, %499, %cst_212 {dimension_numbers = #tpu.dot_dimension_numbers<[1], [0], [0], [1], [0, 0, 1, 1], [], []>} : vector<16x10xf32>, vector<10x8xf32>, vector<16x8xf32> -> vector<16x8xf32>
    %514 = vector.extract_strided_slice %475 {offsets = [8, 0], sizes = [8, 32], strides = [1, 1]} : vector<32x32xf32> to vector<8x32xf32>
    %cst_213 = arith.constant dense<0.000000e+00> : vector<16x32xf32>
    %515 = tpu.matmul %513, %514, %cst_213 {dimension_numbers = #tpu.dot_dimension_numbers<[1], [0], [0], [1], [0, 0, 1, 1], [], []>} : vector<16x8xf32>, vector<8x32xf32>, vector<16x32xf32> -> vector<16x32xf32>
    %516 = arith.addf %496, %515 : vector<16x32xf32>
    %517 = vector.extract_strided_slice %466 {offsets = [0, 16], sizes = [16, 8], strides = [1, 1]} : vector<16x32xf32> to vector<16x8xf32>
    %518 = vector.extract_strided_slice %473 {offsets = [0, 16], sizes = [10, 8], strides = [1, 1]} : vector<10x64xf32> to vector<10x8xf32>
    %519 = vector.extract_strided_slice %473 {offsets = [0, 48], sizes = [10, 8], strides = [1, 1]} : vector<10x64xf32> to vector<10x8xf32>
    %cst_214 = arith.constant dense<0.000000e+00> : vector<16x10xf32>
    %520 = tpu.matmul %517, %518, %cst_214 {dimension_numbers = #tpu.dot_dimension_numbers<[1], [1], [0], [0], [0, 0, 1, 0], [], []>} : vector<16x8xf32>, vector<10x8xf32>, vector<16x10xf32> -> vector<16x10xf32>
    %cst_215 = arith.constant 0.353553385 : f32
    %521 = vector.broadcast %cst_215 : f32 to vector<16x10xf32>
    %522 = arith.mulf %520, %521 : vector<16x10xf32>
    %cst_216 = arith.constant dense<0xFF800000> : vector<16xf32>
    %523 = vector.multi_reduction <maximumf>, %522, %cst_216 [1] : vector<16x10xf32> to vector<16xf32>
    %524 = vector.shape_cast %523 : vector<16xf32> to vector<16x1xf32>
    %525 = vector.broadcast %524 : vector<16x1xf32> to vector<16x10xf32>
    %526 = arith.subf %522, %525 : vector<16x10xf32>
    %527 = math.exp %526 : vector<16x10xf32>
    %cst_217 = arith.constant dense<0.000000e+00> : vector<16xf32>
    %528 = vector.multi_reduction <add>, %527, %cst_217 [1] : vector<16x10xf32> to vector<16xf32>
    %529 = vector.shape_cast %528 : vector<16xf32> to vector<16x1xf32>
    %530 = tpu.reciprocal %529 {approx = true} : vector<16x1xf32> -> vector<16x1xf32>
    %531 = vector.broadcast %530 : vector<16x1xf32> to vector<16x10xf32>
    %532 = arith.mulf %527, %531 : vector<16x10xf32>
    %cst_218 = arith.constant dense<0.000000e+00> : vector<16x8xf32>
    %533 = tpu.matmul %532, %519, %cst_218 {dimension_numbers = #tpu.dot_dimension_numbers<[1], [0], [0], [1], [0, 0, 1, 1], [], []>} : vector<16x10xf32>, vector<10x8xf32>, vector<16x8xf32> -> vector<16x8xf32>
    %534 = vector.extract_strided_slice %475 {offsets = [16, 0], sizes = [8, 32], strides = [1, 1]} : vector<32x32xf32> to vector<8x32xf32>
    %cst_219 = arith.constant dense<0.000000e+00> : vector<16x32xf32>
    %535 = tpu.matmul %533, %534, %cst_219 {dimension_numbers = #tpu.dot_dimension_numbers<[1], [0], [0], [1], [0, 0, 1, 1], [], []>} : vector<16x8xf32>, vector<8x32xf32>, vector<16x32xf32> -> vector<16x32xf32>
    %536 = arith.addf %516, %535 : vector<16x32xf32>
    %537 = vector.extract_strided_slice %466 {offsets = [0, 24], sizes = [16, 8], strides = [1, 1]} : vector<16x32xf32> to vector<16x8xf32>
    %538 = vector.extract_strided_slice %473 {offsets = [0, 24], sizes = [10, 8], strides = [1, 1]} : vector<10x64xf32> to vector<10x8xf32>
    %539 = vector.extract_strided_slice %473 {offsets = [0, 56], sizes = [10, 8], strides = [1, 1]} : vector<10x64xf32> to vector<10x8xf32>
    %cst_220 = arith.constant dense<0.000000e+00> : vector<16x10xf32>
    %540 = tpu.matmul %537, %538, %cst_220 {dimension_numbers = #tpu.dot_dimension_numbers<[1], [1], [0], [0], [0, 0, 1, 0], [], []>} : vector<16x8xf32>, vector<10x8xf32>, vector<16x10xf32> -> vector<16x10xf32>
    %cst_221 = arith.constant 0.353553385 : f32
    %541 = vector.broadcast %cst_221 : f32 to vector<16x10xf32>
    %542 = arith.mulf %540, %541 : vector<16x10xf32>
    %cst_222 = arith.constant dense<0xFF800000> : vector<16xf32>
    %543 = vector.multi_reduction <maximumf>, %542, %cst_222 [1] : vector<16x10xf32> to vector<16xf32>
    %544 = vector.shape_cast %543 : vector<16xf32> to vector<16x1xf32>
    %545 = vector.broadcast %544 : vector<16x1xf32> to vector<16x10xf32>
    %546 = arith.subf %542, %545 : vector<16x10xf32>
    %547 = math.exp %546 : vector<16x10xf32>
    %cst_223 = arith.constant dense<0.000000e+00> : vector<16xf32>
    %548 = vector.multi_reduction <add>, %547, %cst_223 [1] : vector<16x10xf32> to vector<16xf32>
    %549 = vector.shape_cast %548 : vector<16xf32> to vector<16x1xf32>
    %550 = tpu.reciprocal %549 {approx = true} : vector<16x1xf32> -> vector<16x1xf32>
    %551 = vector.broadcast %550 : vector<16x1xf32> to vector<16x10xf32>
    %552 = arith.mulf %547, %551 : vector<16x10xf32>
    %cst_224 = arith.constant dense<0.000000e+00> : vector<16x8xf32>
    %553 = tpu.matmul %552, %539, %cst_224 {dimension_numbers = #tpu.dot_dimension_numbers<[1], [0], [0], [1], [0, 0, 1, 1], [], []>} : vector<16x10xf32>, vector<10x8xf32>, vector<16x8xf32> -> vector<16x8xf32>
    %554 = vector.extract_strided_slice %475 {offsets = [24, 0], sizes = [8, 32], strides = [1, 1]} : vector<32x32xf32> to vector<8x32xf32>
    %cst_225 = arith.constant dense<0.000000e+00> : vector<16x32xf32>
    %555 = tpu.matmul %553, %554, %cst_225 {dimension_numbers = #tpu.dot_dimension_numbers<[1], [0], [0], [1], [0, 0, 1, 1], [], []>} : vector<16x8xf32>, vector<8x32xf32>, vector<16x32xf32> -> vector<16x32xf32>
    %556 = arith.addf %536, %555 : vector<16x32xf32>
    %c1_226 = arith.constant 1 : index
    %c0_227 = arith.constant 0 : index
    %c0_228 = arith.constant 0 : index
    %557 = vector.load %arg12[%c1_226, %c0_227, %c0_228] : memref<2x1x32xf32, #tpu.memory_space<vmem>>, vector<1x1x32xf32>
    %558 = vector.shape_cast %557 : vector<1x1x32xf32> to vector<1x32xf32>
    %559 = vector.broadcast %558 : vector<1x32xf32> to vector<16x32xf32>
    %560 = arith.addf %556, %559 : vector<16x32xf32>
    %561 = arith.addf %459, %560 : vector<16x32xf32>
    %c1_229 = arith.constant 1 : index
    %c0_230 = arith.constant 0 : index
    %c0_231 = arith.constant 0 : index
    %562 = vector.load %arg19[%c1_229, %c0_230, %c0_231] : memref<2x1x32xf32, #tpu.memory_space<vmem>>, vector<1x1x32xf32>
    %563 = vector.shape_cast %562 : vector<1x1x32xf32> to vector<1x32xf32>
    %c1_232 = arith.constant 1 : index
    %c0_233 = arith.constant 0 : index
    %c0_234 = arith.constant 0 : index
    %564 = vector.load %arg20[%c1_232, %c0_233, %c0_234] : memref<2x1x32xf32, #tpu.memory_space<vmem>>, vector<1x1x32xf32>
    %565 = vector.shape_cast %564 : vector<1x1x32xf32> to vector<1x32xf32>
    %cst_235 = arith.constant dense<0.000000e+00> : vector<16xf32>
    %566 = vector.multi_reduction <add>, %561, %cst_235 [1] : vector<16x32xf32> to vector<16xf32>
    %567 = vector.shape_cast %566 : vector<16xf32> to vector<16x1xf32>
    %cst_236 = arith.constant 3.200000e+01 : f32
    %568 = vector.broadcast %cst_236 : f32 to vector<16x1xf32>
    %569 = arith.divf %567, %568 : vector<16x1xf32>
    %570 = vector.broadcast %569 : vector<16x1xf32> to vector<16x32xf32>
    %571 = arith.subf %561, %570 : vector<16x32xf32>
    %572 = vector.broadcast %569 : vector<16x1xf32> to vector<16x32xf32>
    %573 = arith.subf %561, %572 : vector<16x32xf32>
    %574 = arith.mulf %571, %573 : vector<16x32xf32>
    %cst_237 = arith.constant dense<0.000000e+00> : vector<16xf32>
    %575 = vector.multi_reduction <add>, %574, %cst_237 [1] : vector<16x32xf32> to vector<16xf32>
    %576 = vector.shape_cast %575 : vector<16xf32> to vector<16x1xf32>
    %cst_238 = arith.constant 3.200000e+01 : f32
    %577 = vector.broadcast %cst_238 : f32 to vector<16x1xf32>
    %578 = arith.divf %576, %577 : vector<16x1xf32>
    %579 = vector.broadcast %569 : vector<16x1xf32> to vector<16x32xf32>
    %580 = arith.subf %561, %579 : vector<16x32xf32>
    %cst_239 = arith.constant 9.99999974E-6 : f32
    %581 = vector.broadcast %cst_239 : f32 to vector<16x1xf32>
    %582 = arith.addf %578, %581 : vector<16x1xf32>
    %583 = math.rsqrt %582 : vector<16x1xf32>
    %584 = vector.broadcast %583 : vector<16x1xf32> to vector<16x32xf32>
    %585 = arith.mulf %580, %584 : vector<16x32xf32>
    %586 = vector.broadcast %563 : vector<1x32xf32> to vector<16x32xf32>
    %587 = arith.mulf %585, %586 : vector<16x32xf32>
    %588 = vector.broadcast %565 : vector<1x32xf32> to vector<16x32xf32>
    %589 = arith.addf %587, %588 : vector<16x32xf32>
    %c1_240 = arith.constant 1 : index
    %c0_241 = arith.constant 0 : index
    %c0_242 = arith.constant 0 : index
    %590 = vector.load %arg13[%c1_240, %c0_241, %c0_242] : memref<2x32x64xf32, #tpu.memory_space<vmem>>, vector<1x32x64xf32>
    %591 = vector.shape_cast %590 : vector<1x32x64xf32> to vector<32x64xf32>
    %cst_243 = arith.constant dense<0.000000e+00> : vector<16x64xf32>
    %592 = tpu.matmul %589, %591, %cst_243 {dimension_numbers = #tpu.dot_dimension_numbers<[1], [0], [0], [1], [0, 0, 1, 1], [], []>} : vector<16x32xf32>, vector<32x64xf32>, vector<16x64xf32> -> vector<16x64xf32>
    %c1_244 = arith.constant 1 : index
    %c0_245 = arith.constant 0 : index
    %c0_246 = arith.constant 0 : index
    %593 = vector.load %arg14[%c1_244, %c0_245, %c0_246] : memref<2x1x64xf32, #tpu.memory_space<vmem>>, vector<1x1x64xf32>
    %594 = vector.shape_cast %593 : vector<1x1x64xf32> to vector<1x64xf32>
    %595 = vector.broadcast %594 : vector<1x64xf32> to vector<16x64xf32>
    %596 = arith.addf %592, %595 : vector<16x64xf32>
    %cst_247 = arith.constant 0.000000e+00 : f32
    %597 = vector.broadcast %cst_247 : f32 to vector<16x64xf32>
    %598 = arith.maximumf %596, %597 : vector<16x64xf32>
    %c1_248 = arith.constant 1 : index
    %c0_249 = arith.constant 0 : index
    %c0_250 = arith.constant 0 : index
    %599 = vector.load %arg15[%c1_248, %c0_249, %c0_250] : memref<2x64x32xf32, #tpu.memory_space<vmem>>, vector<1x64x32xf32>
    %600 = vector.shape_cast %599 : vector<1x64x32xf32> to vector<64x32xf32>
    %cst_251 = arith.constant dense<0.000000e+00> : vector<16x32xf32>
    %601 = tpu.matmul %598, %600, %cst_251 {dimension_numbers = #tpu.dot_dimension_numbers<[1], [0], [0], [1], [0, 0, 1, 1], [], []>} : vector<16x64xf32>, vector<64x32xf32>, vector<16x32xf32> -> vector<16x32xf32>
    %c1_252 = arith.constant 1 : index
    %c0_253 = arith.constant 0 : index
    %c0_254 = arith.constant 0 : index
    %602 = vector.load %arg16[%c1_252, %c0_253, %c0_254] : memref<2x1x32xf32, #tpu.memory_space<vmem>>, vector<1x1x32xf32>
    %603 = vector.shape_cast %602 : vector<1x1x32xf32> to vector<1x32xf32>
    %604 = vector.broadcast %603 : vector<1x32xf32> to vector<16x32xf32>
    %605 = arith.addf %601, %604 : vector<16x32xf32>
    %606 = arith.addf %589, %605 : vector<16x32xf32>
    %c1_255 = arith.constant 1 : index
    %c0_256 = arith.constant 0 : index
    %c0_257 = arith.constant 0 : index
    %607 = vector.load %arg21[%c1_255, %c0_256, %c0_257] : memref<2x1x32xf32, #tpu.memory_space<vmem>>, vector<1x1x32xf32>
    %608 = vector.shape_cast %607 : vector<1x1x32xf32> to vector<1x32xf32>
    %c1_258 = arith.constant 1 : index
    %c0_259 = arith.constant 0 : index
    %c0_260 = arith.constant 0 : index
    %609 = vector.load %arg22[%c1_258, %c0_259, %c0_260] : memref<2x1x32xf32, #tpu.memory_space<vmem>>, vector<1x1x32xf32>
    %610 = vector.shape_cast %609 : vector<1x1x32xf32> to vector<1x32xf32>
    %cst_261 = arith.constant dense<0.000000e+00> : vector<16xf32>
    %611 = vector.multi_reduction <add>, %606, %cst_261 [1] : vector<16x32xf32> to vector<16xf32>
    %612 = vector.shape_cast %611 : vector<16xf32> to vector<16x1xf32>
    %cst_262 = arith.constant 3.200000e+01 : f32
    %613 = vector.broadcast %cst_262 : f32 to vector<16x1xf32>
    %614 = arith.divf %612, %613 : vector<16x1xf32>
    %615 = vector.broadcast %614 : vector<16x1xf32> to vector<16x32xf32>
    %616 = arith.subf %606, %615 : vector<16x32xf32>
    %617 = vector.broadcast %614 : vector<16x1xf32> to vector<16x32xf32>
    %618 = arith.subf %606, %617 : vector<16x32xf32>
    %619 = arith.mulf %616, %618 : vector<16x32xf32>
    %cst_263 = arith.constant dense<0.000000e+00> : vector<16xf32>
    %620 = vector.multi_reduction <add>, %619, %cst_263 [1] : vector<16x32xf32> to vector<16xf32>
    %621 = vector.shape_cast %620 : vector<16xf32> to vector<16x1xf32>
    %cst_264 = arith.constant 3.200000e+01 : f32
    %622 = vector.broadcast %cst_264 : f32 to vector<16x1xf32>
    %623 = arith.divf %621, %622 : vector<16x1xf32>
    %624 = vector.broadcast %614 : vector<16x1xf32> to vector<16x32xf32>
    %625 = arith.subf %606, %624 : vector<16x32xf32>
    %cst_265 = arith.constant 9.99999974E-6 : f32
    %626 = vector.broadcast %cst_265 : f32 to vector<16x1xf32>
    %627 = arith.addf %623, %626 : vector<16x1xf32>
    %628 = math.rsqrt %627 : vector<16x1xf32>
    %629 = vector.broadcast %628 : vector<16x1xf32> to vector<16x32xf32>
    %630 = arith.mulf %625, %629 : vector<16x32xf32>
    %631 = vector.broadcast %608 : vector<1x32xf32> to vector<16x32xf32>
    %632 = arith.mulf %630, %631 : vector<16x32xf32>
    %633 = vector.broadcast %610 : vector<1x32xf32> to vector<16x32xf32>
    %634 = arith.addf %632, %633 : vector<16x32xf32>
    %c0_266 = arith.constant 0 : index
    %c0_267 = arith.constant 0 : index
    %635 = vector.load %arg23[%c0_266, %c0_267] : memref<32x32xf32, #tpu.memory_space<vmem>>, vector<32x32xf32>
    %cst_268 = arith.constant dense<0.000000e+00> : vector<16x32xf32>
    %636 = tpu.matmul %634, %635, %cst_268 {dimension_numbers = #tpu.dot_dimension_numbers<[1], [0], [0], [1], [0, 0, 1, 1], [], []>} : vector<16x32xf32>, vector<32x32xf32>, vector<16x32xf32> -> vector<16x32xf32>
    %c0_269 = arith.constant 0 : index
    %c0_270 = arith.constant 0 : index
    %637 = vector.load %arg24[%c0_269, %c0_270] : memref<1x32xf32, #tpu.memory_space<vmem>>, vector<1x32xf32>
    %638 = vector.broadcast %637 : vector<1x32xf32> to vector<16x32xf32>
    %639 = arith.addf %636, %638 : vector<16x32xf32>
    %cst_271 = arith.constant dense<0xFF800000> : vector<16xf32>
    %640 = vector.multi_reduction <maximumf>, %639, %cst_271 [1] : vector<16x32xf32> to vector<16xf32>
    %641 = vector.shape_cast %640 : vector<16xf32> to vector<16x1xf32>
    %642 = vector.broadcast %641 : vector<16x1xf32> to vector<16x32xf32>
    %643 = arith.subf %639, %642 : vector<16x32xf32>
    %644 = math.exp %643 : vector<16x32xf32>
    %cst_272 = arith.constant dense<0.000000e+00> : vector<16xf32>
    %645 = vector.multi_reduction <add>, %644, %cst_272 [1] : vector<16x32xf32> to vector<16xf32>
    %646 = vector.shape_cast %645 : vector<16xf32> to vector<16x1xf32>
    %647 = vector.broadcast %646 : vector<16x1xf32> to vector<16x32xf32>
    %648 = arith.divf %644, %647 : vector<16x32xf32>
    %649 = vector.shape_cast %648 : vector<16x32xf32> to vector<2x8x32xf32>
    %c0_273 = arith.constant 0 : index
    %c0_274 = arith.constant 0 : index
    %c0_275 = arith.constant 0 : index
    %650 = vector.load %arg25[%c0_273, %c0_274, %c0_275] : memref<2x8x32xf32, #tpu.memory_space<vmem>>, vector<2x8x32xf32>
    tpu.vector_store %arg25[%c0_273, %c0_274, %c0_275], %649 {strides = array<i32>} : memref<2x8x32xf32, #tpu.memory_space<vmem>>, vector<2x8x32xf32>,
    return
  }
}

</mosaic_0001>

<bundles_post_ra>
// kernel: tpu_custom_call.1
= control target key start
LH: loop header
LB: loop body
LE: loop exit
PB: predicated region body
PF: predicated region fallthrough
CT: control target
= control target key end

     0   :  { %s9871_s0 = inlined_call_operand.hbm [shape: f32[2,8,32], index: 0, kind: input, shape index: {}]   ;;  %s9872_s1 = inlined_call_operand.hbm [shape: f32[8,32], index: 1, kind: input, shape index: {}]   ;;  %s9873_s2 = inlined_call_operand.hbm [shape: f32[10,32], index: 2, kind: input, shape index: {}]   ;;  %s9874_s3 = inlined_call_operand.vmem [shape: f32[2,32,96], index: 3, kind: input, shape index: {}]   ;;  %s9875_s4 = inlined_call_operand.hbm [shape: f32[2,1,96], index: 4, kind: input, shape index: {}]   ;;  %s9876_s5 = inlined_call_operand.vmem [shape: f32[2,32,32], index: 5, kind: input, shape index: {}]   ;;  %s9877_s6 = inlined_call_operand.hbm [shape: f32[2,1,32], index: 6, kind: input, shape index: {}]   ;;  %s9878_s7 = inlined_call_operand.vmem [shape: f32[2,32,32], index: 7, kind: input, shape index: {}]   ;;  %s9879_s8 = inlined_call_operand.hbm [shape: f32[2,1,32], index: 8, kind: input, shape index: {}]   ;;  %s9880_s9 = inlined_call_operand.hbm [shape: f32[2,32,64], index: 9, kind: input, shape index: {}]   ;;  %s9881_s10 = inlined_call_operand.hbm [shape: f32[2,1,64], index: 10, kind: input, shape index: {}]   ;;  %s9882_s11 = inlined_call_operand.hbm [shape: f32[2,32,32], index: 11, kind: input, shape index: {}]   ;;  %s9883_s12 = inlined_call_operand.hbm [shape: f32[2,1,32], index: 12, kind: input, shape index: {}]   ;;  %s9884_s13 = inlined_call_operand.hbm [shape: f32[2,32,64], index: 13, kind: input, shape index: {}]   ;;  %s9885_s14 = inlined_call_operand.hbm [shape: f32[2,1,64], index: 14, kind: input, shape index: {}]   ;;  %s9886_s15 = inlined_call_operand.vmem [shape: f32[2,64,32], index: 15, kind: input, shape index: {}]   ;;  %s9887_s16 = inlined_call_operand.hbm [shape: f32[2,1,32], index: 16, kind: input, shape index: {}]   ;;  %s9888_s17 = inlined_call_operand.hbm [shape: f32[2,1,32], index: 17, kind: input, shape index: {}]   ;;  %s9889_s18 = inlined_call_operand.hbm [shape: f32[2,1,32], index: 18, kind: input, shape index: {}]   ;;  %s9890_s19 = inlined_call_operand.hbm [shape: f32[2,1,32], index: 19, kind: input, shape index: {}]   ;;  %s9891_s20 = inlined_call_operand.vmem [shape: f32[2,1,32], index: 20, kind: input, shape index: {}]   ;;  %s9892_s21 = inlined_call_operand.vmem [shape: f32[2,1,32], index: 21, kind: input, shape index: {}]   ;;  %s9893_s22 = inlined_call_operand.vmem [shape: f32[2,1,32], index: 22, kind: input, shape index: {}]   ;;  %s9894_s23 = inlined_call_operand.vmem [shape: f32[32,32], index: 23, kind: input, shape index: {}]   ;;  %s9895_s24 = inlined_call_operand.vmem [shape: f32[1,32], index: 24, kind: input, shape index: {}]   ;;  %s9896_s25 = inlined_call_operand.hbm [shape: f32[2,8,32], index: 25, kind: output, shape index: {}]  }
   0x1   :  { %9900 = sst [smem:[#allocation39_spill]] %s9871_s0 }
   0x2   :  { %9901 = sst [smem:[#allocation40_spill]] %s9872_s1 }
   0x3   :  { %9902 = sst [smem:[#allocation41_spill]] %s9873_s2 }
   0x4   :  { %9903 = sst [smem:[#allocation42_spill]] %s9874_s3 }
   0x5   :  { %9904 = sst [smem:[#allocation43_spill]] %s9875_s4 }
   0x6   :  { %9905 = sst [smem:[#allocation44_spill]] %s9876_s5 }
   0x7   :  { %9906 = sst [smem:[#allocation45_spill]] %s9877_s6 }
   0x8   :  { %9907 = sst [smem:[#allocation46_spill]] %s9878_s7 }
   0x9   :  { %9908 = sst [smem:[#allocation47_spill]] %s9879_s8 }
   0xa   :  { %9909 = sst [smem:[#allocation48_spill]] %s9880_s9 }
   0xb   :  { %30 = vsyncpa [#allocation3], 0 }
   0xc   :  { %31 = vsyncpa [#allocation6], 0 }
   0xd   :  { %32 = vsyncpa [#allocation9], 0 }
   0xe   :  { %33 = vsyncpa [#allocation12], 0 }
   0xf   :  { %34 = vsyncpa [#allocation15], 0 }
  0x10   :  { %35 = vsyncpa [#allocation18], 0 }
  0x11   :  { %36 = vsyncpa [#allocation21], 0 }
  0x12   :  { %37 = vsyncpa [#allocation24], 0 }
  0x13   :  { %38 = vsyncpa [#allocation27], 0 }
  0x14   :  { %39 = vsyncpa [#allocation4], 0  ;;  %s8807_s29 = smov [#allocation5]   ;;  %s8808_s6 = smov [#allocation8]  }
  0x15   :  { %s58_s2 = sshll.u32 %s8807_s29, 4  ;;  %s81_s30 = sshll.u32 %s8808_s6, 4  ;;  %s59_s2 = int_to_ptr.vmem [resolvable:$true] %s58_s2  ;;  %s82_s30 = int_to_ptr.vmem [resolvable:$true] %s81_s30 }
  0x16   :  { %s8455_s7 = scalar_lea.vmem %s59_s2, 128  ;;  %p8460_p1 = scmp.lt.s32.totalorder %s59_s2, %s59_s2 }
  0x17   :  { %p8456_p0 = scmp.ne.s32.totalorder %s59_s2, %s8455_s7  ;;  %p8461_p2 = scmp.lt.s32.totalorder %s8455_s7, %s8455_s7 }
  0x19   :  { %p8462_p3 = por %p8461_p2, %p8460_p1 }
  0x1b   :  { %p8463_p4 = pnand %p8462_p3, %p8456_p0 }
  0x1d   :  { %8466 = shalt.err (!%p8463_p4)
}
  0x1e   :  { %s9910_s1 = sld [smem:[#allocation40_spill]]  ;;  %s8475_s8 = scalar_lea.vmem %s82_s30, 32 }
  0x1f   :  { %p8476_p5 = scmp.ne.s32.totalorder %s82_s30, %s8475_s8  ;;  %p8480_p6 = scmp.lt.s32.totalorder %s82_s30, %s82_s30 }
  0x20   :  { %p8481_p7 = scmp.lt.s32.totalorder %s8475_s8, %s8475_s8 }
  0x22   :  { %p8482_p8 = por %p8481_p7, %p8480_p6 }
  0x24   :  { %61 = dma.hbm_to_vmem [thread:$0]  %s9910_s1, 128, %s59_s2, [#allocation6]  }
  0x25   :  { %p8483_p9 = pnand %p8482_p8, %p8476_p5 }
  0x27   :  { %8486 = shalt.err (!%p8483_p9)
}
  0x28   :  { %s8809_s27 = smov 16   ;;  %s8810_s4 = smov 1  }
  0x29   :  { %s9911_s5 = sld [smem:[#allocation43_spill]]  ;;  %s8811_s0 = smov [#allocation11]  }
  0x2a   :  { %s109_s29 = sshll.u32 %s8811_s0, 4  ;;  %s8812_s6 = smov [#allocation14]   ;;  %s110_s29 = int_to_ptr.vmem [resolvable:$true] %s109_s29 }
  0x2b   :  { %s133_s2 = sshll.u32 %s8812_s6, 4  ;;  %s8495_s7 = scalar_lea.vmem %s110_s29, 32  ;;  %s134_s2 = int_to_ptr.vmem [resolvable:$true] %s133_s2 }
  0x2c   :  { %p8496_p10 = scmp.ne.s32.totalorder %s110_s29, %s8495_s7  ;;  %p8500_p11 = scmp.lt.s32.totalorder %s110_s29, %s110_s29 }
  0x2d   :  { %p8501_p12 = scmp.lt.s32.totalorder %s8495_s7, %s8495_s7 }
  0x2f   :  { %87 = dma.hbm_to_vmem [thread:$0]  %s9911_s5, 32, %s82_s30, [#allocation9], %s8809_s27, %s8809_s27, %s8810_s4  }
  0x30   :  { %p8502_p13 = por %p8501_p12, %p8500_p11 }
  0x32   :  { %p8503_p0 = pnand %p8502_p13, %p8496_p10 }
  0x34   :  { %8506 = shalt.err (!%p8503_p0)
}
  0x35   :  { %s9912_s1 = sld [smem:[#allocation47_spill]]  ;;  %s8515_s30 = scalar_lea.vmem %s134_s2, 32 }
  0x36   :  { %p8516_p1 = scmp.ne.s32.totalorder %s134_s2, %s8515_s30  ;;  %p8520_p2 = scmp.lt.s32.totalorder %s134_s2, %s134_s2 }
  0x37   :  { %p8521_p3 = scmp.lt.s32.totalorder %s8515_s30, %s8515_s30 }
  0x39   :  { %p8522_p4 = por %p8521_p3, %p8520_p2 }
  0x3b   :  { %115 = dma.hbm_to_vmem [thread:$0]  %s9912_s1, 32, %s110_s29, [#allocation12], %s8809_s27, %s8809_s27, %s8810_s4  }
  0x3c   :  { %p8523_p5 = pnand %p8522_p4, %p8516_p1 }
  0x3e   :  { %8526 = shalt.err (!%p8523_p5)
}
  0x3f   :  { %139 = dma.hbm_to_vmem [thread:$0]  %s9881_s10, 32, %s134_s2, [#allocation15], %s8809_s27, %s8809_s27, %s8810_s4  }
  0x40   :  { %s8813_s9 = smov [#allocation17]   ;;  %s8814_s0 = smov [#allocation20]  }
  0x41   :  { %s157_s5 = sshll.u32 %s8813_s9, 4  ;;  %s181_s6 = sshll.u32 %s8814_s0, 4  ;;  %s158_s5 = int_to_ptr.vmem [resolvable:$true] %s157_s5  ;;  %s182_s6 = int_to_ptr.vmem [resolvable:$true] %s181_s6 }
  0x42   :  { %s8535_s29 = scalar_lea.vmem %s158_s5, 32  ;;  %p8540_p7 = scmp.lt.s32.totalorder %s158_s5, %s158_s5 }
  0x43   :  { %p8536_p6 = scmp.ne.s32.totalorder %s158_s5, %s8535_s29  ;;  %p8541_p8 = scmp.lt.s32.totalorder %s8535_s29, %s8535_s29 }
  0x45   :  { %p8542_p9 = por %p8541_p8, %p8540_p7 }
  0x47   :  { %p8543_p10 = pnand %p8542_p9, %p8536_p6 }
  0x49   :  { %8546 = shalt.err (!%p8543_p10)
}
  0x4a   :  { %163 = dma.hbm_to_vmem [thread:$0]  %s9883_s12, 32, %s158_s5, [#allocation18], %s8809_s27, %s8809_s27, %s8810_s4  }
  0x4b   :  { %s8555_s10 = scalar_lea.vmem %s182_s6, 32  ;;  %p8560_p12 = scmp.lt.s32.totalorder %s182_s6, %s182_s6 }
  0x4c   :  { %p8556_p11 = scmp.ne.s32.totalorder %s182_s6, %s8555_s10  ;;  %p8561_p13 = scmp.lt.s32.totalorder %s8555_s10, %s8555_s10 }
  0x4e   :  { %p8562_p0 = por %p8561_p13, %p8560_p12 }
  0x50   :  { %p8563_p1 = pnand %p8562_p0, %p8556_p11 }
  0x52   :  { %8566 = shalt.err (!%p8563_p1)
}
  0x53   :  { %187 = dma.hbm_to_vmem [thread:$0]  %s9885_s14, 32, %s182_s6, [#allocation21], %s8809_s27, %s8809_s27, %s8810_s4  }
  0x54   :  { %s8815_s1 = smov [#allocation23]   ;;  %s8816_s8 = smov [#allocation2]  }
  0x55   :  { %s207_s30 = sshll.u32 %s8815_s1, 4  ;;  %s45_s28 = sshll.u32 %s8816_s8, 4  ;;  %s208_s30 = int_to_ptr.vmem [resolvable:$true] %s207_s30  ;;  %s46_s28 = int_to_ptr.vmem [resolvable:$true] %s45_s28 }
  0x56   :  { %s8575_s12 = scalar_lea.vmem %s208_s30, 32  ;;  %p8580_p3 = scmp.lt.s32.totalorder %s208_s30, %s208_s30 }
  0x57   :  { %p8576_p2 = scmp.ne.s32.totalorder %s208_s30, %s8575_s12  ;;  %p8581_p4 = scmp.lt.s32.totalorder %s8575_s12, %s8575_s12 }
  0x59   :  { %p8582_p5 = por %p8581_p4, %p8580_p3 }
  0x5b   :  { %p8583_p6 = pnand %p8582_p5, %p8576_p2 }
  0x5d   :  { %8586 = shalt.err (!%p8583_p6)
}
  0x5e   :  { %213 = dma.hbm_to_vmem [thread:$0]  %s9888_s17, 32, %s208_s30, [#allocation24], %s8809_s27, %s8809_s27, %s8810_s4  }
  0x5f   :  { %s8595_s14 = scalar_lea.vmem %s46_s28, 256  ;;  %p8600_p8 = scmp.lt.s32.totalorder %s46_s28, %s46_s28 }
  0x60   :  { %p8596_p7 = scmp.ne.s32.totalorder %s46_s28, %s8595_s14  ;;  %p8601_p9 = scmp.lt.s32.totalorder %s8595_s14, %s8595_s14 }
  0x62   :  { %p8602_p10 = por %p8601_p9, %p8600_p8 }
  0x64   :  { %p8603_p11 = pnand %p8602_p10, %p8596_p7 }
  0x66   :  { %8606 = shalt.err (!%p8603_p11)
}
  0x67   :  { %s8817_s0 = smov 128   ;;  %s8818_s6 = smov 8  }
  0x68   :  { %s9913_s3 = sld [smem:[#allocation39_spill]]  ;;  %s8819_s10 = smov [#allocation7]  }
  0x69   :  { %s67_s2 = sshll.u32 %s8819_s10, 4  ;;  %s8820_s26 = smov [#allocation10]   ;;  %s68_s2 = int_to_ptr.vmem [resolvable:$true] %s67_s2 }
  0x6a   :  { %s95_s17 = sshll.u32 %s8820_s26, 4  ;;  %s8615_s1 = scalar_lea.vmem %s68_s2, 256  ;;  %s96_s17 = int_to_ptr.vmem [resolvable:$true] %s95_s17 }
  0x6b   :  { %p8616_p12 = scmp.ne.s32.totalorder %s68_s2, %s8615_s1  ;;  %p8620_p13 = scmp.lt.s32.totalorder %s68_s2, %s68_s2 }
  0x6c   :  { %p8621_p0 = scmp.lt.s32.totalorder %s8615_s1, %s8615_s1 }
  0x6e   :  { %51 = dma.hbm_to_vmem [thread:$0]  %s9913_s3, 256, %s46_s28, [#allocation3], %s8817_s0, %s8817_s0, %s8818_s6  }
  0x6f   :  { %p8622_p1 = por %p8621_p0, %p8620_p13 }
  0x71   :  { %p8623_p2 = pnand %p8622_p1, %p8616_p12 }
  0x73   :  { %8626 = shalt.err (!%p8623_p2)
}
  0x74   :  { %s9914_s12 = sld [smem:[#allocation41_spill]]  ;;  %s8635_s28 = scalar_lea.vmem %s96_s17, 32 }
  0x75   :  { %p8636_p3 = scmp.ne.s32.totalorder %s96_s17, %s8635_s28  ;;  %p8640_p4 = scmp.lt.s32.totalorder %s96_s17, %s96_s17 }
  0x76   :  { %p8641_p5 = scmp.lt.s32.totalorder %s8635_s28, %s8635_s28 }
  0x78   :  { %p8642_p6 = por %p8641_p5, %p8640_p4 }
  0x7a   :  { %73 = dma.hbm_to_vmem [thread:$0]  %s9914_s12, 256, %s68_s2, [#allocation6], %s8817_s0, %s8817_s0, %s8818_s6  }
  0x7b   :  { %p8643_p7 = pnand %p8642_p6, %p8636_p3 }
  0x7d   :  { %8646 = shalt.err (!%p8643_p7)
}
  0x7e   :  { %s9915_s14 = sld [smem:[#allocation45_spill]]  ;;  %s8821_s29 = smov [#allocation13]  }
  0x7f   :  { %s121_s7 = sshll.u32 %s8821_s29, 4  ;;  %s8822_s3 = smov [#allocation16]   ;;  %s122_s7 = int_to_ptr.vmem [resolvable:$true] %s121_s7 }
  0x80   :  { %s145_s10 = sshll.u32 %s8822_s3, 4  ;;  %s8655_s2 = scalar_lea.vmem %s122_s7, 1024  ;;  %s146_s10 = int_to_ptr.vmem [resolvable:$true] %s145_s10 }
  0x81   :  { %p8656_p8 = scmp.ne.s32.totalorder %s122_s7, %s8655_s2  ;;  %p8660_p9 = scmp.lt.s32.totalorder %s122_s7, %s122_s7 }
  0x82   :  { %p8661_p10 = scmp.lt.s32.totalorder %s8655_s2, %s8655_s2 }
  0x84   :  { %101 = dma.hbm_to_vmem [thread:$0]  %s9915_s14, 32, %s96_s17, [#allocation9], %s8809_s27, %s8809_s27, %s8810_s4  }
  0x85   :  { %p8662_p11 = por %p8661_p10, %p8660_p9 }
  0x87   :  { %p8663_p12 = pnand %p8662_p11, %p8656_p8 }
  0x89   :  { %8666 = shalt.err (!%p8663_p12)
}
  0x8a   :  { %s9916_s30 = sld [smem:[#allocation48_spill]]  ;;  %s8675_s17 = scalar_lea.vmem %s146_s10, 1024 }
  0x8b   :  { %p8676_p13 = scmp.ne.s32.totalorder %s146_s10, %s8675_s17  ;;  %p8680_p0 = scmp.lt.s32.totalorder %s146_s10, %s146_s10 }
  0x8c   :  { %p8681_p1 = scmp.lt.s32.totalorder %s8675_s17, %s8675_s17 }
  0x8e   :  { %p8682_p2 = por %p8681_p1, %p8680_p0 }
  0x90   :  { %127 = dma.hbm_to_vmem [thread:$0]  %s9916_s30, 1024, %s122_s7, [#allocation12], %s8817_s0, %s8817_s0, %s8818_s6  }
  0x91   :  { %p8683_p3 = pnand %p8682_p2, %p8676_p13 }
  0x93   :  { %8686 = shalt.err (!%p8683_p3)
}
  0x94   :  { %151 = dma.hbm_to_vmem [thread:$0]  %s9882_s11, 1024, %s146_s10, [#allocation15], %s8817_s0, %s8817_s0, %s8818_s6  }
  0x95   :  { %s8823_s28 = smov [#allocation19]   ;;  %s8824_s5 = smov [#allocation22]  }
  0x96   :  { %s169_s9 = sshll.u32 %s8823_s28, 4  ;;  %s195_s14 = sshll.u32 %s8824_s5, 4  ;;  %s170_s9 = int_to_ptr.vmem [resolvable:$true] %s169_s9  ;;  %s196_s14 = int_to_ptr.vmem [resolvable:$true] %s195_s14 }
  0x97   :  { %s8695_s29 = scalar_lea.vmem %s170_s9, 1024  ;;  %p8700_p5 = scmp.lt.s32.totalorder %s170_s9, %s170_s9 }
  0x98   :  { %p8696_p4 = scmp.ne.s32.totalorder %s170_s9, %s8695_s29  ;;  %p8701_p6 = scmp.lt.s32.totalorder %s8695_s29, %s8695_s29 }
  0x9a   :  { %p8702_p7 = por %p8701_p6, %p8700_p5 }
  0x9c   :  { %p8703_p8 = pnand %p8702_p7, %p8696_p4 }
  0x9e   :  { %8706 = shalt.err (!%p8703_p8)
}
  0x9f   :  { %175 = dma.hbm_to_vmem [thread:$0]  %s9884_s13, 1024, %s170_s9, [#allocation18], %s8817_s0, %s8817_s0, %s8818_s6  }
  0xa0   :  { %s8715_s11 = scalar_lea.vmem %s196_s14, 32  ;;  %p8720_p10 = scmp.lt.s32.totalorder %s196_s14, %s196_s14 }
  0xa1   :  { %p8716_p9 = scmp.ne.s32.totalorder %s196_s14, %s8715_s11  ;;  %p8721_p11 = scmp.lt.s32.totalorder %s8715_s11, %s8715_s11 }
  0xa3   :  { %p8722_p12 = por %p8721_p11, %p8720_p10 }
  0xa5   :  { %p8723_p13 = pnand %p8722_p12, %p8716_p9 }
  0xa7   :  { %8726 = shalt.err (!%p8723_p13)
}
  0xa8   :  { %201 = dma.hbm_to_vmem [thread:$0]  %s9887_s16, 32, %s196_s14, [#allocation21], %s8809_s27, %s8809_s27, %s8810_s4  }
  0xa9   :  { %s8825_s26 = smov [#allocation25]   ;;  %s8826_s30 = smov [#allocation26]  }
  0xaa   :  { %s219_s1 = sshll.u32 %s8825_s26, 4  ;;  %s231_s17 = sshll.u32 %s8826_s30, 4  ;;  %s220_s1 = int_to_ptr.vmem [resolvable:$true] %s219_s1  ;;  %s232_s17 = int_to_ptr.vmem [resolvable:$true] %s231_s17 }
  0xab   :  { %s8735_s13 = scalar_lea.vmem %s220_s1, 32  ;;  %p8740_p1 = scmp.lt.s32.totalorder %s220_s1, %s220_s1 }
  0xac   :  { %p8736_p0 = scmp.ne.s32.totalorder %s220_s1, %s8735_s13  ;;  %p8741_p2 = scmp.lt.s32.totalorder %s8735_s13, %s8735_s13 }
  0xae   :  { %p8742_p3 = por %p8741_p2, %p8740_p1 }
  0xb0   :  { %p8743_p4 = pnand %p8742_p3, %p8736_p0 }
  0xb2   :  { %8746 = shalt.err (!%p8743_p4)
}
  0xb3   :  { %225 = dma.hbm_to_vmem [thread:$0]  %s9889_s18, 32, %s220_s1, [#allocation24], %s8809_s27, %s8809_s27, %s8810_s4  }
  0xb4   :  { %s8755_s16 = scalar_lea.vmem %s232_s17, 32  ;;  %p8760_p6 = scmp.lt.s32.totalorder %s232_s17, %s232_s17 }
  0xb5   :  { %p8756_p5 = scmp.ne.s32.totalorder %s232_s17, %s8755_s16  ;;  %p8761_p7 = scmp.lt.s32.totalorder %s8755_s16, %s8755_s16 }
  0xb7   :  { %p8762_p8 = por %p8761_p7, %p8760_p6 }
  0xb9   :  { %p8763_p9 = pnand %p8762_p8, %p8756_p5 }
  0xbb   :  { %8766 = shalt.err (!%p8763_p9)
}
  0xbc   :  { %237 = dma.hbm_to_vmem [thread:$0]  %s9890_s19, 32, %s232_s17, [#allocation27], %s8809_s27, %s8809_s27, %s8810_s4  }
  0xbd   :  { %8787 = dma.done.wait [#allocation3], 256  }
  0xbe   :  { %8788 = vsyncadd [#allocation3], 4294967040 }
  0xbf   :  { %8789 = dma.done.wait [#allocation6], 384  }
  0xc0   :  { %8790 = vsyncadd [#allocation6], 4294966912 }
  0xc1   :  { %8791 = dma.done.wait [#allocation9], 64  }
  0xc2   :  { %8792 = vsyncadd [#allocation9], 4294967232 }
  0xc3   :  { %8793 = dma.done.wait [#allocation12], 1056  }
  0xc4   :  { %8794 = vsyncadd [#allocation12], 4294966240 }
  0xc5   :  { %8795 = dma.done.wait [#allocation15], 1056  }
  0xc6   :  { %8796 = vsyncadd [#allocation15], 4294966240 }
  0xc7   :  { %8797 = dma.done.wait [#allocation18], 1056  }
  0xc8   :  { %8798 = vsyncadd [#allocation18], 4294966240 }
  0xc9   :  { %8799 = dma.done.wait [#allocation21], 64  }
  0xca   :  { %8800 = vsyncadd [#allocation21], 4294967232 }
  0xcb   :  { %8801 = dma.done.wait [#allocation24], 64  }
  0xcc   :  { %8802 = vsyncadd [#allocation24], 4294967232 }
  0xcd   :  { %8803 = dma.done.wait [#allocation27], 32  }
  0xce   :  { %8804 = vsyncadd [#allocation27], 4294967264  ;;  %s9917_s27 = sld [smem:[#allocation42_spill]]  ;;  %v296_v2 = vld [vmem:[#allocation2] sm:$0xff]  ;;  %v297_v4 = vld [vmem:[#allocation2 + $0x8] sm:$0xff]  ;;  %vm314_vm0 = vcmask 261120  }
  0xcf   :  { %v298_v5 = vld [vmem:[#allocation5] sm:$0xff]  ;;  %v8827_v9 = vmov 0.0   ;;  %vm8828_vm1 = vmmov 0   ;;  %v7304_v11 = vld [vmem:[#allocation8] ss:$0 sm:$0xff]  ;;  %s8829_s11 = smov 96  }
  0xd0   :  { %v9073_v6 = vadd.f32 %v298_v5, %v296_v2  ;;  %v9078_v8 = vadd.f32 %v298_v5, %v297_v4  ;;  %7773 = vmatprep.subr.mxu1 %v8827_v9  ;;  %7775 = vmatprep.mubr.msk.f32.mxu1 %vm8828_vm1, %v8827_v9  ;;  %vm403_vm2 = vcmask 64512   ;;  %s8830_s10 = smov 64   ;;  %s8831_s2 = smov 88   ;;  %vm2388_vm3 = vcmask 80896  }
  0xd1   :  { %s8832_s26 = smov 120   ;;  %s8833_s1 = smov 56   ;;  %vm2422_vm4 = vcmask 1041408   ;;  %vm3601_vm5 = vcmask 523264  }
  0xd2   :  { %7770 = vmatprep.mubr.msk.f32.mxu0 %vm314_vm0, %v9073_v6  ;;  %s8834_s30 = smov 112   ;;  %s8835_s17 = smov 80  }
  0xd3   :  { %s9918_s12 = sld [smem:[#allocation44_spill]]  ;;  %s8836_s9 = smov 48  }
  0xd4   :  { %v306_v0 = vld [vmem:[%s9917_s27 + $0x18] sm:$0xff]  ;;  %v305_v1 = vld [vmem:[%s9917_s27 + $0x10] sm:$0xff]  ;;  %v304_v3 = vld [vmem:[%s9917_s27 + $0x8] sm:$0xff]  ;;  %s8837_s18 = smov 72   ;;  %s8838_s19 = smov 104  }
  0xd5   :  { %7762 = vmatprep.subr.mxu0 %v306_v0  ;;  %v303_v7 = vld [vmem:[%s9917_s27] sm:$0xff]  ;;  %s8839_s14 = smov 40   ;;  %s9919_s8 = sld [smem:[#allocation46_spill]] }
  0xd6   :  { %7763 = vmatpush3.msra.mxu0 %v306_v0 }
  0xd7   :  { %7764 = vmatprep.subr.mxu0 %v305_v1 }
  0xd8   :  { %7765 = vmatpush3.msra.mxu0 %v305_v1 }
  0xd9   :  { %7766 = vmatprep.subr.mxu0 %v304_v3 }
  0xda   :  { %7767 = vmatpush3.msra.mxu0 %v304_v3 }
  0xdb   :  { %7768 = vmatprep.subr.mxu0 %v303_v7 }
  0xdc   :  { %7769 = vmatpush3.msra.mxu0 %v303_v7  ;;  %v396_v7 = vld [vmem:[%s9918_s12] sm:$0xff] }
  0xdd   :  { %7771 = vmatmul.mubr.msk.f32.vlgmr.msra.gmra.mxu0 %vm314_vm0, %v9078_v8  ;;  %7783 = vmatprep.subr.mxu0 %v8827_v9 }
  0xde   :  { %7785 = vmatprep.mubr.msk.f32.mxu0 %vm8828_vm1, %v8827_v9 }
 0x19d   :  { %v7772_v10 = vpop.f32.mrf.mxu0 }
 0x19e   :  { %v9094_v14 = vadd.f32 %v7772_v10, %v7304_v11 }
 0x19f   :  { %v387_v12 = vpop.f32.mrf.mxu0 }
 0x1a0   :  { %v9090_v13 = vadd.f32 %v7304_v11, %v387_v12 }
 0x1a2   :  { %401 = vrot.lane.b32.xlu0 %v9090_v13, %s8829_s11 }
 0x1a6   :  { %479 = vrot.lane.b32.xlu0 %v9094_v14, %s8829_s11 }
 0x214   :  { %v402_v15 = vpop.permute.xlu0 %401 }
 0x215   :  { %7774 = vmatpush3.xpose.msk.msra.mxu1 %vm403_vm2, %v402_v15 }
 0x216   :  { %7778 = vmatprep.subr.mxu1 %v8827_v9 }
 0x218   :  { %7776 = vmatmul.mubr.msk.f32.vlgmr.msra.gmra.mxu1 %vm403_vm2, %v9090_v13  ;;  %v480_v16 = vpop.permute.xlu0 %479 }
 0x219   :  { %7779 = vmatpush3.xpose.msk.msra.mxu1 %vm403_vm2, %v480_v16  ;;  %7780 = vmatprep.mubr.msk.f32.mxu1 %vm8828_vm1, %v8827_v9 }
 0x21a   :  { %7788 = vmatprep.subr.mxu1 %v8827_v9 }
 0x21c   :  { %7781 = vmatmul.mubr.msk.f32.vlgmr.msra.gmra.mxu1 %vm403_vm2, %v9094_v14 }
 0x21d   :  { %7790 = vmatprep.mubr.msk.f32.mxu1 %vm8828_vm1, %v8827_v9 }
 0x2d8   :  { %v474_v17 = vpop.f32.mrf.mxu1 }
 0x2d9   :  { %v555_v18 = vmul.f32 0.35355338, %v474_v17 }
 0x2da   :  { %v7777_v19 = vpop.f32.mrf.mxu1 }
 0x2db   :  { %v557_v20 = vsel %vm403_vm2, %v555_v18, -inf }
 0x2dc   :  { %558 = vmax.xlane.f32.xlu1 %v557_v20  ;;  %v551_v21 = vpop.f32.mrf.mxu1 }
 0x2dd   :  { %v556_v22 = vmul.f32 0.35355338, %v551_v21 }
 0x2de   :  { %v7782_v23 = vpop.f32.mrf.mxu1 }
 0x2df   :  { %v560_v24 = vsel %vm403_vm2, %v556_v22, -inf }
 0x2e0   :  { %561 = vmax.xlane.f32.xlu1 %v560_v24 }
 0x2f1   :  { %579 = vrot.lane.b32.xlu1 %v9090_v13, %s8830_s10 }
 0x2f5   :  { %655 = vrot.lane.b32.xlu1 %v9094_v14, %s8830_s10 }
 0x2f9   :  { %733 = vrot.lane.b32.xlu1 %v9090_v13, %s8831_s2 }
 0x2fd   :  { %811 = vrot.lane.b32.xlu1 %v9094_v14, %s8831_s2 }
 0x365   :  { %v559_v25 = vpop.xlane.xlu1 %558 }
 0x366   :  { %v563_v26 = vsub.f32 %v555_v18, %v559_v25 }
 0x368   :  { %v565_v27 = vmul.f32 1.442695, %v563_v26 }
 0x369   :  { %v562_v28 = vpop.xlane.xlu1 %561 }
 0x36a   :  { %8285 = vpow2.f32 %v565_v27  ;;  %v564_v29 = vsub.f32 %v556_v22, %v562_v28  ;;  %v397_v22 = vld [vmem:[%s9918_s12 + $0x8] sm:$0xff] }
 0x36c   :  { %v567_v30 = vmul.f32 1.442695, %v564_v29 }
 0x36d   :  { %v580_v31 = vpop.permute.xlu1 %579 }
 0x36e   :  { %8287 = vpow2.f32 %v567_v30  ;;  %7784 = vmatpush3.msra.mxu0 %v580_v31 }
 0x36f   :  { %7793 = vmatprep.subr.mxu0 %v8827_v9 }
 0x371   :  { %v656_v32 = vpop.permute.xlu1 %655 }
 0x372   :  { %7789 = vmatpush3.msra.mxu1 %v656_v32 }
 0x373   :  { %7798 = vmatprep.subr.mxu1 %v8827_v9 }
 0x375   :  { %v734_v37 = vpop.permute.xlu1 %733 }
 0x377   :  { %v8286_v33 = vpop.eup %8285 }
 0x378   :  { %v569_v34 = vsel %vm403_vm2, %v8286_v33, 0.0 }
 0x379   :  { %570 = vadd.xlane.f32.xlu0 %v569_v34  ;;  %v812_v38 = vpop.permute.xlu1 %811 }
 0x37b   :  { %v8288_v35 = vpop.eup %8287 }
 0x37c   :  { %v572_v36 = vsel %vm403_vm2, %v8288_v35, 0.0 }
 0x37d   :  { %573 = vadd.xlane.f32.xlu1 %v572_v36 }
 0x38e   :  { %809 = vrot.lane.b32.xlu1 %v9094_v14, %s8832_s26 }
 0x38f   :  { %731 = vrot.lane.b32.xlu0 %v9090_v13, %s8832_s26 }
 0x402   :  { %v571_v39 = vpop.xlane.xlu0 %570 }
 0x403   :  { %8289 = vrcp.f32 %v571_v39 }
 0x406   :  { %v574_v40 = vpop.xlane.xlu1 %573  ;;  %v732_v45 = vpop.permute.xlu0 %731 }
 0x407   :  { %8291 = vrcp.f32 %v574_v40 }
 0x40a   :  { %v810_v46 = vpop.permute.xlu1 %809 }
 0x410   :  { %v8290_v41 = vpop.eup %8289 }
 0x411   :  { %v577_v42 = vmul.f32 %v8290_v41, %v8286_v33 }
 0x413   :  { %7786 = vmatmul.mubr.msk.f32.vlgmr.msra.gmra.mxu0 %vm403_vm2, %v577_v42 }
 0x414   :  { %v8292_v43 = vpop.eup %8291  ;;  %7794 = vmatpush3.xpose.msk.msra.mxu0 %vm403_vm2, %v734_v37  ;;  %7795 = vmatprep.mubr.msk.f32.mxu0 %vm8828_vm1, %v8827_v9 }
 0x415   :  { %v578_v44 = vmul.f32 %v8292_v43, %v8288_v35  ;;  %7803 = vmatprep.subr.mxu0 %v8827_v9 }
 0x417   :  { %7791 = vmatmul.mubr.msk.f32.vlgmr.msra.gmra.mxu1 %vm403_vm2, %v578_v44  ;;  %7796 = vmatmul.mubr.msk.f32.vlgmr.msra.gmra.mxu0 %vm403_vm2, %v732_v45 }
 0x418   :  { %7799 = vmatpush3.xpose.msk.msra.mxu1 %vm403_vm2, %v812_v38  ;;  %7800 = vmatprep.mubr.msk.f32.mxu1 %vm8828_vm1, %v8827_v9 }
 0x419   :  { %7808 = vmatprep.subr.mxu1 %v8827_v9  ;;  %7805 = vmatprep.mubr.msk.f32.mxu0 %vm8828_vm1, %v8827_v9 }
 0x41b   :  { %7801 = vmatmul.mubr.msk.f32.vlgmr.msra.gmra.mxu1 %vm403_vm2, %v810_v46 }
 0x41c   :  { %7810 = vmatprep.mubr.msk.f32.mxu1 %vm8828_vm1, %v8827_v9 }
 0x4d3   :  { %v651_v47 = vpop.f32.mrf.mxu0 }
 0x4d5   :  { %v7787_v48 = vpop.f32.mrf.mxu0 }
 0x4d7   :  { %v727_v49 = vpop.f32.mrf.mxu1  ;;  %v805_v50 = vpop.f32.mrf.mxu0 }
 0x4d8   :  { %v887_v51 = vmul.f32 0.35355338, %v805_v50 }
 0x4d9   :  { %v7792_v52 = vpop.f32.mrf.mxu1  ;;  %v7797_v53 = vpop.f32.mrf.mxu0 }
 0x4da   :  { %v889_v54 = vsel %vm403_vm2, %v887_v51, -inf }
 0x4db   :  { %v883_v55 = vpop.f32.mrf.mxu1  ;;  %890 = vmax.xlane.f32.xlu1 %v889_v54 }
 0x4dc   :  { %v888_v56 = vmul.f32 0.35355338, %v883_v55 }
 0x4dd   :  { %v7802_v57 = vpop.f32.mrf.mxu1 }
 0x4de   :  { %v892_v58 = vsel %vm403_vm2, %v888_v56, -inf }
 0x4df   :  { %893 = vmax.xlane.f32.xlu0 %v892_v58 }
 0x4f5   :  { %987 = vrot.lane.b32.xlu0 %v9094_v14, %s8833_s1 }
 0x4f9   :  { %1225 = vrot.lane.b32.xlu0 %v9090_v13, %s8834_s30 }
 0x564   :  { %v891_v59 = vpop.xlane.xlu1 %890 }
 0x565   :  { %v895_v60 = vsub.f32 %v887_v51, %v891_v59 }
 0x567   :  { %v897_v61 = vmul.f32 1.442695, %v895_v60  ;;  %v398_v60 = vld [vmem:[%s9918_s12 + $0x10] sm:$0xff] }
 0x568   :  { %v894_v62 = vpop.xlane.xlu0 %893 }
 0x569   :  { %8293 = vpow2.f32 %v897_v61  ;;  %v896_v63 = vsub.f32 %v888_v56, %v894_v62 }
 0x56b   :  { %v899_v0 = vmul.f32 1.442695, %v896_v63 }
 0x56c   :  { %v988_v1 = vpop.permute.xlu0 %987 }
 0x56d   :  { %8295 = vpow2.f32 %v899_v0  ;;  %7809 = vmatpush3.msra.mxu1 %v988_v1 }
 0x56e   :  { %7818 = vmatprep.subr.mxu1 %v396_v7 }
 0x570   :  { %v1226_v27 = vpop.permute.xlu0 %1225 }
 0x576   :  { %v8294_v2 = vpop.eup %8293 }
 0x577   :  { %v901_v3 = vsel %vm403_vm2, %v8294_v2, 0.0 }
 0x578   :  { %902 = vadd.xlane.f32.xlu1 %v901_v3 }
 0x57a   :  { %v8296_v4 = vpop.eup %8295 }
 0x57b   :  { %v904_v5 = vsel %vm403_vm2, %v8296_v4, 0.0 }
 0x57c   :  { %905 = vadd.xlane.f32.xlu1 %v904_v5 }
 0x58d   :  { %911 = vrot.lane.b32.xlu1 %v9090_v13, %s8833_s1 }
 0x591   :  { %1227 = vrot.lane.b32.xlu1 %v9090_v13, %s8835_s17 }
 0x595   :  { %1305 = vrot.lane.b32.xlu1 %v9094_v14, %s8835_s17 }
 0x599   :  { %1303 = vrot.lane.b32.xlu1 %v9094_v14, %s8834_s30 }
 0x601   :  { %v903_v10 = vpop.xlane.xlu1 %902 }
 0x602   :  { %8297 = vrcp.f32 %v903_v10 }
 0x605   :  { %v906_v11 = vpop.xlane.xlu1 %905 }
 0x606   :  { %8299 = vrcp.f32 %v906_v11 }
 0x609   :  { %v912_v12 = vpop.permute.xlu1 %911 }
 0x60a   :  { %7804 = vmatpush3.msra.mxu0 %v912_v12 }
 0x60b   :  { %7813 = vmatprep.subr.mxu0 %v397_v22 }
 0x60d   :  { %v1228_v17 = vpop.permute.xlu1 %1227 }
 0x60f   :  { %v8298_v15 = vpop.eup %8297 }
 0x610   :  { %v909_v16 = vmul.f32 %v8298_v15, %v8294_v2 }
 0x611   :  { %v1306_v20 = vpop.permute.xlu1 %1305 }
 0x612   :  { %7806 = vmatmul.mubr.msk.f32.vlgmr.msra.gmra.mxu0 %vm403_vm2, %v909_v16 }
 0x613   :  { %v8300_v18 = vpop.eup %8299  ;;  %7814 = vmatpush3.msra.mxu0 %v397_v22 }
 0x614   :  { %v910_v19 = vmul.f32 %v8300_v18, %v8296_v4  ;;  %7823 = vmatprep.subr.mxu0 %v8827_v9 }
 0x615   :  { %v1304_v21 = vpop.permute.xlu1 %1303 }
 0x616   :  { %7811 = vmatmul.mubr.msk.f32.vlgmr.msra.gmra.mxu1 %vm403_vm2, %v910_v19 }
 0x617   :  { %7820 = vmatprep.mubr.msk.f32.mxu1 %vm403_vm2, %v651_v47  ;;  %7819 = vmatpush3.msra.mxu1 %v396_v7 }
 0x618   :  { %7828 = vmatprep.subr.mxu1 %v8827_v9 }
 0x61a   :  { %7821 = vmatmul.mubr.msk.f32.vlgmr.msra.gmra.mxu1 %vm403_vm2, %v727_v49 }
 0x61b   :  { %7829 = vmatpush3.xpose.msk.msra.mxu1 %vm403_vm2, %v1306_v20  ;;  %7830 = vmatprep.mubr.msk.f32.mxu1 %vm8828_vm1, %v8827_v9 }
 0x61c   :  { %7838 = vmatprep.subr.mxu1 %v8827_v9 }
 0x61e   :  { %7831 = vmatmul.mubr.msk.f32.vlgmr.msra.gmra.mxu1 %vm403_vm2, %v1304_v21 }
 0x61f   :  { %7840 = vmatprep.mubr.msk.f32.mxu1 %vm8828_vm1, %v8827_v9 }
 0x6d2   :  { %v983_v23 = vpop.f32.mrf.mxu0 }
 0x6d3   :  { %7815 = vmatprep.mubr.msk.f32.mxu0 %vm403_vm2, %v983_v23 }
 0x6d4   :  { %v7807_v24 = vpop.f32.mrf.mxu0 }
 0x6d6   :  { %v1059_v25 = vpop.f32.mrf.mxu1 }
 0x6d7   :  { %7816 = vmatmul.mubr.msk.f32.vlgmr.msra.gmra.mxu0 %vm403_vm2, %v1059_v25 }
 0x6d8   :  { %7824 = vmatpush3.xpose.msk.msra.mxu0 %vm403_vm2, %v1228_v17  ;;  %v7812_v26 = vpop.f32.mrf.mxu1  ;;  %7825 = vmatprep.mubr.msk.f32.mxu0 %vm8828_vm1, %v8827_v9 }
 0x6d9   :  { %7833 = vmatprep.subr.mxu0 %v8827_v9 }
 0x6da   :  { %v9185_v28 = vpop.f32.mrf.mxu1 }
 0x6db   :  { %7826 = vmatmul.mubr.msk.f32.vlgmr.msra.gmra.mxu0 %vm403_vm2, %v1226_v27 }
 0x6dc   :  { %v9188_v29 = vpop.f32.mrf.mxu1  ;;  %7835 = vmatprep.mubr.msk.f32.mxu0 %vm8828_vm1, %v8827_v9 }
 0x6de   :  { %v1377_v30 = vpop.f32.mrf.mxu1 }
 0x6df   :  { %v1382_v31 = vmul.f32 0.35355338, %v1377_v30 }
 0x6e0   :  { %v7832_v32 = vpop.f32.mrf.mxu1 }
 0x6e1   :  { %v1386_v33 = vsel %vm403_vm2, %v1382_v31, -inf }
 0x6e2   :  { %1387 = vmax.xlane.f32.xlu1 %v1386_v33 }
 0x6f3   :  { %1405 = vrot.lane.b32.xlu1 %v9090_v13, %s8836_s9 }
 0x6f7   :  { %1642 = vrot.lane.b32.xlu1 %v9090_v13, %s8837_s18 }
 0x6fb   :  { %1720 = vrot.lane.b32.xlu1 %v9094_v14, %s8837_s18 }
 0x6ff   :  { %1718 = vrot.lane.b32.xlu1 %v9094_v14, %s8838_s19 }
 0x76b   :  { %v1388_v34 = vpop.xlane.xlu1 %1387 }
 0x76c   :  { %v1390_v36 = vsub.f32 %v1382_v31, %v1388_v34 }
 0x76e   :  { %v1393_v37 = vmul.f32 1.442695, %v1390_v36 }
 0x76f   :  { %v1406_v35 = vpop.permute.xlu1 %1405 }
 0x770   :  { %7834 = vmatpush3.msra.mxu0 %v1406_v35  ;;  %8301 = vpow2.f32 %v1393_v37 }
 0x771   :  { %7843 = vmatprep.subr.mxu0 %v398_v60 }
 0x773   :  { %v1643_v56 = vpop.permute.xlu1 %1642 }
 0x777   :  { %v1721_v3 = vpop.permute.xlu1 %1720 }
 0x77b   :  { %v1719_v7 = vpop.permute.xlu1 %1718 }
 0x77d   :  { %v8302_v44 = vpop.eup %8301 }
 0x77e   :  { %v1398_v45 = vsel %vm403_vm2, %v8302_v44, 0.0 }
 0x797   :  { %v9201_v38 = vpop.f32.mrf.mxu0 }
 0x798   :  { %v1222_v17 = vadd.f32 %v9185_v28, %v9201_v38 }
 0x799   :  { %v9203_v39 = vpop.f32.mrf.mxu0 }
 0x79a   :  { %v1217_v19 = vadd.f32 %v9188_v29, %v9203_v39 }
 0x79b   :  { %v1299_v40 = vpop.f32.mrf.mxu0 }
 0x79c   :  { %v1381_v41 = vmul.f32 0.35355338, %v1299_v40 }
 0x79d   :  { %v7827_v42 = vpop.f32.mrf.mxu0 }
 0x79e   :  { %v1383_v43 = vsel %vm403_vm2, %v1381_v41, -inf }
 0x79f   :  { %1384 = vmax.xlane.f32.xlu0 %v1383_v43 }
 0x7a3   :  { %1399 = vadd.xlane.f32.xlu0 %v1398_v45 }
 0x828   :  { %v1385_v46 = vpop.xlane.xlu0 %1384 }
 0x829   :  { %v1389_v47 = vsub.f32 %v1381_v41, %v1385_v46 }
 0x82b   :  { %v1391_v48 = vmul.f32 1.442695, %v1389_v47 }
 0x82c   :  { %v1400_v51 = vpop.xlane.xlu0 %1399 }
 0x82d   :  { %8303 = vpow2.f32 %v1391_v48 }
 0x82e   :  { %8305 = vrcp.f32 %v1400_v51 }
 0x83a   :  { %v8304_v49 = vpop.eup %8303 }
 0x83b   :  { %v1395_v50 = vsel %vm403_vm2, %v8304_v49, 0.0  ;;  %v8306_v53 = vpop.eup %8305 }
 0x83c   :  { %1396 = vadd.xlane.f32.xlu0 %v1395_v50  ;;  %v1404_v55 = vmul.f32 %v8306_v53, %v8302_v44  ;;  %v7339_v44 = vld [vmem:[#allocation10] ss:$0 sm:$0xff] }
 0x852   :  { %1481 = vrot.lane.b32.xlu0 %v9094_v14, %s8836_s9 }
 0x856   :  { %1640 = vrot.lane.b32.xlu0 %v9090_v13, %s8838_s19 }
 0x8c5   :  { %v1397_v52 = vpop.xlane.xlu0 %1396 }
 0x8c6   :  { %8307 = vrcp.f32 %v1397_v52 }
 0x8c9   :  { %v1482_v54 = vpop.permute.xlu0 %1481 }
 0x8ca   :  { %7839 = vmatpush3.msra.mxu1 %v1482_v54 }
 0x8cb   :  { %7841 = vmatmul.mubr.msk.f32.vlgmr.msra.gmra.mxu1 %vm403_vm2, %v1404_v55  ;;  %7848 = vmatprep.subr.mxu1 %v8827_v9 }
 0x8cc   :  { %7849 = vmatpush3.xpose.msk.msra.mxu1 %vm403_vm2, %v1643_v56  ;;  %7850 = vmatprep.mubr.msk.f32.mxu1 %vm8828_vm1, %v8827_v9 }
 0x8cd   :  { %v1641_v57 = vpop.permute.xlu0 %1640  ;;  %7858 = vmatprep.subr.mxu1 %v8827_v9 }
 0x8cf   :  { %7851 = vmatmul.mubr.msk.f32.vlgmr.msra.gmra.mxu1 %vm403_vm2, %v1641_v57 }
 0x8d0   :  { %7860 = vmatprep.mubr.msk.f32.mxu1 %vm8828_vm1, %v8827_v9 }
 0x8d3   :  { %v8308_v58 = vpop.eup %8307 }
 0x8d4   :  { %v1403_v59 = vmul.f32 %v8308_v58, %v8304_v49 }
 0x8d6   :  { %7836 = vmatmul.mubr.msk.f32.vlgmr.msra.gmra.mxu0 %vm403_vm2, %v1403_v59 }
 0x8d7   :  { %7844 = vmatpush3.msra.mxu0 %v398_v60 }
 0x8d8   :  { %7853 = vmatprep.subr.mxu0 %v8827_v9 }
 0x98b   :  { %v1553_v61 = vpop.f32.mrf.mxu1 }
 0x98d   :  { %v7842_v62 = vpop.f32.mrf.mxu1 }
 0x98f   :  { %v1714_v63 = vpop.f32.mrf.mxu1 }
 0x990   :  { %v1796_v0 = vmul.f32 0.35355338, %v1714_v63  ;;  %v2206_v63 = vld [vmem:[#allocation13 + $0x18] sm:$0xff] }
 0x991   :  { %v7852_v1 = vpop.f32.mrf.mxu1 }
 0x992   :  { %v1798_v2 = vsel %vm403_vm2, %v1796_v0, -inf  ;;  %v2204_v1 = vld [vmem:[#allocation13 + $0x8] sm:$0xff] }
 0x993   :  { %1799 = vmax.xlane.f32.xlu0 %v1798_v2  ;;  %v2114_v2 = vld [vmem:[%s9919_s8 + $0x18] sm:$0xff] }
 0x996   :  { %v1477_v4 = vpop.f32.mrf.mxu0 }
 0x997   :  { %7845 = vmatprep.mubr.msk.f32.mxu0 %vm403_vm2, %v1477_v4  ;;  %v2203_v4 = vld [vmem:[#allocation13] sm:$0xff] }
 0x998   :  { %v7837_v5 = vpop.f32.mrf.mxu0  ;;  %7846 = vmatmul.mubr.msk.f32.vlgmr.msra.gmra.mxu0 %vm403_vm2, %v1553_v61 }
 0x999   :  { %7854 = vmatpush3.xpose.msk.msra.mxu0 %vm403_vm2, %v1721_v3  ;;  %7855 = vmatprep.mubr.msk.f32.mxu0 %vm8828_vm1, %v8827_v9  ;;  %v2113_v3 = vld [vmem:[%s9919_s8 + $0x10] sm:$0xff]  ;;  %v2112_v5 = vld [vmem:[%s9919_s8 + $0x8] sm:$0xff] }
 0x99a   :  { %7863 = vmatprep.subr.mxu0 %v8827_v9 }
 0x99c   :  { %7856 = vmatmul.mubr.msk.f32.vlgmr.msra.gmra.mxu0 %vm403_vm2, %v1719_v7  ;;  %v302_v7 = vld [vmem:[#allocation7 + $0x8] sm:$0x3] }
 0x99d   :  { %7865 = vmatprep.mubr.msk.f32.mxu0 %vm8828_vm1, %v8827_v9 }
 0xa1c   :  { %v1800_v10 = vpop.xlane.xlu0 %1799 }
 0xa1d   :  { %v1804_v11 = vsub.f32 %v1796_v0, %v1800_v10  ;;  %v301_v0 = vld [vmem:[#allocation7] sm:$0xff]  ;;  %v2111_v10 = vld [vmem:[%s9919_s8] sm:$0xff] }
 0xa1f   :  { %v1806_v12 = vmul.f32 1.442695, %v1804_v11 }
 0xa21   :  { %8309 = vpow2.f32 %v1806_v12 }
 0xa2e   :  { %v8310_v15 = vpop.eup %8309 }
 0xa2f   :  { %v1810_v16 = vsel %vm403_vm2, %v8310_v15, 0.0 }
 0xa30   :  { %1811 = vadd.xlane.f32.xlu0 %v1810_v16 }
 0xa58   :  { %v7847_v18 = vpop.f32.mrf.mxu0 }
 0xa59   :  { %v1639_v20 = vadd.f32 %v7847_v18, %v1222_v17 }
 0xa5a   :  { %v1629_v21 = vpop.f32.mrf.mxu0 }
 0xa5b   :  { %v1638_v22 = vadd.f32 %v1629_v21, %v1217_v19 }
 0xa5c   :  { %v1792_v23 = vpop.f32.mrf.mxu0 }
 0xa5d   :  { %v1797_v24 = vmul.f32 0.35355338, %v1792_v23 }
 0xa5e   :  { %v7857_v25 = vpop.f32.mrf.mxu0 }
 0xa5f   :  { %v1801_v26 = vsel %vm403_vm2, %v1797_v24, -inf  ;;  %v7341_v25 = vld [vmem:[#allocation25] ss:$0 sm:$0xff] }
 0xa60   :  { %1802 = vmax.xlane.f32.xlu1 %v1801_v26 }
 0xa71   :  { %1820 = vrot.lane.b32.xlu1 %v9090_v13, %s8839_s14  ;;  %v399_v13 = vld [vmem:[%s9918_s12 + $0x18] sm:$0xff] }
 0xab9   :  { %v1812_v27 = vpop.xlane.xlu0 %1811 }
 0xaba   :  { %8311 = vrcp.f32 %v1812_v27 }
 0xac7   :  { %v8312_v30 = vpop.eup %8311 }
 0xac8   :  { %v1818_v33 = vmul.f32 %v8312_v30, %v8310_v15  ;;  %v7345_v30 = vld [vmem:[#allocation14] ss:$0 sm:$0xff] }
 0xae9   :  { %v1803_v28 = vpop.xlane.xlu1 %1802 }
 0xaea   :  { %v1805_v31 = vsub.f32 %v1797_v24, %v1803_v28 }
 0xaec   :  { %v1808_v32 = vmul.f32 1.442695, %v1805_v31 }
 0xaed   :  { %v1821_v29 = vpop.permute.xlu1 %1820 }
 0xaee   :  { %8313 = vpow2.f32 %v1808_v32  ;;  %7859 = vmatpush3.msra.mxu1 %v1821_v29 }
 0xaef   :  { %7861 = vmatmul.mubr.msk.f32.vlgmr.msra.gmra.mxu1 %vm403_vm2, %v1818_v33  ;;  %7868 = vmatprep.subr.mxu1 %v399_v13 }
 0xaf0   :  { %7869 = vmatpush3.msra.mxu1 %v399_v13 }
 0xaf1   :  { %7884 = vmatprep.subr.mxu1 %v2206_v63 }
 0xafb   :  { %v8314_v34 = vpop.eup %8313 }
 0xafc   :  { %v1813_v35 = vsel %vm403_vm2, %v8314_v34, 0.0 }
 0xafd   :  { %1814 = vadd.xlane.f32.xlu0 %v1813_v35  ;;  %v7342_v35 = vld [vmem:[#allocation11] ss:$0 sm:$0xff] }
 0xb13   :  { %1896 = vrot.lane.b32.xlu0 %v9094_v14, %s8839_s14 }
 0xb86   :  { %v1815_v36 = vpop.xlane.xlu0 %1814 }
 0xb87   :  { %8315 = vrcp.f32 %v1815_v36 }
 0xb8a   :  { %v1897_v37 = vpop.permute.xlu0 %1896 }
 0xb8b   :  { %7864 = vmatpush3.msra.mxu0 %v1897_v37 }
 0xb8c   :  { %7873 = vmatprep.subr.mxu0 %v2114_v2 }
 0xb94   :  { %v8316_v38 = vpop.eup %8315 }
 0xb95   :  { %v1819_v39 = vmul.f32 %v8316_v38, %v8314_v34 }
 0xb97   :  { %7866 = vmatmul.mubr.msk.f32.vlgmr.msra.gmra.mxu0 %vm403_vm2, %v1819_v39 }
 0xb98   :  { %7874 = vmatpush3.msra.mxu0 %v2114_v2 }
 0xb99   :  { %7875 = vmatprep.subr.mxu0 %v2113_v3 }
 0xb9a   :  { %7876 = vmatpush3.msra.mxu0 %v2113_v3 }
 0xb9b   :  { %7877 = vmatprep.subr.mxu0 %v2112_v5 }
 0xb9c   :  { %7878 = vmatpush3.msra.mxu0 %v2112_v5 }
 0xb9d   :  { %7879 = vmatprep.subr.mxu0 %v2111_v10 }
 0xb9e   :  { %7880 = vmatpush3.msra.mxu0 %v2111_v10 }
 0xbaf   :  { %v1892_v40 = vpop.f32.mrf.mxu1 }
 0xbb0   :  { %7870 = vmatprep.mubr.msk.f32.mxu1 %vm403_vm2, %v1892_v40 }
 0xbb1   :  { %v7862_v41 = vpop.f32.mrf.mxu1 }
 0xc57   :  { %v1968_v42 = vpop.f32.mrf.mxu0 }
 0xc58   :  { %7871 = vmatmul.mubr.msk.f32.vlgmr.msra.gmra.mxu1 %vm403_vm2, %v1968_v42 }
 0xc59   :  { %v7867_v14 = vpop.f32.mrf.mxu0  ;;  %7885 = vmatpush3.msra.mxu1 %v2206_v63  ;;  %7892 = vmatprep.mubr.msk.f32.mxu1 %vm314_vm0, %v301_v0 }
 0xd18   :  { %v7872_v43 = vpop.f32.mrf.mxu1 }
 0xd19   :  { %v2054_v45 = vadd.f32 %v7872_v43, %v1639_v20  ;;  %v7340_v20 = vld [vmem:[#allocation23] ss:$0 sm:$0xff] }
 0xd1a   :  { %v2044_v46 = vpop.f32.mrf.mxu1 }
 0xd1b   :  { %v2063_v47 = vadd.f32 %v7339_v44, %v2054_v45  ;;  %v2053_v48 = vadd.f32 %v2044_v46, %v1638_v22 }
 0xd1d   :  { %v2062_v49 = vadd.f32 %v7339_v44, %v2053_v48  ;;  %v2065_v50 = vadd.f32 %v2063_v47, %v9078_v8 }
 0xd1f   :  { %v2071_v51 = vsel %vm314_vm0, %v2065_v50, 0.0  ;;  %v2064_v52 = vadd.f32 %v2062_v49, %v9073_v6  ;;  %v2205_v6 = vld [vmem:[#allocation13 + $0x10] sm:$0xff] }
 0xd20   :  { %2072 = vadd.xlane.f32.xlu0 %v2071_v51  ;;  %7886 = vmatprep.subr.mxu1 %v2205_v6 }
 0xd21   :  { %v2068_v53 = vsel %vm314_vm0, %v2064_v52, 0.0  ;;  %7887 = vmatpush3.msra.mxu1 %v2205_v6  ;;  %v2295_v6 = vld [vmem:[#allocation16] sm:$0xff] }
 0xd22   :  { %2069 = vadd.xlane.f32.xlu1 %v2068_v53  ;;  %7888 = vmatprep.subr.mxu1 %v2204_v1 }
 0xd23   :  { %7889 = vmatpush3.msra.mxu1 %v2204_v1 }
 0xd24   :  { %7890 = vmatprep.subr.mxu1 %v2203_v4 }
 0xd25   :  { %7891 = vmatpush3.msra.mxu1 %v2203_v4 }
 0xd26   :  { %7893 = vmatmul.mubr.msk.f32.vlgmr.msra.gmra.mxu1 %vm314_vm0, %v302_v7 }
 0xda9   :  { %v2073_v54 = vpop.xlane.xlu0 %2072 }
 0xdaa   :  { %v2076_v55 = vmul.f32 0.03125, %v2073_v54 }
 0xdab   :  { %v2070_v56 = vpop.xlane.xlu1 %2069 }
 0xdac   :  { %v2078_v57 = vsub.f32 %v2065_v50, %v2076_v55  ;;  %v2075_v58 = vmul.f32 0.03125, %v2070_v56 }
 0xdae   :  { %v2077_v59 = vsub.f32 %v2064_v52, %v2075_v58  ;;  %v2080_v60 = vmul.f32 %v2078_v57, %v2078_v57 }
 0xdb0   :  { %v2084_v61 = vsel %vm314_vm0, %v2080_v60, 0.0  ;;  %v2079_v62 = vmul.f32 %v2077_v59, %v2077_v59 }
 0xdb1   :  { %2085 = vadd.xlane.f32.xlu0 %v2084_v61 }
 0xdb2   :  { %v2081_v8 = vsel %vm314_vm0, %v2079_v62, 0.0 }
 0xdb3   :  { %2082 = vadd.xlane.f32.xlu1 %v2081_v8 }
 0xde6   :  { %v7894_v31 = vpop.f32.mrf.mxu1 }
 0xde7   :  { %v9282_v32 = vadd.f32 %v7894_v31, %v7345_v30 }
 0xde8   :  { %v2286_v29 = vpop.f32.mrf.mxu1 }
 0xde9   :  { %7895 = vmatprep.subr.msk.mxu0 %vm403_vm2, %v9282_v32  ;;  %v9286_v33 = vadd.f32 %v7345_v30, %v2286_v29  ;;  %v2296_v30 = vld [vmem:[#allocation16 + $0x8] sm:$0xff] }
 0xe3a   :  { %v2086_v11 = vpop.xlane.xlu0 %2085 }
 0xe3b   :  { %v2088_v12 = vmul.f32 0.03125, %v2086_v11 }
 0xe3c   :  { %v2083_v15 = vpop.xlane.xlu1 %2082 }
 0xe3d   :  { %v2090_v16 = vadd.f32 1e-05, %v2088_v12  ;;  %v2087_v17 = vmul.f32 0.03125, %v2083_v15 }
 0xe3f   :  { %8317 = vrsqrt.f32 %v2090_v16  ;;  %v2089_v18 = vadd.f32 1e-05, %v2087_v17 }
 0xe41   :  { %8319 = vrsqrt.f32 %v2089_v18 }
 0xe4c   :  { %v8318_v19 = vpop.eup %8317 }
 0xe4d   :  { %v2094_v21 = vmul.f32 %v8318_v19, %v2078_v57 }
 0xe4e   :  { %v8320_v22 = vpop.eup %8319 }
 0xe4f   :  { %v2093_v23 = vmul.f32 %v8320_v22, %v2077_v59  ;;  %v2102_v24 = vmul.f32 %v7340_v20, %v2094_v21 }
 0xe51   :  { %v2101_v26 = vmul.f32 %v7340_v20, %v2093_v23  ;;  %v9276_v28 = vadd.f32 %v7341_v25, %v2102_v24 }
 0xe53   :  { %v9274_v27 = vadd.f32 %v7341_v25, %v2101_v26 }
 0xe55   :  { %7881 = vmatprep.mubr.msk.f32.mxu0 %vm314_vm0, %v9274_v27 }
 0xe56   :  { %7882 = vmatmul.mubr.msk.f32.vlgmr.msra.gmra.mxu0 %vm314_vm0, %v9276_v28 }
 0xe57   :  { %7896 = vmatpush3.xpose.msk.msra.mxu0 %vm403_vm2, %v9282_v32 }
 0xe58   :  { %7897 = vmatprep.subr.msk.mxu0 %vm403_vm2, %v9286_v33 }
 0xe5b   :  { %7898 = vmatpush3.xpose.msk.msra.mxu0 %vm403_vm2, %v9286_v33 }
 0xf16   :  { %v7883_v34 = vpop.f32.mrf.mxu0 }
 0xf17   :  { %v9296_v37 = vadd.f32 %v7883_v34, %v7342_v35 }
 0xf18   :  { %v2194_v13 = vpop.f32.mrf.mxu0 }
 0xf19   :  { %v9294_v36 = vadd.f32 %v7342_v35, %v2194_v13 }
 0xf1b   :  { %7899 = vmatprep.mubr.msk.f32.mxu0 %vm403_vm2, %v9294_v36 }
 0xf1c   :  { %7900 = vmatmul.mubr.msk.f32.vlgmr.msra.gmra.mxu0 %vm403_vm2, %v9296_v37 }
 0xfdc   :  { %v7901_v38 = vpop.f32.mrf.mxu0 }
 0xfdd   :  { %v2387_v39 = vmul.f32 0.35355338, %v7901_v38 }
 0xfde   :  { %v2377_v40 = vpop.f32.mrf.mxu0 }
 0xfdf   :  { %v2386_v41 = vmul.f32 0.35355338, %v2377_v40  ;;  %v2392_v42 = vsel %vm2388_vm3, %v2387_v39, -inf }
 0xfe0   :  { %2393 = vmax.xlane.f32.xlu0 %v2392_v42 }
 0xfe1   :  { %v2389_v14 = vsel %vm2388_vm3, %v2386_v41, -inf }
 0xfe2   :  { %2390 = vmax.xlane.f32.xlu1 %v2389_v14 }
 0xff3   :  { %2413 = vrot.lane.b32.xlu1 %v9282_v32, %s8829_s11 }
 0xff7   :  { %2506 = vrot.lane.b32.xlu1 %v9282_v32, %s8832_s26 }
 0xffb   :  { %2504 = vrot.lane.b32.xlu1 %v9286_v33, %s8832_s26 }
0x1069   :  { %v2394_v43 = vpop.xlane.xlu0 %2393 }
0x106a   :  { %v2396_v44 = vsub.f32 %v2387_v39, %v2394_v43 }
0x106b   :  { %v2391_v45 = vpop.xlane.xlu1 %2390 }
0x106c   :  { %v2399_v46 = vmul.f32 1.442695, %v2396_v44  ;;  %v2395_v47 = vsub.f32 %v2386_v41, %v2391_v45 }
0x106e   :  { %8321 = vpow2.f32 %v2399_v46  ;;  %v2397_v48 = vmul.f32 1.442695, %v2395_v47 }
0x106f   :  { %v2414_v49 = vpop.permute.xlu1 %2413 }
0x1070   :  { %8323 = vpow2.f32 %v2397_v48  ;;  %7902 = vmatprep.subr.msk.mxu1 %vm2422_vm4, %v2414_v49 }
0x1071   :  { %7903 = vmatpush3.msk.msra.mxu1 %vm2422_vm4, %v2414_v49 }
0x1073   :  { %v2507_v54 = vpop.permute.xlu1 %2506 }
0x1077   :  { %v2505_v55 = vpop.permute.xlu1 %2504 }
0x107b   :  { %v8322_v50 = vpop.eup %8321 }
0x107c   :  { %v2404_v51 = vsel %vm2388_vm3, %v8322_v50, 0.0 }
0x107d   :  { %v8324_v52 = vpop.eup %8323  ;;  %2405 = vadd.xlane.f32.xlu0 %v2404_v51 }
0x107e   :  { %v2401_v53 = vsel %vm2388_vm3, %v8324_v52, 0.0 }
0x107f   :  { %2402 = vadd.xlane.f32.xlu1 %v2401_v53 }
0x1090   :  { %2502 = vrot.lane.b32.xlu1 %v9296_v37, %s8832_s26 }
0x1093   :  { %2411 = vrot.lane.b32.xlu0 %v9286_v33, %s8829_s11 }
0x1097   :  { %2500 = vrot.lane.b32.xlu0 %v9294_v36, %s8832_s26 }
0x1106   :  { %v2406_v56 = vpop.xlane.xlu0 %2405 }
0x1107   :  { %8325 = vrcp.f32 %v2406_v56 }
0x1108   :  { %v2403_v57 = vpop.xlane.xlu1 %2402 }
0x1109   :  { %8327 = vrcp.f32 %v2403_v57 }
0x110a   :  { %v2412_v58 = vpop.permute.xlu0 %2411 }
0x110b   :  { %7904 = vmatprep.subr.mxu1 %v2412_v58 }
0x110c   :  { %7905 = vmatpush3.msra.mxu1 %v2412_v58  ;;  %v2503_v63 = vpop.permute.xlu1 %2502 }
0x110d   :  { %7909 = vmatprep.subr.msk.mxu1 %vm403_vm2, %v2507_v54 }
0x110e   :  { %v2501_v8 = vpop.permute.xlu0 %2500 }
0x1114   :  { %v8326_v59 = vpop.eup %8325 }
0x1115   :  { %v2410_v62 = vmul.f32 %v8326_v59, %v8322_v50 }
0x1116   :  { %v8328_v60 = vpop.eup %8327 }
0x1117   :  { %v2409_v61 = vmul.f32 %v8328_v60, %v8324_v52 }
0x1119   :  { %7906 = vmatprep.mubr.msk.f32.mxu1 %vm2388_vm3, %v2409_v61 }
0x111a   :  { %7907 = vmatmul.mubr.msk.f32.vlgmr.msra.gmra.mxu1 %vm2388_vm3, %v2410_v62 }
0x111b   :  { %7910 = vmatpush3.xpose.msk.msra.mxu1 %vm403_vm2, %v2507_v54  ;;  %7913 = vmatprep.mubr.msk.f32.mxu1 %vm403_vm2, %v2501_v8 }
0x111c   :  { %7911 = vmatprep.subr.msk.mxu1 %vm403_vm2, %v2505_v55 }
0x111f   :  { %7912 = vmatpush3.xpose.msk.msra.mxu1 %vm403_vm2, %v2505_v55 }
0x1120   :  { %7928 = vmatprep.subr.mxu1 %v2295_v6 }
0x1122   :  { %7914 = vmatmul.mubr.msk.f32.vlgmr.msra.gmra.mxu1 %vm403_vm2, %v2503_v63 }
0x1123   :  { %7929 = vmatpush3.msra.mxu1 %v2295_v6 }
0x11da   :  { %v7908_v0 = vpop.f32.mrf.mxu1 }
0x11dc   :  { %v2491_v1 = vpop.f32.mrf.mxu1 }
0x11dd   :  { %7930 = vmatprep.mubr.msk.f32.mxu1 %vm403_vm2, %v2491_v1 }
0x11de   :  { %7931 = vmatmul.mubr.msk.f32.vlgmr.msra.gmra.mxu1 %vm403_vm2, %v7908_v0 }
0x11e2   :  { %v7915_v2 = vpop.f32.mrf.mxu1 }
0x11e3   :  { %v2592_v3 = vmul.f32 0.35355338, %v7915_v2 }
0x11e4   :  { %v2582_v4 = vpop.f32.mrf.mxu1 }
0x11e5   :  { %v2591_v5 = vmul.f32 0.35355338, %v2582_v4  ;;  %v2596_v7 = vsel %vm2388_vm3, %v2592_v3, -inf }
0x11e6   :  { %2597 = vmax.xlane.f32.xlu1 %v2596_v7 }
0x11e7   :  { %v2593_v10 = vsel %vm2388_vm3, %v2591_v5, -inf }
0x11e8   :  { %2594 = vmax.xlane.f32.xlu0 %v2593_v10 }
0x11f7   :  { %2617 = vrot.lane.b32.xlu1 %v9282_v32, %s8831_s2 }
0x11fb   :  { %2871 = vrot.lane.b32.xlu1 %v9282_v32, %s8834_s30 }
0x11ff   :  { %2869 = vrot.lane.b32.xlu1 %v9286_v33, %s8834_s30 }
0x1203   :  { %2867 = vrot.lane.b32.xlu1 %v9296_v37, %s8834_s30 }
0x1207   :  { %3155 = vrot.lane.b32.xlu1 %v9286_v33, %s8838_s19 }
0x120b   :  { %3153 = vrot.lane.b32.xlu1 %v9296_v37, %s8838_s19 }
0x126f   :  { %v2598_v11 = vpop.xlane.xlu1 %2597 }
0x1270   :  { %v2600_v12 = vsub.f32 %v2592_v3, %v2598_v11 }
0x1271   :  { %v2595_v15 = vpop.xlane.xlu0 %2594 }
0x1272   :  { %v2603_v16 = vmul.f32 1.442695, %v2600_v12  ;;  %v2599_v17 = vsub.f32 %v2591_v5, %v2595_v15 }
0x1273   :  { %v2618_v18 = vpop.permute.xlu1 %2617 }
0x1274   :  { %8329 = vpow2.f32 %v2603_v16  ;;  %v2601_v19 = vmul.f32 1.442695, %v2599_v17  ;;  %7916 = vmatprep.subr.msk.mxu0 %vm2422_vm4, %v2618_v18  ;;  %v2297_v16 = vld [vmem:[#allocation16 + $0x10] sm:$0xff] }
0x1275   :  { %7917 = vmatpush3.msk.msra.mxu0 %vm2422_vm4, %v2618_v18 }
0x1276   :  { %8331 = vpow2.f32 %v2601_v19 }
0x1277   :  { %v2872_v13 = vpop.permute.xlu1 %2871 }
0x127b   :  { %v2870_v38 = vpop.permute.xlu1 %2869 }
0x127f   :  { %v2868_v41 = vpop.permute.xlu1 %2867 }
0x1281   :  { %v8330_v20 = vpop.eup %8329 }
0x1282   :  { %v2608_v21 = vsel %vm2388_vm3, %v8330_v20, 0.0 }
0x1283   :  { %v8332_v22 = vpop.eup %8331  ;;  %2609 = vadd.xlane.f32.xlu0 %v2608_v21  ;;  %v3156_v14 = vpop.permute.xlu1 %3155 }
0x1284   :  { %v2605_v23 = vsel %vm2388_vm3, %v8332_v22, 0.0 }
0x1287   :  { %2606 = vadd.xlane.f32.xlu0 %v2605_v23  ;;  %v3154_v43 = vpop.permute.xlu1 %3153 }
0x129d   :  { %2615 = vrot.lane.b32.xlu0 %v9286_v33, %s8831_s2 }
0x12a1   :  { %2865 = vrot.lane.b32.xlu0 %v9294_v36, %s8834_s30 }
0x12a5   :  { %3157 = vrot.lane.b32.xlu0 %v9282_v32, %s8838_s19 }
0x12a9   :  { %3151 = vrot.lane.b32.xlu0 %v9294_v36, %s8838_s19 }
0x130c   :  { %v2610_v24 = vpop.xlane.xlu0 %2609 }
0x130d   :  { %8333 = vrcp.f32 %v2610_v24 }
0x1310   :  { %v2607_v25 = vpop.xlane.xlu0 %2606 }
0x1311   :  { %8335 = vrcp.f32 %v2607_v25 }
0x1314   :  { %v2616_v26 = vpop.permute.xlu0 %2615 }
0x1315   :  { %7918 = vmatprep.subr.mxu0 %v2616_v26 }
0x1316   :  { %7919 = vmatpush3.msra.mxu0 %v2616_v26 }
0x1317   :  { %7923 = vmatprep.subr.mxu0 %v2296_v30 }
0x1318   :  { %v2866_v36 = vpop.permute.xlu0 %2865 }
0x131a   :  { %v8334_v31 = vpop.eup %8333 }
0x131b   :  { %v2614_v35 = vmul.f32 %v8334_v31, %v8330_v20 }
0x131c   :  { %v3158_v40 = vpop.permute.xlu0 %3157 }
0x131e   :  { %v8336_v29 = vpop.eup %8335 }
0x131f   :  { %v2613_v34 = vmul.f32 %v8336_v29, %v8332_v22 }
0x1320   :  { %v3152_v42 = vpop.permute.xlu0 %3151 }
0x1321   :  { %7920 = vmatprep.mubr.msk.f32.mxu0 %vm2388_vm3, %v2613_v34 }
0x1322   :  { %7921 = vmatmul.mubr.msk.f32.vlgmr.msra.gmra.mxu0 %vm2388_vm3, %v2614_v35 }
0x1323   :  { %7924 = vmatpush3.msra.mxu0 %v2296_v30  ;;  %v7932_v30 = vpop.f32.mrf.mxu1 }
0x1324   :  { %7933 = vmatprep.subr.msk.mxu0 %vm403_vm2, %v2872_v13 }
0x1325   :  { %v2856_v31 = vpop.f32.mrf.mxu1 }
0x13e2   :  { %v7922_v37 = vpop.f32.mrf.mxu0 }
0x13e4   :  { %v2694_v39 = vpop.f32.mrf.mxu0 }
0x13e5   :  { %7925 = vmatprep.mubr.msk.f32.mxu0 %vm403_vm2, %v2694_v39  ;;  %v2298_v39 = vld [vmem:[#allocation16 + $0x18] sm:$0xff] }
0x13e6   :  { %7926 = vmatmul.mubr.msk.f32.vlgmr.msra.gmra.mxu0 %vm403_vm2, %v7922_v37 }
0x13e7   :  { %7934 = vmatpush3.xpose.msk.msra.mxu0 %vm403_vm2, %v2872_v13  ;;  %7937 = vmatprep.mubr.msk.f32.mxu0 %vm403_vm2, %v2866_v36 }
0x13e8   :  { %7935 = vmatprep.subr.msk.mxu0 %vm403_vm2, %v2870_v38 }
0x13eb   :  { %7936 = vmatpush3.xpose.msk.msra.mxu0 %vm403_vm2, %v2870_v38 }
0x13ec   :  { %7952 = vmatprep.subr.msk.mxu0 %vm403_vm2, %v3158_v40 }
0x13ee   :  { %7938 = vmatmul.mubr.msk.f32.vlgmr.msra.gmra.mxu0 %vm403_vm2, %v2868_v41 }
0x13ef   :  { %7953 = vmatpush3.xpose.msk.msra.mxu0 %vm403_vm2, %v3158_v40  ;;  %7956 = vmatprep.mubr.msk.f32.mxu0 %vm403_vm2, %v3152_v42 }
0x13f0   :  { %7954 = vmatprep.subr.msk.mxu0 %vm403_vm2, %v3156_v14 }
0x13f3   :  { %7955 = vmatpush3.xpose.msk.msra.mxu0 %vm403_vm2, %v3156_v14 }
0x13f6   :  { %7957 = vmatmul.mubr.msk.f32.vlgmr.msra.gmra.mxu0 %vm403_vm2, %v3154_v43 }
0x14a6   :  { %v9372_v44 = vpop.f32.mrf.mxu0 }
0x14a7   :  { %v2862_v40 = vadd.f32 %v7932_v30, %v9372_v44 }
0x14a8   :  { %v9374_v45 = vpop.f32.mrf.mxu0 }
0x14a9   :  { %v2857_v42 = vadd.f32 %v2856_v31, %v9374_v45  ;;  %v3589_v31 = vld [vmem:[%s9886_s15 + $0x18] sm:$0xff] }
0x14ae   :  { %v7939_v46 = vpop.f32.mrf.mxu0 }
0x14af   :  { %v2957_v47 = vmul.f32 0.35355338, %v7939_v46 }
0x14b0   :  { %v2947_v48 = vpop.f32.mrf.mxu0 }
0x14b1   :  { %v2956_v49 = vmul.f32 0.35355338, %v2947_v48  ;;  %v2961_v50 = vsel %vm2388_vm3, %v2957_v47, -inf }
0x14b2   :  { %2962 = vmax.xlane.f32.xlu1 %v2961_v50  ;;  %v7384_v50 = vld [vmem:[#allocation17] ss:$0 sm:$0xff] }
0x14b3   :  { %v2958_v51 = vsel %vm2388_vm3, %v2956_v49, -inf }
0x14b4   :  { %2959 = vmax.xlane.f32.xlu0 %v2958_v51 }
0x14b6   :  { %v7958_v52 = vpop.f32.mrf.mxu0 }
0x14b7   :  { %v3243_v5 = vmul.f32 0.35355338, %v7958_v52 }
0x14b8   :  { %v3233_v53 = vpop.f32.mrf.mxu0 }
0x14b9   :  { %v3242_v54 = vmul.f32 0.35355338, %v3233_v53  ;;  %v3247_v10 = vsel %vm2388_vm3, %v3243_v5, -inf }
0x14bb   :  { %v3244_v55 = vsel %vm2388_vm3, %v3242_v54, -inf }
0x14c3   :  { %2982 = vrot.lane.b32.xlu1 %v9282_v32, %s8835_s17 }
0x14e7   :  { %3245 = vmax.xlane.f32.xlu1 %v3244_v55 }
0x153b   :  { %v2963_v56 = vpop.xlane.xlu1 %2962 }
0x153c   :  { %v2965_v57 = vsub.f32 %v2957_v47, %v2963_v56 }
0x153d   :  { %v2960_v58 = vpop.xlane.xlu0 %2959 }
0x153e   :  { %v2968_v59 = vmul.f32 1.442695, %v2965_v57  ;;  %v2964_v60 = vsub.f32 %v2956_v49, %v2960_v58 }
0x153f   :  { %v2983_v61 = vpop.permute.xlu1 %2982 }
0x1540   :  { %8337 = vpow2.f32 %v2968_v59  ;;  %v2966_v62 = vmul.f32 1.442695, %v2964_v60  ;;  %7940 = vmatprep.subr.msk.mxu1 %vm2422_vm4, %v2983_v61 }
0x1541   :  { %7941 = vmatpush3.msk.msra.mxu1 %vm2422_vm4, %v2983_v61 }
0x1542   :  { %8339 = vpow2.f32 %v2966_v62 }
0x154d   :  { %v8338_v8 = vpop.eup %8337 }
0x154e   :  { %v2973_v63 = vsel %vm2388_vm3, %v8338_v8, 0.0 }
0x154f   :  { %v8340_v6 = vpop.eup %8339  ;;  %2974 = vadd.xlane.f32.xlu0 %v2973_v63 }
0x1550   :  { %v2970_v0 = vsel %vm2388_vm3, %v8340_v6, 0.0 }
0x1553   :  { %2971 = vadd.xlane.f32.xlu0 %v2970_v0 }
0x1569   :  { %2980 = vrot.lane.b32.xlu0 %v9286_v33, %s8835_s17 }
0x1570   :  { %v3246_v1 = vpop.xlane.xlu1 %3245 }
0x1571   :  { %v3250_v2 = vsub.f32 %v3242_v54, %v3246_v1  ;;  %v3495_v1 = vld [vmem:[#allocation19 + $0x18] sm:$0xff] }
0x1572   :  { %7971 = vmatprep.subr.mxu0 %v3495_v1 }
0x1573   :  { %v3252_v3 = vmul.f32 1.442695, %v3250_v2  ;;  %7972 = vmatpush3.msra.mxu0 %v3495_v1  ;;  %v3493_v2 = vld [vmem:[#allocation19 + $0x8] sm:$0xff] }
0x1575   :  { %8341 = vpow2.f32 %v3252_v3  ;;  %v3492_v3 = vld [vmem:[#allocation19] sm:$0xff] }
0x1582   :  { %v8342_v4 = vpop.eup %8341 }
0x1583   :  { %v3256_v7 = vsel %vm2388_vm3, %v8342_v4, 0.0 }
0x1584   :  { %3257 = vadd.xlane.f32.xlu1 %v3256_v7  ;;  %v3591_v7 = vld [vmem:[%s9886_s15 + $0x28] sm:$0xff] }
0x1588   :  { %3248 = vmax.xlane.f32.xlu0 %v3247_v10  ;;  %v3590_v10 = vld [vmem:[%s9886_s15 + $0x20] sm:$0xff] }
0x1595   :  { %3268 = vrot.lane.b32.xlu1 %v9282_v32, %s8837_s18 }
0x15d8   :  { %v2975_v11 = vpop.xlane.xlu0 %2974 }
0x15d9   :  { %8343 = vrcp.f32 %v2975_v11 }
0x15dc   :  { %v2972_v12 = vpop.xlane.xlu0 %2971 }
0x15dd   :  { %8345 = vrcp.f32 %v2972_v12 }
0x15e0   :  { %v2981_v15 = vpop.permute.xlu0 %2980 }
0x15e1   :  { %7942 = vmatprep.subr.mxu1 %v2981_v15 }
0x15e2   :  { %7943 = vmatpush3.msra.mxu1 %v2981_v15 }
0x15e3   :  { %7947 = vmatprep.subr.mxu1 %v2297_v16 }
0x15e6   :  { %v8344_v17 = vpop.eup %8343 }
0x15e7   :  { %v2979_v20 = vmul.f32 %v8344_v17, %v8338_v8 }
0x15ea   :  { %v8346_v18 = vpop.eup %8345 }
0x15eb   :  { %v2978_v19 = vmul.f32 %v8346_v18, %v8340_v6 }
0x15ed   :  { %7944 = vmatprep.mubr.msk.f32.mxu1 %vm2388_vm3, %v2978_v19 }
0x15ee   :  { %7945 = vmatmul.mubr.msk.f32.vlgmr.msra.gmra.mxu1 %vm2388_vm3, %v2979_v20  ;;  %v7385_v20 = vld [vmem:[#allocation26] ss:$0 sm:$0xff] }
0x15ef   :  { %7948 = vmatpush3.msra.mxu1 %v2297_v16 }
0x160d   :  { %v3258_v21 = vpop.xlane.xlu1 %3257 }
0x1611   :  { %v3269_v32 = vpop.permute.xlu1 %3268  ;;  %v3249_v22 = vpop.xlane.xlu0 %3248 }
0x1612   :  { %v3251_v23 = vsub.f32 %v3243_v5, %v3249_v22  ;;  %7959 = vmatprep.subr.msk.mxu1 %vm2422_vm4, %v3269_v32  ;;  %v3592_v5 = vld [vmem:[%s9886_s15 + $0x30] sm:$0xff] }
0x1614   :  { %v3254_v24 = vmul.f32 1.442695, %v3251_v23 }
0x1616   :  { %8347 = vpow2.f32 %v3254_v24  ;;  %v7386_v24 = vld [vmem:[%s9891_s20] ss:$0 sm:$0xff] }
0x1617   :  { %8349 = vrcp.f32 %v3258_v21 }
0x1623   :  { %v8348_v25 = vpop.eup %8347 }
0x1624   :  { %v3259_v26 = vsel %vm2388_vm3, %v8348_v25, 0.0  ;;  %v8350_v29 = vpop.eup %8349 }
0x1625   :  { %3260 = vadd.xlane.f32.xlu0 %v3259_v26  ;;  %v3264_v36 = vmul.f32 %v8350_v29, %v8342_v4  ;;  %v3593_v4 = vld [vmem:[%s9886_s15 + $0x38] sm:$0xff]  ;;  %v3588_v29 = vld [vmem:[%s9886_s15 + $0x10] sm:$0xff] }
0x163b   :  { %3266 = vrot.lane.b32.xlu0 %v9286_v33, %s8837_s18 }
0x16ae   :  { %v7946_v34 = vpop.f32.mrf.mxu1  ;;  %v3261_v35 = vpop.xlane.xlu0 %3260 }
0x16af   :  { %8351 = vrcp.f32 %v3261_v35  ;;  %v3586_v35 = vld [vmem:[%s9886_s15] sm:$0xff] }
0x16b0   :  { %v3059_v13 = vpop.f32.mrf.mxu1 }
0x16b1   :  { %7949 = vmatprep.mubr.msk.f32.mxu1 %vm403_vm2, %v3059_v13  ;;  %v7387_v13 = vld [vmem:[#allocation20] ss:$0 sm:$0xff] }
0x16b2   :  { %7950 = vmatmul.mubr.msk.f32.vlgmr.msra.gmra.mxu1 %vm403_vm2, %v7946_v34  ;;  %v3267_v37 = vpop.permute.xlu0 %3266  ;;  %v3587_v34 = vld [vmem:[%s9886_s15 + $0x8] sm:$0xff] }
0x16b3   :  { %7960 = vmatpush3.msk.msra.mxu1 %vm2422_vm4, %v3269_v32  ;;  %7963 = vmatprep.mubr.msk.f32.mxu1 %vm2388_vm3, %v3264_v36 }
0x16b4   :  { %7961 = vmatprep.subr.mxu1 %v3267_v37 }
0x16b5   :  { %7962 = vmatpush3.msra.mxu1 %v3267_v37 }
0x16b6   :  { %7966 = vmatprep.subr.mxu1 %v2298_v39 }
0x16bc   :  { %v8352_v33 = vpop.eup %8351 }
0x16bd   :  { %v3265_v38 = vmul.f32 %v8352_v33, %v8348_v25 }
0x16bf   :  { %7964 = vmatmul.mubr.msk.f32.vlgmr.msra.gmra.mxu1 %vm2388_vm3, %v3265_v38 }
0x16c0   :  { %7967 = vmatpush3.msra.mxu1 %v2298_v39 }
0x16c1   :  { %7982 = vmatprep.subr.mxu1 %v3593_v4 }
0x1772   :  { %v7951_v41 = vpop.f32.mrf.mxu1 }
0x1773   :  { %v3150_v14 = vadd.f32 %v7951_v41, %v2862_v40  ;;  %v7390_v41 = vld [vmem:[#allocation22] ss:$0 sm:$0xff] }
0x1774   :  { %v3140_v43 = vpop.f32.mrf.mxu1 }
0x1775   :  { %v3149_v46 = vadd.f32 %v3140_v43, %v2857_v42 }
0x177f   :  { %v7965_v47 = vpop.f32.mrf.mxu1 }
0x1781   :  { %v3345_v48 = vpop.f32.mrf.mxu1 }
0x1782   :  { %7968 = vmatprep.mubr.msk.f32.mxu1 %vm403_vm2, %v3345_v48 }
0x1783   :  { %7969 = vmatmul.mubr.msk.f32.vlgmr.msra.gmra.mxu1 %vm403_vm2, %v7965_v47 }
0x1784   :  { %7983 = vmatpush3.msra.mxu1 %v3593_v4 }
0x1785   :  { %7984 = vmatprep.subr.mxu1 %v3592_v5 }
0x1786   :  { %7985 = vmatpush3.msra.mxu1 %v3592_v5 }
0x1787   :  { %7986 = vmatprep.subr.mxu1 %v3591_v7 }
0x1788   :  { %7987 = vmatpush3.msra.mxu1 %v3591_v7 }
0x1789   :  { %7988 = vmatprep.subr.mxu1 %v3590_v10 }
0x178a   :  { %7989 = vmatpush3.msra.mxu1 %v3590_v10  ;;  %v7394_v10 = vld [vmem:[%s9893_s22] ss:$0 sm:$0xff] }
0x178b   :  { %7990 = vmatprep.subr.mxu1 %v3589_v31 }
0x178c   :  { %7991 = vmatpush3.msra.mxu1 %v3589_v31 }
0x178d   :  { %7992 = vmatprep.subr.mxu1 %v3588_v29 }
0x178e   :  { %7993 = vmatpush3.msra.mxu1 %v3588_v29 }
0x178f   :  { %7994 = vmatprep.subr.mxu1 %v3587_v34 }
0x1790   :  { %7995 = vmatpush3.msra.mxu1 %v3587_v34 }
0x1791   :  { %7996 = vmatprep.subr.mxu1 %v3586_v35 }
0x1792   :  { %7997 = vmatpush3.msra.mxu1 %v3586_v35 }
0x1793   :  { %8017 = vmatprep.subr.mxu1 %v8827_v9 }
0x1843   :  { %v7970_v49 = vpop.f32.mrf.mxu1 }
0x1844   :  { %v3436_v51 = vadd.f32 %v7970_v49, %v3150_v14 }
0x1845   :  { %v3426_v52 = vpop.f32.mrf.mxu1 }
0x1846   :  { %v3445_v53 = vadd.f32 %v7384_v50, %v3436_v51  ;;  %v3435_v54 = vadd.f32 %v3426_v52, %v3149_v46 }
0x1848   :  { %v3444_v55 = vadd.f32 %v7384_v50, %v3435_v54  ;;  %v3447_v44 = vadd.f32 %v3445_v53, %v9276_v28 }
0x184a   :  { %v3453_v45 = vsel %vm314_vm0, %v3447_v44, 0.0  ;;  %v3446_v56 = vadd.f32 %v3444_v55, %v9274_v27  ;;  %v3494_v27 = vld [vmem:[#allocation19 + $0x10] sm:$0xff] }
0x184b   :  { %3454 = vadd.xlane.f32.xlu0 %v3453_v45  ;;  %7973 = vmatprep.subr.mxu0 %v3494_v27 }
0x184c   :  { %v3450_v57 = vsel %vm314_vm0, %v3446_v56, 0.0  ;;  %7974 = vmatpush3.msra.mxu0 %v3494_v27 }
0x184d   :  { %3451 = vadd.xlane.f32.xlu1 %v3450_v57  ;;  %7975 = vmatprep.subr.mxu0 %v3493_v2 }
0x184e   :  { %7976 = vmatpush3.msra.mxu0 %v3493_v2  ;;  %v7393_v2 = vld [vmem:[%s9892_s21] ss:$0 sm:$0xff] }
0x184f   :  { %7977 = vmatprep.subr.mxu0 %v3492_v3 }
0x1850   :  { %7978 = vmatpush3.msra.mxu0 %v3492_v3 }
0x18d4   :  { %v3455_v58 = vpop.xlane.xlu0 %3454 }
0x18d5   :  { %v3457_v59 = vmul.f32 0.03125, %v3455_v58 }
0x18d6   :  { %v3452_v60 = vpop.xlane.xlu1 %3451 }
0x18d7   :  { %v3459_v61 = vsub.f32 %v3447_v44, %v3457_v59  ;;  %v3456_v62 = vmul.f32 0.03125, %v3452_v60  ;;  %v7398_v59 = vld [vmem:[%s9917_s27 + $0x38] sm:$0xff]  ;;  %v7397_v60 = vld [vmem:[%s9917_s27 + $0x30] sm:$0xff] }
0x18d8   :  { %8001 = vmatprep.subr.mxu0 %v7398_v59 }
0x18d9   :  { %v3458_v8 = vsub.f32 %v3446_v56, %v3456_v62  ;;  %v3461_v63 = vmul.f32 %v3459_v61, %v3459_v61  ;;  %v7395_v62 = vld [vmem:[%s9917_s27 + $0x20] sm:$0xff] }
0x18db   :  { %v3465_v6 = vsel %vm314_vm0, %v3461_v63, 0.0  ;;  %v3460_v0 = vmul.f32 %v3458_v8, %v3458_v8 }
0x18dc   :  { %3466 = vadd.xlane.f32.xlu0 %v3465_v6 }
0x18dd   :  { %v3462_v28 = vsel %vm314_vm0, %v3460_v0, 0.0 }
0x18de   :  { %3463 = vadd.xlane.f32.xlu1 %v3462_v28 }
0x1965   :  { %v3467_v11 = vpop.xlane.xlu0 %3466 }
0x1966   :  { %v3469_v12 = vmul.f32 0.03125, %v3467_v11 }
0x1967   :  { %v3464_v15 = vpop.xlane.xlu1 %3463 }
0x1968   :  { %v3471_v16 = vadd.f32 1e-05, %v3469_v12  ;;  %v3468_v17 = vmul.f32 0.03125, %v3464_v15 }
0x196a   :  { %8353 = vrsqrt.f32 %v3471_v16  ;;  %v3470_v18 = vadd.f32 1e-05, %v3468_v17  ;;  %v7399_v16 = vld [vmem:[#allocation8 + $0x1] ss:$0 sm:$0xff] }
0x196c   :  { %8355 = vrsqrt.f32 %v3470_v18 }
0x1977   :  { %v8354_v19 = vpop.eup %8353 }
0x1978   :  { %v3475_v21 = vmul.f32 %v8354_v19, %v3459_v61  ;;  %v7396_v61 = vld [vmem:[%s9917_s27 + $0x28] sm:$0xff] }
0x1979   :  { %v8356_v32 = vpop.eup %8355 }
0x197a   :  { %v3474_v22 = vmul.f32 %v8356_v32, %v3458_v8  ;;  %v3483_v23 = vmul.f32 %v7385_v20, %v3475_v21 }
0x197c   :  { %v3482_v25 = vmul.f32 %v7385_v20, %v3474_v22  ;;  %v3491_v30 = vadd.f32 %v7386_v24, %v3483_v23 }
0x197e   :  { %v3490_v26 = vadd.f32 %v7386_v24, %v3482_v25 }
0x1980   :  { %7979 = vmatprep.mubr.msk.f32.mxu0 %vm314_vm0, %v3490_v26 }
0x1981   :  { %7980 = vmatmul.mubr.msk.f32.vlgmr.msra.gmra.mxu0 %vm314_vm0, %v3491_v30 }
0x1982   :  { %8002 = vmatpush3.msra.mxu0 %v7398_v59 }
0x1983   :  { %8003 = vmatprep.subr.mxu0 %v7397_v60 }
0x1984   :  { %8004 = vmatpush3.msra.mxu0 %v7397_v60 }
0x1985   :  { %8005 = vmatprep.subr.mxu0 %v7396_v61 }
0x1986   :  { %8006 = vmatpush3.msra.mxu0 %v7396_v61 }
0x1987   :  { %8007 = vmatprep.subr.mxu0 %v7395_v62 }
0x1988   :  { %8008 = vmatpush3.msra.mxu0 %v7395_v62 }
0x1989   :  { %8012 = vmatprep.subr.mxu0 %v8827_v9 }
0x1a41   :  { %v7981_v36 = vpop.f32.mrf.mxu0 }
0x1a42   :  { %v3581_v37 = vadd.f32 %v7981_v36, %v7387_v13 }
0x1a43   :  { %v3575_v33 = vpop.f32.mrf.mxu0 }
0x1a44   :  { %v3576_v38 = vadd.f32 %v7387_v13, %v3575_v33  ;;  %v3585_v40 = vmax.f32 %v3581_v37, 0.0 }
0x1a46   :  { %v3584_v39 = vmax.f32 %v3576_v38, 0.0 }
0x1a48   :  { %7998 = vmatprep.mubr.msk.f32.mxu1 %vm3601_vm5, %v3584_v39 }
0x1a49   :  { %7999 = vmatmul.mubr.msk.f32.vlgmr.msra.gmra.mxu1 %vm3601_vm5, %v3585_v40 }
0x1a4a   :  { %8019 = vmatprep.mubr.msk.f32.mxu1 %vm8828_vm1, %v8827_v9 }
0x1b09   :  { %v8000_v42 = vpop.f32.mrf.mxu1 }
0x1b0a   :  { %v3680_v14 = vadd.f32 %v8000_v42, %v7390_v41 }
0x1b0b   :  { %v3674_v43 = vpop.f32.mrf.mxu1 }
0x1b0c   :  { %v3675_v46 = vadd.f32 %v7390_v41, %v3674_v43  ;;  %v3684_v47 = vadd.f32 %v3680_v14, %v3491_v30 }
0x1b0e   :  { %v3690_v48 = vsel %vm314_vm0, %v3684_v47, 0.0  ;;  %v3683_v49 = vadd.f32 %v3675_v46, %v3490_v26 }
0x1b0f   :  { %3691 = vadd.xlane.f32.xlu0 %v3690_v48 }
0x1b10   :  { %v3687_v50 = vsel %vm314_vm0, %v3683_v49, 0.0 }
0x1b11   :  { %3688 = vadd.xlane.f32.xlu1 %v3687_v50 }
0x1b98   :  { %v3692_v51 = vpop.xlane.xlu0 %3691 }
0x1b99   :  { %v3694_v52 = vmul.f32 0.03125, %v3692_v51 }
0x1b9a   :  { %v3689_v53 = vpop.xlane.xlu1 %3688 }
0x1b9b   :  { %v3696_v54 = vsub.f32 %v3684_v47, %v3694_v52  ;;  %v3693_v55 = vmul.f32 0.03125, %v3689_v53 }
0x1b9d   :  { %v3695_v44 = vsub.f32 %v3683_v49, %v3693_v55  ;;  %v3698_v45 = vmul.f32 %v3696_v54, %v3696_v54 }
0x1b9f   :  { %v3702_v56 = vsel %vm314_vm0, %v3698_v45, 0.0  ;;  %v3697_v57 = vmul.f32 %v3695_v44, %v3695_v44 }
0x1ba0   :  { %3703 = vadd.xlane.f32.xlu0 %v3702_v56 }
0x1ba1   :  { %v3699_v58 = vsel %vm314_vm0, %v3697_v57, 0.0 }
0x1ba2   :  { %3700 = vadd.xlane.f32.xlu1 %v3699_v58 }
0x1c29   :  { %v3704_v8 = vpop.xlane.xlu0 %3703 }
0x1c2a   :  { %v3706_v63 = vmul.f32 0.03125, %v3704_v8 }
0x1c2b   :  { %v3701_v6 = vpop.xlane.xlu1 %3700 }
0x1c2c   :  { %v3708_v0 = vadd.f32 1e-05, %v3706_v63  ;;  %v3705_v28 = vmul.f32 0.03125, %v3701_v6 }
0x1c2e   :  { %8357 = vrsqrt.f32 %v3708_v0  ;;  %v3707_v1 = vadd.f32 1e-05, %v3705_v28 }
0x1c30   :  { %8359 = vrsqrt.f32 %v3707_v1 }
0x1c3b   :  { %v8358_v27 = vpop.eup %8357 }
0x1c3c   :  { %v3712_v3 = vmul.f32 %v8358_v27, %v3696_v54 }
0x1c3d   :  { %v8360_v4 = vpop.eup %8359 }
0x1c3e   :  { %v3711_v5 = vmul.f32 %v8360_v4, %v3695_v44  ;;  %v3720_v7 = vmul.f32 %v7393_v2, %v3712_v3 }
0x1c40   :  { %v3719_v11 = vmul.f32 %v7393_v2, %v3711_v5  ;;  %v9471_v15 = vadd.f32 %v7394_v10, %v3720_v7 }
0x1c42   :  { %v9469_v12 = vadd.f32 %v7394_v10, %v3719_v11 }
0x1c44   :  { %8009 = vmatprep.mubr.msk.f32.mxu0 %vm314_vm0, %v9469_v12 }
0x1c45   :  { %8010 = vmatmul.mubr.msk.f32.vlgmr.msra.gmra.mxu0 %vm314_vm0, %v9471_v15 }
0x1c46   :  { %8014 = vmatprep.mubr.msk.f32.mxu0 %vm8828_vm1, %v8827_v9 }
0x1d05   :  { %v8011_v17 = vpop.f32.mrf.mxu0 }
0x1d06   :  { %v9479_v18 = vadd.f32 %v8011_v17, %v7399_v16  ;;  %v7402_v17 = vld [vmem:[%s9918_s12 + $0x20] sm:$0xff] }
0x1d07   :  { %v3814_v19 = vpop.f32.mrf.mxu0 }
0x1d08   :  { %v9481_v20 = vadd.f32 %v7399_v16, %v3814_v19  ;;  %3906 = vrot.lane.b32.xlu0 %v9479_v18, %s8829_s11 }
0x1d0a   :  { %3829 = vrot.lane.b32.xlu1 %v9481_v20, %s8829_s11 }
0x1d7a   :  { %v3907_v21 = vpop.permute.xlu0 %3906 }
0x1d7b   :  { %8018 = vmatpush3.xpose.msk.msra.mxu1 %vm403_vm2, %v3907_v21 }
0x1d7c   :  { %v3830_v32 = vpop.permute.xlu1 %3829  ;;  %8027 = vmatprep.subr.mxu1 %v8827_v9 }
0x1d7d   :  { %8013 = vmatpush3.xpose.msk.msra.mxu0 %vm403_vm2, %v3830_v32 }
0x1d7e   :  { %8020 = vmatmul.mubr.msk.f32.vlgmr.msra.gmra.mxu1 %vm403_vm2, %v9479_v18  ;;  %8022 = vmatprep.subr.mxu0 %v8827_v9 }
0x1d7f   :  { %8029 = vmatprep.mubr.msk.f32.mxu1 %vm8828_vm1, %v8827_v9 }
0x1d80   :  { %8015 = vmatmul.mubr.msk.f32.vlgmr.msra.gmra.mxu0 %vm403_vm2, %v9481_v20 }
0x1d81   :  { %8024 = vmatprep.mubr.msk.f32.mxu0 %vm8828_vm1, %v8827_v9 }
0x1e3e   :  { %v3978_v22 = vpop.f32.mrf.mxu1 }
0x1e3f   :  { %v3983_v23 = vmul.f32 0.35355338, %v3978_v22 }
0x1e40   :  { %v3901_v24 = vpop.f32.mrf.mxu0  ;;  %v8021_v25 = vpop.f32.mrf.mxu1 }
0x1e41   :  { %v3982_v26 = vmul.f32 0.35355338, %v3901_v24  ;;  %v3987_v30 = vsel %vm403_vm2, %v3983_v23, -inf }
0x1e42   :  { %3988 = vmax.xlane.f32.xlu0 %v3987_v30  ;;  %v8016_v31 = vpop.f32.mrf.mxu0  ;;  %v7403_v30 = vld [vmem:[%s9918_s12 + $0x28] sm:$0xff] }
0x1e43   :  { %v3984_v29 = vsel %vm403_vm2, %v3982_v26, -inf }
0x1e44   :  { %3985 = vmax.xlane.f32.xlu1 %v3984_v29 }
0x1e55   :  { %4006 = vrot.lane.b32.xlu1 %v9481_v20, %s8830_s10 }
0x1e58   :  { %4082 = vrot.lane.b32.xlu0 %v9479_v18, %s8830_s10 }
0x1e59   :  { %4160 = vrot.lane.b32.xlu1 %v9481_v20, %s8831_s2 }
0x1e5d   :  { %4238 = vrot.lane.b32.xlu1 %v9479_v18, %s8831_s2 }
0x1ecb   :  { %v3989_v34 = vpop.xlane.xlu0 %3988 }
0x1ecc   :  { %v3991_v35 = vsub.f32 %v3983_v23, %v3989_v34 }
0x1ecd   :  { %v3986_v13 = vpop.xlane.xlu1 %3985 }
0x1ece   :  { %v3994_v36 = vmul.f32 1.442695, %v3991_v35  ;;  %v3990_v37 = vsub.f32 %v3982_v26, %v3986_v13 }
0x1ecf   :  { %v4083_v33 = vpop.permute.xlu0 %4082 }
0x1ed0   :  { %8361 = vpow2.f32 %v3994_v36  ;;  %v3992_v38 = vmul.f32 1.442695, %v3990_v37  ;;  %8028 = vmatpush3.msra.mxu1 %v4083_v33 }
0x1ed1   :  { %v4007_v39 = vpop.permute.xlu1 %4006  ;;  %8037 = vmatprep.subr.mxu1 %v8827_v9 }
0x1ed2   :  { %8363 = vpow2.f32 %v3992_v38  ;;  %8023 = vmatpush3.msra.mxu0 %v4007_v39 }
0x1ed3   :  { %8032 = vmatprep.subr.mxu0 %v8827_v9 }
0x1ed5   :  { %v4161_v43 = vpop.permute.xlu1 %4160 }
0x1ed9   :  { %v4239_v46 = vpop.permute.xlu1 %4238 }
0x1edd   :  { %v8362_v40 = vpop.eup %8361 }
0x1ede   :  { %v3999_v41 = vsel %vm403_vm2, %v8362_v40, 0.0 }
0x1edf   :  { %v8364_v42 = vpop.eup %8363  ;;  %4000 = vadd.xlane.f32.xlu0 %v3999_v41 }
0x1ee0   :  { %v3996_v14 = vsel %vm403_vm2, %v8364_v42, 0.0 }
0x1ee1   :  { %3997 = vadd.xlane.f32.xlu1 %v3996_v14 }
0x1ef2   :  { %4236 = vrot.lane.b32.xlu1 %v9479_v18, %s8832_s26 }
0x1ef5   :  { %4158 = vrot.lane.b32.xlu0 %v9481_v20, %s8832_s26 }
0x1f68   :  { %v4001_v47 = vpop.xlane.xlu0 %4000 }
0x1f69   :  { %8365 = vrcp.f32 %v4001_v47 }
0x1f6a   :  { %v3998_v48 = vpop.xlane.xlu1 %3997 }
0x1f6b   :  { %8367 = vrcp.f32 %v3998_v48 }
0x1f6c   :  { %v4159_v54 = vpop.permute.xlu0 %4158 }
0x1f6e   :  { %v4237_v53 = vpop.permute.xlu1 %4236 }
0x1f76   :  { %v8366_v49 = vpop.eup %8365 }
0x1f77   :  { %v4005_v50 = vmul.f32 %v8366_v49, %v8362_v40 }
0x1f78   :  { %v8368_v51 = vpop.eup %8367 }
0x1f79   :  { %8030 = vmatmul.mubr.msk.f32.vlgmr.msra.gmra.mxu1 %vm403_vm2, %v4005_v50  ;;  %v4004_v52 = vmul.f32 %v8368_v51, %v8364_v42 }
0x1f7a   :  { %8038 = vmatpush3.xpose.msk.msra.mxu1 %vm403_vm2, %v4239_v46  ;;  %8039 = vmatprep.mubr.msk.f32.mxu1 %vm8828_vm1, %v8827_v9 }
0x1f7b   :  { %8025 = vmatmul.mubr.msk.f32.vlgmr.msra.gmra.mxu0 %vm403_vm2, %v4004_v52  ;;  %8047 = vmatprep.subr.mxu1 %v8827_v9 }
0x1f7c   :  { %8033 = vmatpush3.xpose.msk.msra.mxu0 %vm403_vm2, %v4161_v43  ;;  %8034 = vmatprep.mubr.msk.f32.mxu0 %vm8828_vm1, %v8827_v9 }
0x1f7d   :  { %8040 = vmatmul.mubr.msk.f32.vlgmr.msra.gmra.mxu1 %vm403_vm2, %v4237_v53  ;;  %8042 = vmatprep.subr.mxu0 %v8827_v9 }
0x1f7e   :  { %8049 = vmatprep.mubr.msk.f32.mxu1 %vm8828_vm1, %v8827_v9 }
0x1f7f   :  { %8035 = vmatmul.mubr.msk.f32.vlgmr.msra.gmra.mxu0 %vm403_vm2, %v4159_v54 }
0x1f80   :  { %8044 = vmatprep.mubr.msk.f32.mxu0 %vm8828_vm1, %v8827_v9 }
0x2039   :  { %v4154_v55 = vpop.f32.mrf.mxu1 }
0x203b   :  { %v4078_v44 = vpop.f32.mrf.mxu0  ;;  %v8031_v45 = vpop.f32.mrf.mxu1 }
0x203d   :  { %v8026_v56 = vpop.f32.mrf.mxu0  ;;  %v4310_v57 = vpop.f32.mrf.mxu1 }
0x203e   :  { %v4315_v58 = vmul.f32 0.35355338, %v4310_v57 }
0x203f   :  { %v4232_v59 = vpop.f32.mrf.mxu0  ;;  %v8041_v60 = vpop.f32.mrf.mxu1 }
0x2040   :  { %v4314_v61 = vmul.f32 0.35355338, %v4232_v59  ;;  %v4319_v62 = vsel %vm403_vm2, %v4315_v58, -inf }
0x2041   :  { %4320 = vmax.xlane.f32.xlu1 %v4319_v62  ;;  %v8036_v8 = vpop.f32.mrf.mxu0 }
0x2042   :  { %v4316_v63 = vsel %vm403_vm2, %v4314_v61, -inf }
0x2043   :  { %4317 = vmax.xlane.f32.xlu0 %v4316_v63 }
0x2052   :  { %4338 = vrot.lane.b32.xlu1 %v9481_v20, %s8833_s1 }
0x2056   :  { %4654 = vrot.lane.b32.xlu1 %v9481_v20, %s8835_s17 }
0x205a   :  { %4732 = vrot.lane.b32.xlu1 %v9479_v18, %s8835_s17 }
0x205e   :  { %4730 = vrot.lane.b32.xlu1 %v9479_v18, %s8834_s30 }
0x20ca   :  { %v4321_v6 = vpop.xlane.xlu1 %4320 }
0x20cb   :  { %v4323_v0 = vsub.f32 %v4315_v58, %v4321_v6 }
0x20cc   :  { %v4318_v28 = vpop.xlane.xlu0 %4317 }
0x20cd   :  { %v4326_v1 = vmul.f32 1.442695, %v4323_v0  ;;  %v4322_v27 = vsub.f32 %v4314_v61, %v4318_v28  ;;  %v7404_v0 = vld [vmem:[%s9918_s12 + $0x30] sm:$0xff] }
0x20ce   :  { %v4339_v2 = vpop.permute.xlu1 %4338 }
0x20cf   :  { %8369 = vpow2.f32 %v4326_v1  ;;  %v4324_v3 = vmul.f32 1.442695, %v4322_v27  ;;  %8043 = vmatpush3.msra.mxu0 %v4339_v2 }
0x20d0   :  { %8052 = vmatprep.subr.mxu0 %v7403_v30 }
0x20d1   :  { %8371 = vpow2.f32 %v4324_v3 }
0x20d2   :  { %v4655_v21 = vpop.permute.xlu1 %4654 }
0x20d6   :  { %v4733_v24 = vpop.permute.xlu1 %4732 }
0x20da   :  { %v4731_v26 = vpop.permute.xlu1 %4730 }
0x20dc   :  { %v8370_v4 = vpop.eup %8369 }
0x20dd   :  { %v4331_v5 = vsel %vm403_vm2, %v8370_v4, 0.0 }
0x20de   :  { %v8372_v7 = vpop.eup %8371  ;;  %4332 = vadd.xlane.f32.xlu0 %v4331_v5 }
0x20df   :  { %v4328_v10 = vsel %vm403_vm2, %v8372_v7, 0.0 }
0x20e2   :  { %4329 = vadd.xlane.f32.xlu0 %v4328_v10 }
0x20f8   :  { %4414 = vrot.lane.b32.xlu0 %v9479_v18, %s8833_s1 }
0x20fc   :  { %4652 = vrot.lane.b32.xlu0 %v9481_v20, %s8834_s30 }
0x2167   :  { %v4333_v11 = vpop.xlane.xlu0 %4332 }
0x2168   :  { %8373 = vrcp.f32 %v4333_v11 }
0x216b   :  { %v4330_v16 = vpop.xlane.xlu0 %4329 }
0x216c   :  { %8375 = vrcp.f32 %v4330_v16 }
0x216f   :  { %v4415_v19 = vpop.permute.xlu0 %4414 }
0x2170   :  { %8048 = vmatpush3.msra.mxu1 %v4415_v19 }
0x2171   :  { %8057 = vmatprep.subr.mxu1 %v7402_v17 }
0x2173   :  { %v4653_v33 = vpop.permute.xlu0 %4652 }
0x2175   :  { %v8374_v32 = vpop.eup %8373 }
0x2176   :  { %v4337_v22 = vmul.f32 %v8374_v32, %v8370_v4 }
0x2178   :  { %8050 = vmatmul.mubr.msk.f32.vlgmr.msra.gmra.mxu1 %vm403_vm2, %v4337_v22 }
0x2179   :  { %v8376_v23 = vpop.eup %8375  ;;  %8059 = vmatprep.mubr.msk.f32.mxu1 %vm403_vm2, %v4078_v44  ;;  %8058 = vmatpush3.msra.mxu1 %v7402_v17 }
0x217a   :  { %8067 = vmatprep.subr.mxu1 %v8827_v9  ;;  %v4336_v25 = vmul.f32 %v8376_v23, %v8372_v7 }
0x217c   :  { %8045 = vmatmul.mubr.msk.f32.vlgmr.msra.gmra.mxu0 %vm403_vm2, %v4336_v25  ;;  %8060 = vmatmul.mubr.msk.f32.vlgmr.msra.gmra.mxu1 %vm403_vm2, %v4154_v55 }
0x217d   :  { %8068 = vmatpush3.xpose.msk.msra.mxu1 %vm403_vm2, %v4733_v24  ;;  %8069 = vmatprep.mubr.msk.f32.mxu1 %vm8828_vm1, %v8827_v9 }
0x217e   :  { %8077 = vmatprep.subr.mxu1 %v8827_v9  ;;  %8053 = vmatpush3.msra.mxu0 %v7403_v30 }
0x217f   :  { %8062 = vmatprep.subr.mxu0 %v8827_v9 }
0x2180   :  { %8070 = vmatmul.mubr.msk.f32.vlgmr.msra.gmra.mxu1 %vm403_vm2, %v4731_v26 }
0x2181   :  { %8079 = vmatprep.mubr.msk.f32.mxu1 %vm8828_vm1, %v8827_v9 }
0x2238   :  { %v4486_v31 = vpop.f32.mrf.mxu1 }
0x223a   :  { %v8051_v29 = vpop.f32.mrf.mxu1 }
0x223c   :  { %v4410_v34 = vpop.f32.mrf.mxu0  ;;  %v9568_v35 = vpop.f32.mrf.mxu1 }
0x223d   :  { %8054 = vmatprep.mubr.msk.f32.mxu0 %vm403_vm2, %v4410_v34 }
0x223e   :  { %v8046_v13 = vpop.f32.mrf.mxu0  ;;  %8055 = vmatmul.mubr.msk.f32.vlgmr.msra.gmra.mxu0 %vm403_vm2, %v4486_v31  ;;  %v9572_v36 = vpop.f32.mrf.mxu1 }
0x223f   :  { %8063 = vmatpush3.xpose.msk.msra.mxu0 %vm403_vm2, %v4655_v21  ;;  %8064 = vmatprep.mubr.msk.f32.mxu0 %vm8828_vm1, %v8827_v9 }
0x2240   :  { %v4804_v37 = vpop.f32.mrf.mxu1  ;;  %8072 = vmatprep.subr.mxu0 %v8827_v9 }
0x2241   :  { %v4809_v38 = vmul.f32 0.35355338, %v4804_v37 }
0x2242   :  { %8065 = vmatmul.mubr.msk.f32.vlgmr.msra.gmra.mxu0 %vm403_vm2, %v4653_v33  ;;  %v8071_v39 = vpop.f32.mrf.mxu1 }
0x2243   :  { %v4813_v40 = vsel %vm403_vm2, %v4809_v38, -inf  ;;  %8074 = vmatprep.mubr.msk.f32.mxu0 %vm8828_vm1, %v8827_v9 }
0x2244   :  { %4814 = vmax.xlane.f32.xlu1 %v4813_v40 }
0x2255   :  { %4832 = vrot.lane.b32.xlu1 %v9481_v20, %s8836_s9 }
0x2259   :  { %5069 = vrot.lane.b32.xlu1 %v9481_v20, %s8837_s18 }
0x225d   :  { %5147 = vrot.lane.b32.xlu1 %v9479_v18, %s8837_s18 }
0x2261   :  { %5145 = vrot.lane.b32.xlu1 %v9479_v18, %s8838_s19 }
0x22cd   :  { %v4815_v41 = vpop.xlane.xlu1 %4814 }
0x22ce   :  { %v4817_v14 = vsub.f32 %v4809_v38, %v4815_v41 }
0x22d0   :  { %v4820_v43 = vmul.f32 1.442695, %v4817_v14 }
0x22d1   :  { %v4833_v42 = vpop.permute.xlu1 %4832 }
0x22d2   :  { %8073 = vmatpush3.msra.mxu0 %v4833_v42  ;;  %8377 = vpow2.f32 %v4820_v43 }
0x22d3   :  { %8082 = vmatprep.subr.mxu0 %v7404_v0 }
0x22d5   :  { %v5070_v62 = vpop.permute.xlu1 %5069 }
0x22d9   :  { %v5148_v5 = vpop.permute.xlu1 %5147 }
0x22dd   :  { %v5146_v11 = vpop.permute.xlu1 %5145 }
0x22df   :  { %v8378_v52 = vpop.eup %8377 }
0x22e0   :  { %v4825_v53 = vsel %vm403_vm2, %v8378_v52, 0.0 }
0x22fe   :  { %v9590_v46 = vpop.f32.mrf.mxu0 }
0x22ff   :  { %v4649_v22 = vadd.f32 %v9568_v35, %v9590_v46 }
0x2300   :  { %v9592_v47 = vpop.f32.mrf.mxu0 }
0x2301   :  { %v4644_v24 = vadd.f32 %v9572_v36, %v9592_v47 }
0x2302   :  { %v4726_v48 = vpop.f32.mrf.mxu0 }
0x2303   :  { %v4808_v49 = vmul.f32 0.35355338, %v4726_v48 }
0x2304   :  { %v8066_v50 = vpop.f32.mrf.mxu0 }
0x2305   :  { %v4810_v51 = vsel %vm403_vm2, %v4808_v49, -inf  ;;  %v8445_v50 = vld [vmem:[#allocation7] sm:$0xff] }
0x2306   :  { %4811 = vmax.xlane.f32.xlu0 %v4810_v51 }
0x230a   :  { %4826 = vadd.xlane.f32.xlu0 %v4825_v53 }
0x238f   :  { %v4812_v54 = vpop.xlane.xlu0 %4811 }
0x2390   :  { %v4816_v55 = vsub.f32 %v4808_v49, %v4812_v54 }
0x2392   :  { %v4818_v44 = vmul.f32 1.442695, %v4816_v55 }
0x2393   :  { %v4827_v57 = vpop.xlane.xlu0 %4826 }
0x2394   :  { %8379 = vpow2.f32 %v4818_v44 }
0x2395   :  { %8381 = vrcp.f32 %v4827_v57 }
0x23a1   :  { %v8380_v45 = vpop.eup %8379 }
0x23a2   :  { %v4822_v56 = vsel %vm403_vm2, %v8380_v45, 0.0  ;;  %v8382_v59 = vpop.eup %8381 }
0x23a3   :  { %4823 = vadd.xlane.f32.xlu0 %v4822_v56  ;;  %v4831_v61 = vmul.f32 %v8382_v59, %v8378_v52  ;;  %v7438_v52 = vld [vmem:[#allocation10 + $0x1] ss:$0 sm:$0xff] }
0x23b9   :  { %4908 = vrot.lane.b32.xlu0 %v9479_v18, %s8836_s9 }
0x23bd   :  { %5067 = vrot.lane.b32.xlu0 %v9481_v20, %s8838_s19 }
0x242c   :  { %v4824_v58 = vpop.xlane.xlu0 %4823 }
0x242d   :  { %8383 = vrcp.f32 %v4824_v58 }
0x2430   :  { %v4909_v60 = vpop.permute.xlu0 %4908 }
0x2431   :  { %8078 = vmatpush3.msra.mxu1 %v4909_v60 }
0x2432   :  { %8080 = vmatmul.mubr.msk.f32.vlgmr.msra.gmra.mxu1 %vm403_vm2, %v4831_v61  ;;  %8087 = vmatprep.subr.mxu1 %v8827_v9 }
0x2433   :  { %8088 = vmatpush3.xpose.msk.msra.mxu1 %vm403_vm2, %v5070_v62  ;;  %8089 = vmatprep.mubr.msk.f32.mxu1 %vm8828_vm1, %v8827_v9 }
0x2434   :  { %v5068_v8 = vpop.permute.xlu0 %5067  ;;  %8097 = vmatprep.subr.mxu1 %v8827_v9 }
0x2436   :  { %8090 = vmatmul.mubr.msk.f32.vlgmr.msra.gmra.mxu1 %vm403_vm2, %v5068_v8 }
0x2437   :  { %8099 = vmatprep.mubr.msk.f32.mxu1 %vm8828_vm1, %v8827_v9 }
0x243a   :  { %v8384_v63 = vpop.eup %8383 }
0x243b   :  { %v4830_v6 = vmul.f32 %v8384_v63, %v8380_v45 }
0x243d   :  { %8075 = vmatmul.mubr.msk.f32.vlgmr.msra.gmra.mxu0 %vm403_vm2, %v4830_v6 }
0x243e   :  { %8083 = vmatpush3.msra.mxu0 %v7404_v0 }
0x243f   :  { %8092 = vmatprep.subr.mxu0 %v8827_v9 }
0x24f2   :  { %v4980_v28 = vpop.f32.mrf.mxu1 }
0x24f4   :  { %v8081_v1 = vpop.f32.mrf.mxu1 }
0x24f6   :  { %v5141_v27 = vpop.f32.mrf.mxu1 }
0x24f7   :  { %v5223_v2 = vmul.f32 0.35355338, %v5141_v27  ;;  %v5638_v27 = vld [vmem:[#allocation13 + $0x38] sm:$0xff] }
0x24f8   :  { %v8091_v3 = vpop.f32.mrf.mxu1 }
0x24f9   :  { %v5225_v4 = vsel %vm403_vm2, %v5223_v2, -inf  ;;  %v7443_v3 = vld [vmem:[%s9919_s8 + $0x30] sm:$0xff] }
0x24fa   :  { %5226 = vmax.xlane.f32.xlu0 %v5225_v4  ;;  %v5636_v4 = vld [vmem:[#allocation13 + $0x28] sm:$0xff] }
0x24fd   :  { %v4904_v7 = vpop.f32.mrf.mxu0 }
0x24fe   :  { %8084 = vmatprep.mubr.msk.f32.mxu0 %vm403_vm2, %v4904_v7  ;;  %v5635_v7 = vld [vmem:[#allocation13 + $0x20] sm:$0xff] }
0x24ff   :  { %v8076_v10 = vpop.f32.mrf.mxu0  ;;  %8085 = vmatmul.mubr.msk.f32.vlgmr.msra.gmra.mxu0 %vm403_vm2, %v4980_v28 }
0x2500   :  { %8093 = vmatpush3.xpose.msk.msra.mxu0 %vm403_vm2, %v5148_v5  ;;  %8094 = vmatprep.mubr.msk.f32.mxu0 %vm8828_vm1, %v8827_v9  ;;  %v7442_v5 = vld [vmem:[%s9919_s8 + $0x28] sm:$0xff]  ;;  %v7441_v10 = vld [vmem:[%s9919_s8 + $0x20] sm:$0xff] }
0x2501   :  { %8102 = vmatprep.subr.mxu0 %v8827_v9 }
0x2503   :  { %8095 = vmatmul.mubr.msk.f32.vlgmr.msra.gmra.mxu0 %vm403_vm2, %v5146_v11  ;;  %v8446_v11 = vld [vmem:[#allocation7 + $0x8] sm:$0x3] }
0x2504   :  { %8104 = vmatprep.mubr.msk.f32.mxu0 %vm8828_vm1, %v8827_v9 }
0x2583   :  { %v5227_v16 = vpop.xlane.xlu0 %5226 }
0x2584   :  { %v5231_v17 = vsub.f32 %v5223_v2, %v5227_v16  ;;  %v7444_v2 = vld [vmem:[%s9919_s8 + $0x38] sm:$0xff] }
0x2586   :  { %v5233_v19 = vmul.f32 1.442695, %v5231_v17 }
0x2588   :  { %8385 = vpow2.f32 %v5233_v19 }
0x2595   :  { %v8386_v21 = vpop.eup %8385 }
0x2596   :  { %v5237_v32 = vsel %vm403_vm2, %v8386_v21, 0.0 }
0x2597   :  { %5238 = vadd.xlane.f32.xlu0 %v5237_v32 }
0x25bf   :  { %v8086_v23 = vpop.f32.mrf.mxu0 }
0x25c0   :  { %v5066_v25 = vadd.f32 %v8086_v23, %v4649_v22 }
0x25c1   :  { %v5056_v26 = vpop.f32.mrf.mxu0 }
0x25c2   :  { %v5065_v30 = vadd.f32 %v5056_v26, %v4644_v24  ;;  %v7439_v24 = vld [vmem:[#allocation23 + $0x1] ss:$0 sm:$0xff] }
0x25c3   :  { %v5219_v31 = vpop.f32.mrf.mxu0 }
0x25c4   :  { %v5224_v9 = vmul.f32 0.35355338, %v5219_v31 }
0x25c5   :  { %v8096_v29 = vpop.f32.mrf.mxu0 }
0x25c6   :  { %v5228_v34 = vsel %vm403_vm2, %v5224_v9, -inf }
0x25c7   :  { %5229 = vmax.xlane.f32.xlu1 %v5228_v34 }
0x25d8   :  { %5247 = vrot.lane.b32.xlu1 %v9481_v20, %s8839_s14  ;;  %v7405_v20 = vld [vmem:[%s9918_s12 + $0x38] sm:$0xff] }
0x2620   :  { %v5239_v13 = vpop.xlane.xlu0 %5238 }
0x2621   :  { %8387 = vrcp.f32 %v5239_v13 }
0x262e   :  { %v8388_v35 = vpop.eup %8387 }
0x262f   :  { %v5245_v36 = vmul.f32 %v8388_v35, %v8386_v21 }
0x2650   :  { %v5230_v37 = vpop.xlane.xlu1 %5229 }
0x2651   :  { %v5232_v33 = vsub.f32 %v5224_v9, %v5230_v37  ;;  %v7440_v9 = vld [vmem:[#allocation25 + $0x1] ss:$0 sm:$0xff]  ;;  %v7448_v37 = vld [vmem:[#allocation14 + $0x1] ss:$0 sm:$0xff] }
0x2653   :  { %v5235_v38 = vmul.f32 1.442695, %v5232_v33 }
0x2654   :  { %v5248_v39 = vpop.permute.xlu1 %5247 }
0x2655   :  { %8389 = vpow2.f32 %v5235_v38  ;;  %8098 = vmatpush3.msra.mxu1 %v5248_v39 }
0x2656   :  { %8100 = vmatmul.mubr.msk.f32.vlgmr.msra.gmra.mxu1 %vm403_vm2, %v5245_v36  ;;  %8107 = vmatprep.subr.mxu1 %v7405_v20 }
0x2657   :  { %8108 = vmatpush3.msra.mxu1 %v7405_v20 }
0x2658   :  { %8123 = vmatprep.subr.mxu1 %v5638_v27 }
0x2662   :  { %v8390_v40 = vpop.eup %8389 }
0x2663   :  { %v5240_v41 = vsel %vm403_vm2, %v8390_v40, 0.0 }
0x2664   :  { %5241 = vadd.xlane.f32.xlu0 %v5240_v41 }
0x267a   :  { %5323 = vrot.lane.b32.xlu0 %v9479_v18, %s8839_s14 }
0x26ed   :  { %v5242_v42 = vpop.xlane.xlu0 %5241 }
0x26ee   :  { %8391 = vrcp.f32 %v5242_v42 }
0x26f1   :  { %v5324_v14 = vpop.permute.xlu0 %5323 }
0x26f2   :  { %8103 = vmatpush3.msra.mxu0 %v5324_v14 }
0x26f3   :  { %8112 = vmatprep.subr.mxu0 %v7444_v2 }
0x26fb   :  { %v8392_v43 = vpop.eup %8391 }
0x26fc   :  { %v5246_v46 = vmul.f32 %v8392_v43, %v8390_v40  ;;  %v7445_v40 = vld [vmem:[#allocation11 + $0x1] ss:$0 sm:$0xff] }
0x26fe   :  { %8105 = vmatmul.mubr.msk.f32.vlgmr.msra.gmra.mxu0 %vm403_vm2, %v5246_v46 }
0x26ff   :  { %8113 = vmatpush3.msra.mxu0 %v7444_v2 }
0x2700   :  { %8114 = vmatprep.subr.mxu0 %v7443_v3 }
0x2701   :  { %8115 = vmatpush3.msra.mxu0 %v7443_v3 }
0x2702   :  { %8116 = vmatprep.subr.mxu0 %v7442_v5 }
0x2703   :  { %8117 = vmatpush3.msra.mxu0 %v7442_v5 }
0x2704   :  { %8118 = vmatprep.subr.mxu0 %v7441_v10 }
0x2705   :  { %8119 = vmatpush3.msra.mxu0 %v7441_v10 }
0x2716   :  { %v5319_v47 = vpop.f32.mrf.mxu1 }
0x2717   :  { %8109 = vmatprep.mubr.msk.f32.mxu1 %vm403_vm2, %v5319_v47 }
0x2718   :  { %v8101_v48 = vpop.f32.mrf.mxu1 }
0x27be   :  { %v5395_v49 = vpop.f32.mrf.mxu0 }
0x27bf   :  { %8110 = vmatmul.mubr.msk.f32.vlgmr.msra.gmra.mxu1 %vm403_vm2, %v5395_v49 }
0x27c0   :  { %v8106_v18 = vpop.f32.mrf.mxu0  ;;  %8131 = vmatprep.mubr.msk.f32.mxu1 %vm314_vm0, %v8445_v50  ;;  %8124 = vmatpush3.msra.mxu1 %v5638_v27 }
0x287f   :  { %v8111_v51 = vpop.f32.mrf.mxu1 }
0x2880   :  { %v5481_v53 = vadd.f32 %v8111_v51, %v5066_v25 }
0x2881   :  { %v5471_v54 = vpop.f32.mrf.mxu1 }
0x2882   :  { %v5491_v55 = vadd.f32 %v7438_v52, %v5481_v53  ;;  %v5480_v44 = vadd.f32 %v5471_v54, %v5065_v30 }
0x2884   :  { %v5490_v45 = vadd.f32 %v7438_v52, %v5480_v44  ;;  %v5493_v56 = vadd.f32 %v5491_v55, %v9471_v15 }
0x2886   :  { %v5501_v57 = vsel %vm314_vm0, %v5493_v56, 0.0  ;;  %v5492_v58 = vadd.f32 %v5490_v45, %v9469_v12  ;;  %v5637_v12 = vld [vmem:[#allocation13 + $0x30] sm:$0xff] }
0x2887   :  { %5502 = vadd.xlane.f32.xlu0 %v5501_v57  ;;  %8125 = vmatprep.subr.mxu1 %v5637_v12 }
0x2888   :  { %v5498_v59 = vsel %vm314_vm0, %v5492_v58, 0.0  ;;  %8126 = vmatpush3.msra.mxu1 %v5637_v12 }
0x2889   :  { %5499 = vadd.xlane.f32.xlu1 %v5498_v59  ;;  %8127 = vmatprep.subr.mxu1 %v5636_v4 }
0x288a   :  { %8128 = vmatpush3.msra.mxu1 %v5636_v4 }
0x288b   :  { %8129 = vmatprep.subr.mxu1 %v5635_v7 }
0x288c   :  { %8130 = vmatpush3.msra.mxu1 %v5635_v7 }
0x288d   :  { %8132 = vmatmul.mubr.msk.f32.vlgmr.msra.gmra.mxu1 %vm314_vm0, %v8446_v11 }
0x2910   :  { %v5503_v60 = vpop.xlane.xlu0 %5502 }
0x2911   :  { %v5505_v61 = vmul.f32 0.03125, %v5503_v60 }
0x2912   :  { %v5500_v62 = vpop.xlane.xlu1 %5499 }
0x2913   :  { %v5507_v8 = vsub.f32 %v5493_v56, %v5505_v61  ;;  %v5504_v63 = vmul.f32 0.03125, %v5500_v62 }
0x2915   :  { %v5506_v6 = vsub.f32 %v5492_v58, %v5504_v63  ;;  %v5509_v0 = vmul.f32 %v5507_v8, %v5507_v8 }
0x2917   :  { %v5513_v28 = vsel %vm314_vm0, %v5509_v0, 0.0  ;;  %v5508_v1 = vmul.f32 %v5506_v6, %v5506_v6 }
0x2918   :  { %5514 = vadd.xlane.f32.xlu0 %v5513_v28 }
0x2919   :  { %v5510_v15 = vsel %vm314_vm0, %v5508_v1, 0.0 }
0x291a   :  { %5511 = vadd.xlane.f32.xlu1 %v5510_v15  ;;  %v5723_v15 = vld [vmem:[#allocation16 + $0x20] sm:$0xff] }
0x294d   :  { %v8133_v35 = vpop.f32.mrf.mxu1 }
0x294e   :  { %v9671_v33 = vadd.f32 %v8133_v35, %v7448_v37 }
0x294f   :  { %v5713_v38 = vpop.f32.mrf.mxu1 }
0x2950   :  { %8134 = vmatprep.subr.msk.mxu0 %vm403_vm2, %v9671_v33  ;;  %v9675_v39 = vadd.f32 %v7448_v37, %v5713_v38 }
0x29a1   :  { %v5515_v16 = vpop.xlane.xlu0 %5514 }
0x29a2   :  { %v5517_v17 = vmul.f32 0.03125, %v5515_v16 }
0x29a3   :  { %v5512_v19 = vpop.xlane.xlu1 %5511 }
0x29a4   :  { %v5519_v21 = vadd.f32 1e-05, %v5517_v17  ;;  %v5516_v32 = vmul.f32 0.03125, %v5512_v19 }
0x29a6   :  { %8393 = vrsqrt.f32 %v5519_v21  ;;  %v5518_v22 = vadd.f32 1e-05, %v5516_v32 }
0x29a8   :  { %8395 = vrsqrt.f32 %v5518_v22 }
0x29b3   :  { %v8394_v23 = vpop.eup %8393 }
0x29b4   :  { %v5523_v25 = vmul.f32 %v8394_v23, %v5507_v8 }
0x29b5   :  { %v8396_v26 = vpop.eup %8395 }
0x29b6   :  { %v5522_v30 = vmul.f32 %v8396_v26, %v5506_v6  ;;  %v5531_v31 = vmul.f32 %v7439_v24, %v5523_v25 }
0x29b8   :  { %v5530_v29 = vmul.f32 %v7439_v24, %v5522_v30  ;;  %v9665_v13 = vadd.f32 %v7440_v9, %v5531_v31 }
0x29ba   :  { %v9663_v34 = vadd.f32 %v7440_v9, %v5530_v29  ;;  %v5724_v29 = vld [vmem:[#allocation16 + $0x28] sm:$0xff] }
0x29bc   :  { %8120 = vmatprep.mubr.msk.f32.mxu0 %vm314_vm0, %v9663_v34 }
0x29bd   :  { %8121 = vmatmul.mubr.msk.f32.vlgmr.msra.gmra.mxu0 %vm314_vm0, %v9665_v13 }
0x29be   :  { %8135 = vmatpush3.xpose.msk.msra.mxu0 %vm403_vm2, %v9671_v33 }
0x29bf   :  { %8136 = vmatprep.subr.msk.mxu0 %vm403_vm2, %v9675_v39 }
0x29c2   :  { %8137 = vmatpush3.xpose.msk.msra.mxu0 %vm403_vm2, %v9675_v39 }
0x2a7d   :  { %v8122_v36 = vpop.f32.mrf.mxu0 }
0x2a7e   :  { %v9685_v42 = vadd.f32 %v8122_v36, %v7445_v40 }
0x2a7f   :  { %v5625_v41 = vpop.f32.mrf.mxu0 }
0x2a80   :  { %v9683_v20 = vadd.f32 %v7445_v40, %v5625_v41 }
0x2a82   :  { %8138 = vmatprep.mubr.msk.f32.mxu0 %vm403_vm2, %v9683_v20 }
0x2a83   :  { %8139 = vmatmul.mubr.msk.f32.vlgmr.msra.gmra.mxu0 %vm403_vm2, %v9685_v42 }
0x2b43   :  { %v8140_v14 = vpop.f32.mrf.mxu0 }
0x2b44   :  { %v5815_v43 = vmul.f32 0.35355338, %v8140_v14 }
0x2b45   :  { %v5805_v46 = vpop.f32.mrf.mxu0 }
0x2b46   :  { %v5814_v47 = vmul.f32 0.35355338, %v5805_v46  ;;  %v5819_v48 = vsel %vm2388_vm3, %v5815_v43, -inf }
0x2b47   :  { %5820 = vmax.xlane.f32.xlu0 %v5819_v48 }
0x2b48   :  { %v5816_v49 = vsel %vm2388_vm3, %v5814_v47, -inf }
0x2b49   :  { %5817 = vmax.xlane.f32.xlu1 %v5816_v49 }
0x2b5a   :  { %5840 = vrot.lane.b32.xlu1 %v9671_v33, %s8829_s11 }
0x2b5e   :  { %5932 = vrot.lane.b32.xlu1 %v9671_v33, %s8832_s26 }
0x2b62   :  { %5930 = vrot.lane.b32.xlu1 %v9675_v39, %s8832_s26 }
0x2bd0   :  { %v5821_v18 = vpop.xlane.xlu0 %5820 }
0x2bd1   :  { %v5823_v50 = vsub.f32 %v5815_v43, %v5821_v18 }
0x2bd2   :  { %v5818_v51 = vpop.xlane.xlu1 %5817 }
0x2bd3   :  { %v5826_v52 = vmul.f32 1.442695, %v5823_v50  ;;  %v5822_v53 = vsub.f32 %v5814_v47, %v5818_v51 }
0x2bd5   :  { %8397 = vpow2.f32 %v5826_v52  ;;  %v5824_v54 = vmul.f32 1.442695, %v5822_v53 }
0x2bd6   :  { %v5841_v55 = vpop.permute.xlu1 %5840 }
0x2bd7   :  { %8399 = vpow2.f32 %v5824_v54  ;;  %8141 = vmatprep.subr.msk.mxu1 %vm2422_vm4, %v5841_v55 }
0x2bd8   :  { %8142 = vmatpush3.msk.msra.mxu1 %vm2422_vm4, %v5841_v55 }
0x2bda   :  { %v5933_v58 = vpop.permute.xlu1 %5932 }
0x2bde   :  { %v5931_v59 = vpop.permute.xlu1 %5930 }
0x2be2   :  { %v8398_v44 = vpop.eup %8397 }
0x2be3   :  { %v5831_v45 = vsel %vm2388_vm3, %v8398_v44, 0.0 }
0x2be4   :  { %v8400_v56 = vpop.eup %8399  ;;  %5832 = vadd.xlane.f32.xlu0 %v5831_v45 }
0x2be5   :  { %v5828_v57 = vsel %vm2388_vm3, %v8400_v56, 0.0 }
0x2be6   :  { %5829 = vadd.xlane.f32.xlu1 %v5828_v57 }
0x2bf7   :  { %5928 = vrot.lane.b32.xlu1 %v9685_v42, %s8832_s26 }
0x2bfa   :  { %5838 = vrot.lane.b32.xlu0 %v9675_v39, %s8829_s11 }
0x2bfe   :  { %5926 = vrot.lane.b32.xlu0 %v9683_v20, %s8832_s26 }
0x2c6d   :  { %v5833_v60 = vpop.xlane.xlu0 %5832 }
0x2c6e   :  { %8401 = vrcp.f32 %v5833_v60 }
0x2c6f   :  { %v5830_v61 = vpop.xlane.xlu1 %5829 }
0x2c70   :  { %8403 = vrcp.f32 %v5830_v61 }
0x2c71   :  { %v5839_v62 = vpop.permute.xlu0 %5838 }
0x2c72   :  { %8143 = vmatprep.subr.mxu1 %v5839_v62 }
0x2c73   :  { %8144 = vmatpush3.msra.mxu1 %v5839_v62  ;;  %v5929_v1 = vpop.permute.xlu1 %5928 }
0x2c74   :  { %8148 = vmatprep.subr.msk.mxu1 %vm403_vm2, %v5933_v58 }
0x2c75   :  { %v5927_v28 = vpop.permute.xlu0 %5926 }
0x2c7b   :  { %v8402_v8 = vpop.eup %8401 }
0x2c7c   :  { %v5837_v0 = vmul.f32 %v8402_v8, %v8398_v44 }
0x2c7d   :  { %v8404_v63 = vpop.eup %8403 }
0x2c7e   :  { %v5836_v6 = vmul.f32 %v8404_v63, %v8400_v56 }
0x2c80   :  { %8145 = vmatprep.mubr.msk.f32.mxu1 %vm2388_vm3, %v5836_v6 }
0x2c81   :  { %8146 = vmatmul.mubr.msk.f32.vlgmr.msra.gmra.mxu1 %vm2388_vm3, %v5837_v0 }
0x2c82   :  { %8149 = vmatpush3.xpose.msk.msra.mxu1 %vm403_vm2, %v5933_v58  ;;  %8152 = vmatprep.mubr.msk.f32.mxu1 %vm403_vm2, %v5927_v28 }
0x2c83   :  { %8150 = vmatprep.subr.msk.mxu1 %vm403_vm2, %v5931_v59 }
0x2c86   :  { %8151 = vmatpush3.xpose.msk.msra.mxu1 %vm403_vm2, %v5931_v59 }
0x2c87   :  { %8167 = vmatprep.subr.mxu1 %v5723_v15 }
0x2c89   :  { %8153 = vmatmul.mubr.msk.f32.vlgmr.msra.gmra.mxu1 %vm403_vm2, %v5929_v1 }
0x2c8a   :  { %8168 = vmatpush3.msra.mxu1 %v5723_v15 }
0x2d41   :  { %v8147_v27 = vpop.f32.mrf.mxu1 }
0x2d43   :  { %v5917_v12 = vpop.f32.mrf.mxu1 }
0x2d44   :  { %8169 = vmatprep.mubr.msk.f32.mxu1 %vm403_vm2, %v5917_v12 }
0x2d45   :  { %8170 = vmatmul.mubr.msk.f32.vlgmr.msra.gmra.mxu1 %vm403_vm2, %v8147_v27 }
0x2d49   :  { %v8154_v2 = vpop.f32.mrf.mxu1 }
0x2d4a   :  { %v6018_v3 = vmul.f32 0.35355338, %v8154_v2 }
0x2d4b   :  { %v6008_v4 = vpop.f32.mrf.mxu1 }
0x2d4c   :  { %v6017_v5 = vmul.f32 0.35355338, %v6008_v4  ;;  %v6022_v7 = vsel %vm2388_vm3, %v6018_v3, -inf }
0x2d4d   :  { %6023 = vmax.xlane.f32.xlu1 %v6022_v7 }
0x2d4e   :  { %v6019_v10 = vsel %vm2388_vm3, %v6017_v5, -inf }
0x2d4f   :  { %6020 = vmax.xlane.f32.xlu0 %v6019_v10 }
0x2d5e   :  { %6043 = vrot.lane.b32.xlu1 %v9671_v33, %s8831_s2 }
0x2d62   :  { %6297 = vrot.lane.b32.xlu1 %v9671_v33, %s8834_s30 }
0x2d66   :  { %6295 = vrot.lane.b32.xlu1 %v9675_v39, %s8834_s30 }
0x2d6a   :  { %6293 = vrot.lane.b32.xlu1 %v9685_v42, %s8834_s30 }
0x2d6e   :  { %6581 = vrot.lane.b32.xlu1 %v9675_v39, %s8838_s19 }
0x2d72   :  { %6579 = vrot.lane.b32.xlu1 %v9685_v42, %s8838_s19 }
0x2dd6   :  { %v6024_v11 = vpop.xlane.xlu1 %6023 }
0x2dd7   :  { %v6026_v16 = vsub.f32 %v6018_v3, %v6024_v11 }
0x2dd8   :  { %v6021_v17 = vpop.xlane.xlu0 %6020 }
0x2dd9   :  { %v6029_v19 = vmul.f32 1.442695, %v6026_v16  ;;  %v6025_v21 = vsub.f32 %v6017_v5, %v6021_v17  ;;  %v5725_v17 = vld [vmem:[#allocation16 + $0x30] sm:$0xff] }
0x2dda   :  { %v6044_v32 = vpop.permute.xlu1 %6043 }
0x2ddb   :  { %8405 = vpow2.f32 %v6029_v19  ;;  %v6027_v22 = vmul.f32 1.442695, %v6025_v21  ;;  %8155 = vmatprep.subr.msk.mxu0 %vm2422_vm4, %v6044_v32 }
0x2ddc   :  { %8156 = vmatpush3.msk.msra.mxu0 %vm2422_vm4, %v6044_v32 }
0x2ddd   :  { %8407 = vpow2.f32 %v6027_v22 }
0x2dde   :  { %v6298_v40 = vpop.permute.xlu1 %6297 }
0x2de2   :  { %v6296_v42 = vpop.permute.xlu1 %6295 }
0x2de6   :  { %v6294_v46 = vpop.permute.xlu1 %6293 }
0x2de8   :  { %v8406_v23 = vpop.eup %8405 }
0x2de9   :  { %v6034_v24 = vsel %vm2388_vm3, %v8406_v23, 0.0 }
0x2dea   :  { %v8408_v25 = vpop.eup %8407  ;;  %6035 = vadd.xlane.f32.xlu0 %v6034_v24  ;;  %v6582_v48 = vpop.permute.xlu1 %6581 }
0x2deb   :  { %v6031_v26 = vsel %vm2388_vm3, %v8408_v25, 0.0 }
0x2dee   :  { %6032 = vadd.xlane.f32.xlu0 %v6031_v26  ;;  %v6580_v49 = vpop.permute.xlu1 %6579 }
0x2e04   :  { %6041 = vrot.lane.b32.xlu0 %v9675_v39, %s8831_s2 }
0x2e08   :  { %6291 = vrot.lane.b32.xlu0 %v9683_v20, %s8834_s30 }
0x2e0c   :  { %6583 = vrot.lane.b32.xlu0 %v9671_v33, %s8838_s19 }
0x2e10   :  { %6577 = vrot.lane.b32.xlu0 %v9683_v20, %s8838_s19 }
0x2e73   :  { %v6036_v30 = vpop.xlane.xlu0 %6035 }
0x2e74   :  { %8409 = vrcp.f32 %v6036_v30 }
0x2e77   :  { %v6033_v31 = vpop.xlane.xlu0 %6032 }
0x2e78   :  { %8411 = vrcp.f32 %v6033_v31 }
0x2e7b   :  { %v6042_v9 = vpop.permute.xlu0 %6041 }
0x2e7c   :  { %8157 = vmatprep.subr.mxu0 %v6042_v9 }
0x2e7d   :  { %8158 = vmatpush3.msra.mxu0 %v6042_v9  ;;  %v8171_v9 = vpop.f32.mrf.mxu1 }
0x2e7e   :  { %8162 = vmatprep.subr.mxu0 %v5724_v29 }
0x2e7f   :  { %v6292_v41 = vpop.permute.xlu0 %6291 }
0x2e81   :  { %v8410_v37 = vpop.eup %8409 }
0x2e82   :  { %v6040_v36 = vmul.f32 %v8410_v37, %v8406_v23 }
0x2e83   :  { %v6584_v43 = vpop.permute.xlu0 %6583 }
0x2e85   :  { %v8412_v35 = vpop.eup %8411 }
0x2e86   :  { %v6039_v38 = vmul.f32 %v8412_v35, %v8408_v25 }
0x2e87   :  { %v6578_v47 = vpop.permute.xlu0 %6577 }
0x2e88   :  { %8159 = vmatprep.mubr.msk.f32.mxu0 %vm2388_vm3, %v6039_v38 }
0x2e89   :  { %8160 = vmatmul.mubr.msk.f32.vlgmr.msra.gmra.mxu0 %vm2388_vm3, %v6040_v36 }
0x2e8a   :  { %8163 = vmatpush3.msra.mxu0 %v5724_v29  ;;  %v6282_v29 = vpop.f32.mrf.mxu1 }
0x2e8b   :  { %8172 = vmatprep.subr.msk.mxu0 %vm403_vm2, %v6298_v40 }
0x2f49   :  { %v8161_v20 = vpop.f32.mrf.mxu0 }
0x2f4b   :  { %v6120_v14 = vpop.f32.mrf.mxu0 }
0x2f4c   :  { %8164 = vmatprep.mubr.msk.f32.mxu0 %vm403_vm2, %v6120_v14 }
0x2f4d   :  { %8165 = vmatmul.mubr.msk.f32.vlgmr.msra.gmra.mxu0 %vm403_vm2, %v8161_v20 }
0x2f4e   :  { %8173 = vmatpush3.xpose.msk.msra.mxu0 %vm403_vm2, %v6298_v40  ;;  %8176 = vmatprep.mubr.msk.f32.mxu0 %vm403_vm2, %v6292_v41 }
0x2f4f   :  { %8174 = vmatprep.subr.msk.mxu0 %vm403_vm2, %v6296_v42 }
0x2f52   :  { %8175 = vmatpush3.xpose.msk.msra.mxu0 %vm403_vm2, %v6296_v42  ;;  %v5726_v42 = vld [vmem:[#allocation16 + $0x38] sm:$0xff] }
0x2f53   :  { %8191 = vmatprep.subr.msk.mxu0 %vm403_vm2, %v6584_v43 }
0x2f55   :  { %8177 = vmatmul.mubr.msk.f32.vlgmr.msra.gmra.mxu0 %vm403_vm2, %v6294_v46 }
0x2f56   :  { %8192 = vmatpush3.xpose.msk.msra.mxu0 %vm403_vm2, %v6584_v43  ;;  %8195 = vmatprep.mubr.msk.f32.mxu0 %vm403_vm2, %v6578_v47 }
0x2f57   :  { %8193 = vmatprep.subr.msk.mxu0 %vm403_vm2, %v6582_v48 }
0x2f5a   :  { %8194 = vmatpush3.xpose.msk.msra.mxu0 %vm403_vm2, %v6582_v48 }
0x2f5d   :  { %8196 = vmatmul.mubr.msk.f32.vlgmr.msra.gmra.mxu0 %vm403_vm2, %v6580_v49 }
0x300d   :  { %v9761_v18 = vpop.f32.mrf.mxu0 }
0x300e   :  { %v6288_v14 = vadd.f32 %v8171_v9, %v9761_v18  ;;  %v7497_v9 = vld [vmem:[%s9886_s15 + $0x58] sm:$0xff] }
0x300f   :  { %v9763_v50 = vpop.f32.mrf.mxu0 }
0x3010   :  { %v6283_v46 = vadd.f32 %v6282_v29, %v9763_v50  ;;  %v7496_v29 = vld [vmem:[%s9886_s15 + $0x50] sm:$0xff] }
0x3015   :  { %v8178_v51 = vpop.f32.mrf.mxu0 }
0x3016   :  { %v6383_v52 = vmul.f32 0.35355338, %v8178_v51 }
0x3017   :  { %v6373_v53 = vpop.f32.mrf.mxu0 }
0x3018   :  { %v6382_v54 = vmul.f32 0.35355338, %v6373_v53  ;;  %v6387_v55 = vsel %vm2388_vm3, %v6383_v52, -inf }
0x3019   :  { %6388 = vmax.xlane.f32.xlu1 %v6387_v55 }
0x301a   :  { %v6384_v44 = vsel %vm2388_vm3, %v6382_v54, -inf }
0x301b   :  { %6385 = vmax.xlane.f32.xlu0 %v6384_v44 }
0x301d   :  { %v8197_v45 = vpop.f32.mrf.mxu0 }
0x301e   :  { %v6669_v4 = vmul.f32 0.35355338, %v8197_v45 }
0x301f   :  { %v6659_v56 = vpop.f32.mrf.mxu0 }
0x3020   :  { %v6668_v57 = vmul.f32 0.35355338, %v6659_v56  ;;  %v6673_v7 = vsel %vm2388_vm3, %v6669_v4, -inf }
0x3022   :  { %v6670_v58 = vsel %vm2388_vm3, %v6668_v57, -inf }
0x302a   :  { %6408 = vrot.lane.b32.xlu1 %v9671_v33, %s8835_s17 }
0x304e   :  { %6671 = vmax.xlane.f32.xlu1 %v6670_v58 }
0x30a2   :  { %v6389_v59 = vpop.xlane.xlu1 %6388 }
0x30a3   :  { %v6391_v60 = vsub.f32 %v6383_v52, %v6389_v59 }
0x30a4   :  { %v6386_v61 = vpop.xlane.xlu0 %6385 }
0x30a5   :  { %v6394_v62 = vmul.f32 1.442695, %v6391_v60  ;;  %v6390_v8 = vsub.f32 %v6382_v54, %v6386_v61  ;;  %v7487_v54 = vld [vmem:[#allocation17 + $0x1] ss:$0 sm:$0xff] }
0x30a6   :  { %v6409_v63 = vpop.permute.xlu1 %6408 }
0x30a7   :  { %8413 = vpow2.f32 %v6394_v62  ;;  %v6392_v6 = vmul.f32 1.442695, %v6390_v8  ;;  %8179 = vmatprep.subr.msk.mxu1 %vm2422_vm4, %v6409_v63 }
0x30a8   :  { %8180 = vmatpush3.msk.msra.mxu1 %vm2422_vm4, %v6409_v63 }
0x30a9   :  { %8415 = vpow2.f32 %v6392_v6 }
0x30b4   :  { %v8414_v0 = vpop.eup %8413 }
0x30b5   :  { %v6399_v28 = vsel %vm2388_vm3, %v8414_v0, 0.0 }
0x30b6   :  { %v8416_v1 = vpop.eup %8415  ;;  %6400 = vadd.xlane.f32.xlu0 %v6399_v28 }
0x30b7   :  { %v6396_v15 = vsel %vm2388_vm3, %v8416_v1, 0.0 }
0x30ba   :  { %6397 = vadd.xlane.f32.xlu0 %v6396_v15  ;;  %v6925_v15 = vld [vmem:[#allocation19 + $0x38] sm:$0xff] }
0x30bb   :  { %8210 = vmatprep.subr.mxu0 %v6925_v15 }
0x30bc   :  { %8211 = vmatpush3.msra.mxu0 %v6925_v15 }
0x30d0   :  { %6406 = vrot.lane.b32.xlu0 %v9675_v39, %s8835_s17 }
0x30d7   :  { %v6672_v27 = vpop.xlane.xlu1 %6671 }
0x30d8   :  { %v6676_v12 = vsub.f32 %v6668_v57, %v6672_v27  ;;  %v6923_v27 = vld [vmem:[#allocation19 + $0x28] sm:$0xff] }
0x30da   :  { %v6678_v2 = vmul.f32 1.442695, %v6676_v12  ;;  %v6922_v12 = vld [vmem:[#allocation19 + $0x20] sm:$0xff] }
0x30dc   :  { %8417 = vpow2.f32 %v6678_v2  ;;  %v7501_v2 = vld [vmem:[%s9886_s15 + $0x78] sm:$0xff] }
0x30e9   :  { %v8418_v3 = vpop.eup %8417 }
0x30ea   :  { %v6682_v5 = vsel %vm2388_vm3, %v8418_v3, 0.0 }
0x30eb   :  { %6683 = vadd.xlane.f32.xlu1 %v6682_v5  ;;  %v7498_v5 = vld [vmem:[%s9886_s15 + $0x60] sm:$0xff] }
0x30ef   :  { %6674 = vmax.xlane.f32.xlu0 %v6673_v7 }
0x30fc   :  { %6694 = vrot.lane.b32.xlu1 %v9671_v33, %s8837_s18 }
0x313f   :  { %v6401_v10 = vpop.xlane.xlu0 %6400 }
0x3140   :  { %8419 = vrcp.f32 %v6401_v10 }
0x3143   :  { %v6398_v11 = vpop.xlane.xlu0 %6397 }
0x3144   :  { %8421 = vrcp.f32 %v6398_v11 }
0x3147   :  { %v6407_v16 = vpop.permute.xlu0 %6406 }
0x3148   :  { %8181 = vmatprep.subr.mxu1 %v6407_v16 }
0x3149   :  { %8182 = vmatpush3.msra.mxu1 %v6407_v16 }
0x314a   :  { %8186 = vmatprep.subr.mxu1 %v5725_v17 }
0x314d   :  { %v8420_v19 = vpop.eup %8419 }
0x314e   :  { %v6405_v22 = vmul.f32 %v8420_v19, %v8414_v0 }
0x3151   :  { %v8422_v21 = vpop.eup %8421 }
0x3152   :  { %v6404_v32 = vmul.f32 %v8422_v21, %v8416_v1 }
0x3154   :  { %8183 = vmatprep.mubr.msk.f32.mxu1 %vm2388_vm3, %v6404_v32  ;;  %v7489_v32 = vld [vmem:[#allocation26 + $0x1] ss:$0 sm:$0xff] }
0x3155   :  { %8184 = vmatmul.mubr.msk.f32.vlgmr.msra.gmra.mxu1 %vm2388_vm3, %v6405_v22 }
0x3156   :  { %8187 = vmatpush3.msra.mxu1 %v5725_v17 }
0x3174   :  { %v6684_v23 = vpop.xlane.xlu1 %6683 }
0x3178   :  { %v6695_v33 = vpop.permute.xlu1 %6694  ;;  %v6675_v24 = vpop.xlane.xlu0 %6674 }
0x3179   :  { %v6677_v25 = vsub.f32 %v6669_v4, %v6675_v24  ;;  %8198 = vmatprep.subr.msk.mxu1 %vm2422_vm4, %v6695_v33  ;;  %v7499_v4 = vld [vmem:[%s9886_s15 + $0x68] sm:$0xff] }
0x317b   :  { %v6680_v26 = vmul.f32 1.442695, %v6677_v25  ;;  %v7490_v25 = vld [vmem:[%s9891_s20 + $0x1] ss:$0 sm:$0xff] }
0x317d   :  { %8423 = vpow2.f32 %v6680_v26 }
0x317e   :  { %8425 = vrcp.f32 %v6684_v23 }
0x318a   :  { %v8424_v30 = vpop.eup %8423 }
0x318b   :  { %v6685_v31 = vsel %vm2388_vm3, %v8424_v30, 0.0  ;;  %v8426_v37 = vpop.eup %8425 }
0x318c   :  { %6686 = vadd.xlane.f32.xlu0 %v6685_v31  ;;  %v6690_v40 = vmul.f32 %v8426_v37, %v8418_v3  ;;  %v7500_v3 = vld [vmem:[%s9886_s15 + $0x70] sm:$0xff]  ;;  %v7495_v37 = vld [vmem:[%s9886_s15 + $0x48] sm:$0xff] }
0x31a2   :  { %6692 = vrot.lane.b32.xlu0 %v9675_v39, %s8837_s18 }
0x3215   :  { %v8185_v35 = vpop.f32.mrf.mxu1  ;;  %v6687_v38 = vpop.xlane.xlu0 %6686 }
0x3216   :  { %8427 = vrcp.f32 %v6687_v38  ;;  %v7491_v38 = vld [vmem:[#allocation20 + $0x1] ss:$0 sm:$0xff] }
0x3217   :  { %v6485_v36 = vpop.f32.mrf.mxu1 }
0x3218   :  { %8188 = vmatprep.mubr.msk.f32.mxu1 %vm403_vm2, %v6485_v36 }
0x3219   :  { %8189 = vmatmul.mubr.msk.f32.vlgmr.msra.gmra.mxu1 %vm403_vm2, %v8185_v35  ;;  %v6693_v41 = vpop.permute.xlu0 %6692  ;;  %v7494_v35 = vld [vmem:[%s9886_s15 + $0x40] sm:$0xff] }
0x321a   :  { %8199 = vmatpush3.msk.msra.mxu1 %vm2422_vm4, %v6695_v33  ;;  %8202 = vmatprep.mubr.msk.f32.mxu1 %vm2388_vm3, %v6690_v40 }
0x321b   :  { %8200 = vmatprep.subr.mxu1 %v6693_v41 }
0x321c   :  { %8201 = vmatpush3.msra.mxu1 %v6693_v41 }
0x321d   :  { %8205 = vmatprep.subr.mxu1 %v5726_v42 }
0x3223   :  { %v8428_v39 = vpop.eup %8427 }
0x3224   :  { %v6691_v20 = vmul.f32 %v8428_v39, %v8424_v30 }
0x3226   :  { %8203 = vmatmul.mubr.msk.f32.vlgmr.msra.gmra.mxu1 %vm2388_vm3, %v6691_v20 }
0x3227   :  { %8206 = vmatpush3.msra.mxu1 %v5726_v42 }
0x3228   :  { %8221 = vmatprep.subr.mxu1 %v7501_v2 }
0x32d9   :  { %v8190_v43 = vpop.f32.mrf.mxu1 }
0x32da   :  { %v6576_v47 = vadd.f32 %v8190_v43, %v6288_v14  ;;  %v7502_v14 = vld [vmem:[#allocation22 + $0x1] ss:$0 sm:$0xff] }
0x32db   :  { %v6566_v48 = vpop.f32.mrf.mxu1 }
0x32dc   :  { %v6575_v49 = vadd.f32 %v6566_v48, %v6283_v46 }
0x32e6   :  { %v8204_v51 = vpop.f32.mrf.mxu1 }
0x32e8   :  { %v6771_v52 = vpop.f32.mrf.mxu1 }
0x32e9   :  { %8207 = vmatprep.mubr.msk.f32.mxu1 %vm403_vm2, %v6771_v52 }
0x32ea   :  { %8208 = vmatmul.mubr.msk.f32.vlgmr.msra.gmra.mxu1 %vm403_vm2, %v8204_v51 }
0x32eb   :  { %8222 = vmatpush3.msra.mxu1 %v7501_v2 }
0x32ec   :  { %8223 = vmatprep.subr.mxu1 %v7500_v3 }
0x32ed   :  { %8224 = vmatpush3.msra.mxu1 %v7500_v3 }
0x32ee   :  { %8225 = vmatprep.subr.mxu1 %v7499_v4 }
0x32ef   :  { %8226 = vmatpush3.msra.mxu1 %v7499_v4  ;;  %v7508_v4 = vld [vmem:[%s9893_s22 + $0x1] ss:$0 sm:$0xff] }
0x32f0   :  { %8227 = vmatprep.subr.mxu1 %v7498_v5 }
0x32f1   :  { %8228 = vmatpush3.msra.mxu1 %v7498_v5 }
0x32f2   :  { %8229 = vmatprep.subr.mxu1 %v7497_v9 }
0x32f3   :  { %8230 = vmatpush3.msra.mxu1 %v7497_v9 }
0x32f4   :  { %8231 = vmatprep.subr.mxu1 %v7496_v29 }
0x32f5   :  { %8232 = vmatpush3.msra.mxu1 %v7496_v29 }
0x32f6   :  { %8233 = vmatprep.subr.mxu1 %v7495_v37 }
0x32f7   :  { %8234 = vmatpush3.msra.mxu1 %v7495_v37 }
0x32f8   :  { %8235 = vmatprep.subr.mxu1 %v7494_v35 }
0x32f9   :  { %8236 = vmatpush3.msra.mxu1 %v7494_v35 }
0x33aa   :  { %v8209_v53 = vpop.f32.mrf.mxu1 }
0x33ab   :  { %v6862_v55 = vadd.f32 %v8209_v53, %v6576_v47 }
0x33ac   :  { %v6852_v44 = vpop.f32.mrf.mxu1 }
0x33ad   :  { %v6872_v45 = vadd.f32 %v7487_v54, %v6862_v55  ;;  %v6861_v56 = vadd.f32 %v6852_v44, %v6575_v49 }
0x33af   :  { %v6871_v57 = vadd.f32 %v7487_v54, %v6861_v56  ;;  %v6874_v18 = vadd.f32 %v6872_v45, %v9665_v13 }
0x33b1   :  { %v6882_v50 = vsel %vm314_vm0, %v6874_v18, 0.0  ;;  %v6873_v58 = vadd.f32 %v6871_v57, %v9663_v34  ;;  %v6924_v34 = vld [vmem:[#allocation19 + $0x30] sm:$0xff] }
0x33b2   :  { %6883 = vadd.xlane.f32.xlu0 %v6882_v50  ;;  %8212 = vmatprep.subr.mxu0 %v6924_v34 }
0x33b3   :  { %v6879_v59 = vsel %vm314_vm0, %v6873_v58, 0.0  ;;  %8213 = vmatpush3.msra.mxu0 %v6924_v34  ;;  %v7507_v34 = vld [vmem:[%s9892_s21 + $0x1] ss:$0 sm:$0xff]  ;;  %s8840_s21 = smov [#allocation28]  }
0x33b4   :  { %6880 = vadd.xlane.f32.xlu1 %v6879_v59  ;;  %8214 = vmatprep.subr.mxu0 %v6923_v27  ;;  %s7284_s22 = sshll.u32 %s8840_s21, 4  ;;  %s7285_s22 = int_to_ptr.vmem [resolvable:$true] %s7284_s22 }
0x33b5   :  { %8215 = vmatpush3.msra.mxu0 %v6923_v27  ;;  %p8772_p11 = scmp.lt.s32.totalorder %s7285_s22, %s7285_s22 }
0x33b6   :  { %8216 = vmatprep.subr.mxu0 %v6922_v12 }
0x33b7   :  { %8217 = vmatpush3.msra.mxu0 %v6922_v12 }
0x343b   :  { %v6884_v60 = vpop.xlane.xlu0 %6883 }
0x343c   :  { %v6886_v61 = vmul.f32 0.03125, %v6884_v60  ;;  %v7166_v60 = vld [vmem:[%s9894_s23 + $0x18] sm:$0xff] }
0x343d   :  { %v6881_v62 = vpop.xlane.xlu1 %6880  ;;  %8240 = vmatprep.subr.mxu0 %v7166_v60 }
0x343e   :  { %v6888_v8 = vsub.f32 %v6874_v18, %v6886_v61  ;;  %v6885_v63 = vmul.f32 0.03125, %v6881_v62  ;;  %v7165_v61 = vld [vmem:[%s9894_s23 + $0x10] sm:$0xff]  ;;  %v7164_v62 = vld [vmem:[%s9894_s23 + $0x8] sm:$0xff] }
0x3440   :  { %v6887_v6 = vsub.f32 %v6873_v58, %v6885_v63  ;;  %v6890_v0 = vmul.f32 %v6888_v8, %v6888_v8 }
0x3442   :  { %v6894_v28 = vsel %vm314_vm0, %v6890_v0, 0.0  ;;  %v6889_v1 = vmul.f32 %v6887_v6, %v6887_v6 }
0x3443   :  { %6895 = vadd.xlane.f32.xlu0 %v6894_v28 }
0x3444   :  { %v6891_v13 = vsel %vm314_vm0, %v6889_v1, 0.0 }
0x3445   :  { %6892 = vadd.xlane.f32.xlu1 %v6891_v13 }
0x34cc   :  { %v6896_v7 = vpop.xlane.xlu0 %6895 }
0x34cd   :  { %v6898_v10 = vmul.f32 0.03125, %v6896_v7 }
0x34ce   :  { %v6893_v11 = vpop.xlane.xlu1 %6892 }
0x34cf   :  { %v6900_v16 = vadd.f32 1e-05, %v6898_v10  ;;  %v6897_v17 = vmul.f32 0.03125, %v6893_v11  ;;  %v7509_v11 = vld [vmem:[%s9895_s24] ss:$0 sm:$0xff]  ;;  %s8767_s24 = scalar_lea.vmem %s7285_s22, 256 }
0x34d0   :  { %p8768_p10 = scmp.ne.s32.totalorder %s7285_s22, %s8767_s24  ;;  %p8773_p12 = scmp.lt.s32.totalorder %s8767_s24, %s8767_s24 }
0x34d1   :  { %8429 = vrsqrt.f32 %v6900_v16  ;;  %v6899_v19 = vadd.f32 1e-05, %v6897_v17 }
0x34d2   :  { %p8774_p13 = por %p8773_p12, %p8772_p11 }
0x34d3   :  { %8431 = vrsqrt.f32 %v6899_v19 }
0x34d4   :  { %p8775_p0 = pnand %p8774_p13, %p8768_p10 }
0x34de   :  { %v8430_v21 = vpop.eup %8429 }
0x34df   :  { %v6904_v22 = vmul.f32 %v8430_v21, %v6888_v8  ;;  %v7163_v8 = vld [vmem:[%s9894_s23] sm:$0xff] }
0x34e0   :  { %v8432_v23 = vpop.eup %8431 }
0x34e1   :  { %v6903_v33 = vmul.f32 %v8432_v23, %v6887_v6  ;;  %v6912_v24 = vmul.f32 %v7489_v32, %v6904_v22 }
0x34e3   :  { %v6911_v26 = vmul.f32 %v7489_v32, %v6903_v33  ;;  %v6920_v31 = vadd.f32 %v7490_v25, %v6912_v24 }
0x34e5   :  { %v6919_v30 = vadd.f32 %v7490_v25, %v6911_v26 }
0x34e7   :  { %8218 = vmatprep.mubr.msk.f32.mxu0 %vm314_vm0, %v6919_v30 }
0x34e8   :  { %8219 = vmatmul.mubr.msk.f32.vlgmr.msra.gmra.mxu0 %vm314_vm0, %v6920_v31 }
0x34e9   :  { %8241 = vmatpush3.msra.mxu0 %v7166_v60 }
0x34ea   :  { %8242 = vmatprep.subr.mxu0 %v7165_v61 }
0x34eb   :  { %8243 = vmatpush3.msra.mxu0 %v7165_v61 }
0x34ec   :  { %8244 = vmatprep.subr.mxu0 %v7164_v62 }
0x34ed   :  { %8245 = vmatpush3.msra.mxu0 %v7164_v62 }
0x34ee   :  { %8246 = vmatprep.subr.mxu0 %v7163_v8 }
0x34ef   :  { %8247 = vmatpush3.msra.mxu0 %v7163_v8 }
0x35a8   :  { %v8220_v36 = vpop.f32.mrf.mxu0 }
0x35a9   :  { %v7012_v40 = vadd.f32 %v8220_v36, %v7491_v38 }
0x35aa   :  { %v7006_v41 = vpop.f32.mrf.mxu0 }
0x35ab   :  { %v7007_v39 = vadd.f32 %v7491_v38, %v7006_v41  ;;  %v7016_v42 = vmax.f32 %v7012_v40, 0.0 }
0x35ad   :  { %v7015_v20 = vmax.f32 %v7007_v39, 0.0 }
0x35af   :  { %8237 = vmatprep.mubr.msk.f32.mxu1 %vm3601_vm5, %v7015_v20 }
0x35b0   :  { %8238 = vmatmul.mubr.msk.f32.vlgmr.msra.gmra.mxu1 %vm3601_vm5, %v7016_v42 }
0x3670   :  { %v8239_v43 = vpop.f32.mrf.mxu1 }
0x3671   :  { %v7112_v46 = vadd.f32 %v8239_v43, %v7502_v14 }
0x3672   :  { %v7106_v47 = vpop.f32.mrf.mxu1 }
0x3673   :  { %v7116_v48 = vadd.f32 %v7112_v46, %v6920_v31  ;;  %v7107_v49 = vadd.f32 %v7502_v14, %v7106_v47 }
0x3675   :  { %v7115_v51 = vadd.f32 %v7107_v49, %v6919_v30  ;;  %v7124_v52 = vsel %vm314_vm0, %v7116_v48, 0.0 }
0x3676   :  { %7125 = vadd.xlane.f32.xlu0 %v7124_v52 }
0x3677   :  { %v7121_v53 = vsel %vm314_vm0, %v7115_v51, 0.0 }
0x3678   :  { %7122 = vadd.xlane.f32.xlu1 %v7121_v53 }
0x36ff   :  { %v7126_v54 = vpop.xlane.xlu0 %7125 }
0x3700   :  { %v7128_v55 = vmul.f32 0.03125, %v7126_v54 }
0x3701   :  { %v7123_v44 = vpop.xlane.xlu1 %7122 }
0x3702   :  { %v7130_v45 = vsub.f32 %v7116_v48, %v7128_v55  ;;  %v7127_v56 = vmul.f32 0.03125, %v7123_v44 }
0x3704   :  { %v7129_v57 = vsub.f32 %v7115_v51, %v7127_v56  ;;  %v7132_v18 = vmul.f32 %v7130_v45, %v7130_v45 }
0x3706   :  { %v7136_v50 = vsel %vm314_vm0, %v7132_v18, 0.0  ;;  %v7131_v58 = vmul.f32 %v7129_v57, %v7129_v57 }
0x3707   :  { %7137 = vadd.xlane.f32.xlu0 %v7136_v50 }
0x3708   :  { %v7133_v59 = vsel %vm314_vm0, %v7131_v58, 0.0 }
0x3709   :  { %7134 = vadd.xlane.f32.xlu1 %v7133_v59 }
0x3790   :  { %v7138_v63 = vpop.xlane.xlu0 %7137 }
0x3791   :  { %v7140_v6 = vmul.f32 0.03125, %v7138_v63 }
0x3792   :  { %v7135_v0 = vpop.xlane.xlu1 %7134 }
0x3793   :  { %v7142_v28 = vadd.f32 1e-05, %v7140_v6  ;;  %v7139_v1 = vmul.f32 0.03125, %v7135_v0 }
0x3795   :  { %8433 = vrsqrt.f32 %v7142_v28  ;;  %v7141_v13 = vadd.f32 1e-05, %v7139_v1 }
0x3797   :  { %8435 = vrsqrt.f32 %v7141_v13 }
0x37a2   :  { %v8434_v15 = vpop.eup %8433 }
0x37a3   :  { %v7146_v27 = vmul.f32 %v8434_v15, %v7130_v45 }
0x37a4   :  { %v8436_v12 = vpop.eup %8435 }
0x37a5   :  { %v7145_v2 = vmul.f32 %v8436_v12, %v7129_v57  ;;  %v7154_v3 = vmul.f32 %v7507_v34, %v7146_v27 }
0x37a7   :  { %v7153_v5 = vmul.f32 %v7507_v34, %v7145_v2  ;;  %v7162_v10 = vadd.f32 %v7508_v4, %v7154_v3 }
0x37a9   :  { %v7161_v7 = vadd.f32 %v7508_v4, %v7153_v5 }
0x37ab   :  { %8248 = vmatprep.mubr.msk.f32.mxu0 %vm314_vm0, %v7161_v7 }
0x37ac   :  { %8249 = vmatmul.mubr.msk.f32.vlgmr.msra.gmra.mxu0 %vm314_vm0, %v7162_v10 }
0x386c   :  { %v8250_v16 = vpop.f32.mrf.mxu0 }
0x386d   :  { %v7252_v17 = vadd.f32 %v8250_v16, %v7509_v11 }
0x386e   :  { %v7246_v19 = vpop.f32.mrf.mxu0 }
0x386f   :  { %v7247_v21 = vadd.f32 %v7509_v11, %v7246_v19  ;;  %v7258_v32 = vsel %vm314_vm0, %v7252_v17, -inf }
0x3870   :  { %7259 = vmax.xlane.f32.xlu0 %v7258_v32 }
0x3871   :  { %v7255_v22 = vsel %vm314_vm0, %v7247_v21, -inf }
0x3872   :  { %7256 = vmax.xlane.f32.xlu1 %v7255_v22 }
0x38f9   :  { %v7260_v23 = vpop.xlane.xlu0 %7259 }
0x38fa   :  { %v7262_v33 = vsub.f32 %v7252_v17, %v7260_v23 }
0x38fb   :  { %v7257_v24 = vpop.xlane.xlu1 %7256 }
0x38fc   :  { %v7265_v25 = vmul.f32 1.442695, %v7262_v33  ;;  %v7261_v26 = vsub.f32 %v7247_v21, %v7257_v24 }
0x38fe   :  { %8437 = vpow2.f32 %v7265_v25  ;;  %v7263_v30 = vmul.f32 1.442695, %v7261_v26 }
0x3900   :  { %8439 = vpow2.f32 %v7263_v30 }
0x390b   :  { %v8438_v31 = vpop.eup %8437 }
0x390c   :  { %v7270_v9 = vsel %vm314_vm0, %v8438_v31, 0.0 }
0x390d   :  { %v8440_v29 = vpop.eup %8439  ;;  %7271 = vadd.xlane.f32.xlu0 %v7270_v9 }
0x390e   :  { %v7267_v37 = vsel %vm314_vm0, %v8440_v29, 0.0 }
0x390f   :  { %7268 = vadd.xlane.f32.xlu1 %v7267_v37 }
0x3996   :  { %v7272_v35 = vpop.xlane.xlu0 %7271 }
0x3997   :  { %8441 = vrcp.f32 %v7272_v35 }
0x3998   :  { %v7269_v38 = vpop.xlane.xlu1 %7268 }
0x3999   :  { %8443 = vrcp.f32 %v7269_v38 }
0x39a4   :  { %v8442_v36 = vpop.eup %8441 }
0x39a5   :  { %v7276_v40 = vmul.f32 %v8442_v36, %v8438_v31 }
0x39a6   :  { %v8444_v41 = vpop.eup %8443 }
0x39a7   :  { %v7274_v39 = vmul.f32 %v8444_v41, %v8440_v29  ;;  %7278 = vst.msk [vmem:[#allocation28 + $0x8] sm:$0xff] %vm314_vm0, %v7276_v40 }
0x39a9   :  { %7277 = vst.msk [vmem:[#allocation28] sm:$0xff] %vm314_vm0, %v7274_v39 }
0x39aa   :  { %8778 = shalt.err (!%p8775_p0)
}
0x39ab   :  { %7290 = dma.vmem_to_hbm [thread:$0]  %s7285_s22, 256, %s9896_s25, [#allocation4], %s8817_s0, %s8817_s0, %s8818_s6  }
0x39ac   :  { %8805 = dma.done.wait [#allocation4], 256  }
0x39ad   :  { %8806 = vsyncadd [#allocation4], 4294967040 }
0x39ae   :  { %7294 = vsyncpa [#allocation3], 1 }
0x39af   :  { %7295 = vsyncpa [#allocation6], 1 }
0x39b0   :  { %7296 = vsyncpa [#allocation9], 1 }
0x39b1   :  { %7297 = vsyncpa [#allocation12], 1 }
0x39b2   :  { %7298 = vsyncpa [#allocation15], 1 }
0x39b3   :  { %7299 = vsyncpa [#allocation18], 1 }
0x39b4   :  { %7300 = vsyncpa [#allocation21], 1 }
0x39b5   :  { %7301 = vsyncpa [#allocation24], 1 }
0x39b6   :  { %7302 = vsyncpa [#allocation27], 1 }
0x39b7   :  { %7303 = vsyncpa [#allocation4], 1 }

</bundles_post_ra>
